<compile_context>
chip_gen: v5e
topology: v5e:2x2
jax: 0.10.0
libtpu: 0.0.40
codegen_flags: <defaults>
</compile_context>

<pallas_src>
import functools

import jax
import jax.numpy as jnp
import numpy as np
from jax import lax
from jax.experimental import pallas as pl
from jax.experimental.pallas import tpu as pltpu

LANE = 128


def _round_up(x, m):
    return (x + m - 1) // m * m


def _pad_last(a, target):
    pad = target - a.shape[-1]
    if pad == 0:
        return a
    cfg = [(0, 0)] * (a.ndim - 1) + [(0, pad)]
    return jnp.pad(a, cfg)


def _pad2(a, rows, cols):
    return jnp.pad(a, ((0, rows - a.shape[0]), (0, cols - a.shape[1])))


def _fold_bn(conv_bias, gamma, beta, mean, var, eps=1e-5):
    """Fold conv bias + eval-mode BatchNorm into per-channel (scale, bias)."""
    scale = gamma / jnp.sqrt(var + eps)
    bias = beta + scale * (conv_bias - mean)
    return (scale.reshape(1, -1).astype(jnp.float32),
            bias.reshape(1, -1).astype(jnp.float32))


def _choose_row_block(H, W, max_pixels=2048):
    """Largest divisor TH of H with TH*W <= max_pixels (whole image if it fits)."""
    for th in range(H, 0, -1):
        if H % th == 0 and th * W <= max_pixels:
            return th
    return 1


# ----------------------------------------------------------------------------
# Kernel
# ----------------------------------------------------------------------------
def _residual_kernel(TH, W, has_skip_conv,
                     xc_ref, xt_ref, xb_ref,
                     w1_ref, b1_ref, w2_ref, b2_ref, w3_ref, b3_ref,
                     o_ref, pad_ref):
    cmid_p = w1_ref.shape[1]
    THW = TH * W
    bf = jnp.bfloat16

    r = pl.program_id(1)
    num_r = pl.num_programs(1)

    xc = xc_ref[0]                                     # (TH, W, cin_p)
    xc_bf = xc if has_skip_conv else xc.astype(bf)
    xc2d_bf = xc_bf.reshape(THW, -1)

    def conv1(x2d_bf):                                 # bn1 scale folded into w1
        y = jnp.dot(x2d_bf, w1_ref[...], preferred_element_type=jnp.float32)
        return jnp.maximum(y + b1_ref[...], 0.0)

    # ---- conv1 + bn1 + relu on the TH interior rows and the two halo rows ----
    y1c = conv1(xc2d_bf)                               # (THW, cmid_p) f32
    top_keep = jnp.where(r > 0, 1.0, 0.0)              # zero halo at image edge
    bot_keep = jnp.where(r < num_r - 1, 1.0, 0.0)
    y1t = conv1(xt_ref[0, 0]) * top_keep               # (W, cmid_p)
    y1b = conv1(xb_ref[0, 0]) * bot_keep

    # ---- assemble bf16 halo scratch for conv2 (zero only the side columns) ---
    zcol = jnp.zeros((TH + 2, 1, cmid_p), bf)
    pad_ref[:, 0:1, :] = zcol
    pad_ref[:, W + 1:W + 2, :] = zcol
    pad_ref[0:1, 1:W + 1, :] = y1t.astype(bf).reshape(1, W, cmid_p)
    pad_ref[TH + 1:TH + 2, 1:W + 1, :] = y1b.astype(bf).reshape(1, W, cmid_p)
    pad_ref[1:TH + 1, 1:W + 1, :] = y1c.astype(bf).reshape(TH, W, cmid_p)

    # ---- conv2 (3x3, pad=1) + bn2 + relu : 9 accumulating full-K matmuls -----
    y2 = None
    for dh in range(3):
        for dw in range(3):
            lhs = pad_ref[dh:dh + TH, dw:dw + W, :].reshape(THW, cmid_p)
            tap = jnp.dot(lhs, w2_ref[dh * 3 + dw],
                          preferred_element_type=jnp.float32)
            y2 = tap if y2 is None else y2 + tap
    y2 = jnp.maximum(y2 + b2_ref[...], 0.0)

    # ---- conv3 + bn3 (+ fused skip conv) + residual add + relu ---------------
    if has_skip_conv:
        # One MXU call with K = cmid_p + cin_p; bias already holds b3 + bs.
        lhs3 = jnp.concatenate([y2.astype(bf), xc2d_bf], axis=-1)
        y3 = jnp.dot(lhs3, w3_ref[...], preferred_element_type=jnp.float32)
        out = jnp.maximum(y3 + b3_ref[...], 0.0)
    else:
        y3 = jnp.dot(y2.astype(bf), w3_ref[...],
                     preferred_element_type=jnp.float32)
        out = jnp.maximum(y3 + b3_ref[...] + xc.reshape(THW, -1), 0.0)

    o_ref[0] = out.reshape(TH, W, -1)


# ----------------------------------------------------------------------------
# Wrapper
# ----------------------------------------------------------------------------
@functools.partial(jax.jit, static_argnames=("row_block",))
def residual_forward(x_nchw, params, row_block=None):
    """Forward pass on an NCHW float32 input (PyTorch convention)."""
    N, Cin, H, W = x_nchw.shape
    Cmid = params["w1"].shape[1]
    Cout = params["w3"].shape[1]
    has_skip_conv = "ws" in params

    cin_p = _round_up(Cin, LANE)
    cmid_p = _round_up(Cmid, LANE)
    cout_p = _round_up(Cout, LANE)
    bf = jnp.bfloat16

    TH = row_block if row_block is not None else _choose_row_block(H, W)
    assert H % TH == 0, "row_block must divide H"
    R = H // TH

    # NCHW -> NHWC, lane-pad channels.  bf16 slab when the skip path is a conv
    # (all consumers of x are bf16); f32 when the skip is the identity.
    x_nhwc = jnp.transpose(x_nchw, (0, 2, 3, 1))
    x_dtype = bf if has_skip_conv else jnp.float32
    xc = _pad_last(x_nhwc.astype(x_dtype), cin_p)            # (N, H, W, cin_p)

    # One-row halos per row block (zero rows at the image boundary).
    zero_row = jnp.zeros((N, 1, W, cin_p), xc.dtype)
    if R > 1:
        top = jnp.concatenate([zero_row, xc[:, TH - 1:H - 1:TH]], axis=1)
        bot = jnp.concatenate([xc[:, TH:H:TH], zero_row], axis=1)
    else:
        top, bot = zero_row, zero_row
    top = top.astype(bf)                                     # (N, R, W, cin_p)
    bot = bot.astype(bf)

    # BN scales folded into bf16 weights at trace time; biases stay f32.
    w1 = _pad2(params["w1"] * params["s1"], cin_p, cmid_p).astype(bf)
    b1 = _pad_last(params["b1"], cmid_p)
    w2 = params["w2"] * params["s2"].reshape(-1)             # HWIO * out-scale
    w2 = jnp.pad(w2, ((0, 0), (0, 0),
                      (0, cmid_p - Cmid), (0, cmid_p - Cmid)))
    w2 = w2.reshape(9, cmid_p, cmid_p).astype(bf)            # tap-major layout
    b2 = _pad_last(params["b2"], cmid_p)
    if has_skip_conv:
        # Fuse conv3 and the 1x1 skip conv: stack along K, sum the biases.
        w3 = jnp.concatenate(
            [_pad2(params["w3"] * params["s3"], cmid_p, cout_p),
             _pad2(params["ws"] * params["ss"], cin_p, cout_p)],
            axis=0).astype(bf)
        b3 = _pad_last(params["b3"] + params["bs"], cout_p)
    else:
        w3 = _pad2(params["w3"] * params["s3"], cmid_p, cout_p).astype(bf)
        b3 = _pad_last(params["b3"], cout_p)
    k3 = w3.shape[0]

    in_specs = [
        pl.BlockSpec((1, TH, W, cin_p), lambda n, r: (n, r, 0, 0)),   # center
        pl.BlockSpec((1, 1, W, cin_p), lambda n, r: (n, r, 0, 0)),    # top halo
        pl.BlockSpec((1, 1, W, cin_p), lambda n, r: (n, r, 0, 0)),    # bot halo
        pl.BlockSpec((cin_p, cmid_p), lambda n, r: (0, 0)),           # w1
        pl.BlockSpec((1, cmid_p), lambda n, r: (0, 0)),               # b1
        pl.BlockSpec((9, cmid_p, cmid_p), lambda n, r: (0, 0, 0)),    # w2
        pl.BlockSpec((1, cmid_p), lambda n, r: (0, 0)),               # b2
        pl.BlockSpec((k3, cout_p), lambda n, r: (0, 0)),              # w3(+ws)
        pl.BlockSpec((1, cout_p), lambda n, r: (0, 0)),               # b3(+bs)
    ]

    kernel = functools.partial(_residual_kernel, TH, W, has_skip_conv)

    out_p = pl.pallas_call(
        kernel,
        out_shape=jax.ShapeDtypeStruct((N, H, W, cout_p), jnp.float32),
        grid_spec=pltpu.PrefetchScalarGridSpec(
            num_scalar_prefetch=0,
            grid=(N, R),
            in_specs=in_specs,
            out_specs=pl.BlockSpec((1, TH, W, cout_p),
                                   lambda n, r: (n, r, 0, 0)),
            scratch_shapes=[pltpu.VMEM((TH + 2, W + 2, cmid_p), bf)],
        ),
        compiler_params=pltpu.CompilerParams(
            dimension_semantics=("parallel", "parallel"),
            vmem_limit_bytes=32 * 1024 * 1024),
    )(xc, top, bot, w1, b1, w2, b2, w3, b3)

    out = out_p[..., :Cout]                                  # drop lane padding
    return jnp.transpose(out, (0, 3, 1, 2))                  # NHWC -> NCHW


# ----------------------------------------------------------------------------
# Parameter construction (synthetic, matches PyTorch module shapes)
# ----------------------------------------------------------------------------
def init_params(key, in_channels, out_channels):
    cmid = out_channels // 2
    ks = jax.random.split(key, 12)

    def conv_w(k, cin, cout, kh=1, kw=1):
        bound = 1.0 / np.sqrt(cin * kh * kw)
        shape = (cin, cout) if (kh == 1 and kw == 1) else (kh, kw, cin, cout)
        return jax.random.uniform(k, shape, jnp.float32, -bound, bound)

    def conv_b(k, cout, fan_in):
        bound = 1.0 / np.sqrt(fan_in)
        return jax.random.uniform(k, (cout,), jnp.float32, -bound, bound)

    def bn(k4, c):
        kg, kb, km, kv = jax.random.split(k4, 4)
        gamma = jax.random.uniform(kg, (c,), jnp.float32, 0.5, 1.5)
        beta = jax.random.uniform(kb, (c,), jnp.float32, -0.5, 0.5)
        mean = jax.random.uniform(km, (c,), jnp.float32, -0.5, 0.5)
        var = jax.random.uniform(kv, (c,), jnp.float32, 0.5, 1.5)
        return gamma, beta, mean, var

    p = {}
    p["w1"] = conv_w(ks[0], in_channels, cmid)
    p["s1"], p["b1"] = _fold_bn(conv_b(ks[1], cmid, in_channels), *bn(ks[2], cmid))
    p["w2"] = conv_w(ks[3], cmid, cmid, 3, 3)                     # HWIO
    p["s2"], p["b2"] = _fold_bn(conv_b(ks[4], cmid, cmid * 9), *bn(ks[5], cmid))
    p["w3"] = conv_w(ks[6], cmid, out_channels)
    p["s3"], p["b3"] = _fold_bn(conv_b(ks[7], out_channels, cmid),
                                *bn(ks[8], out_channels))
    if in_channels != out_channels:
        p["ws"] = conv_w(ks[9], in_channels, out_channels)
        p["ss"], p["bs"] = _fold_bn(conv_b(ks[10], out_channels, in_channels),
                                    *bn(ks[11], out_channels))
    # in_channels == out_channels: nn.Identity() skip -> no params (specialized).
    return p


# ----------------------------------------------------------------------------
# Pure-JAX reference (same eval-mode BN folding and same bf16-weight/activation
# rounding as the kernel, different conv implementation).  Drift vs. a pure-f32
# PyTorch forward is ~1e-3 relative from the bf16 MXU operands.
# ----------------------------------------------------------------------------
def ref_forward(x_nchw, p):
    bf = jnp.bfloat16
    x = jnp.transpose(x_nchw, (0, 2, 3, 1)).astype(jnp.float32)   # NHWC

    def conv1x1(z, w, s):   # scale folded into the bf16 weight, like the kernel
        return jnp.einsum("nhwc,cd->nhwd", z.astype(bf), (w * s).astype(bf),
                          preferred_element_type=jnp.float32)

    y = jnp.maximum(conv1x1(x, p["w1"], p["s1"]) + p["b1"], 0.0)
    w2 = (p["w2"] * p["s2"].reshape(-1)).astype(bf)
    y = lax.conv_general_dilated(
        y.astype(bf), w2, (1, 1), "SAME",
        dimension_numbers=("NHWC", "HWIO", "NHWC"),
        preferred_element_type=jnp.float32)
    y = jnp.maximum(y + p["b2"], 0.0)
    y = conv1x1(y, p["w3"], p["s3"]) + p["b3"]
    if "ws" in p:
        skip = conv1x1(x, p["ws"], p["ss"]) + p["bs"]
    else:
        skip = x
    out = jnp.maximum(y + skip, 0.0)
    return jnp.transpose(out, (0, 3, 1, 2))


if __name__ == "__main__":
    key = jax.random.PRNGKey(0)
    k_x1, k_p1, k_x2, k_p2 = jax.random.split(key, 4)

    N, H, W = 2, 16, 16

    # Case 1: in_channels != out_channels -> conv1x1+BN skip, fused into conv3.
    Cin, Cout = 4, 8
    x1 = jax.random.normal(k_x1, (N, Cin, H, W), jnp.float32)
    p1 = init_params(k_p1, Cin, Cout)
    ref1 = np.asarray(ref_forward(x1, p1))
    for rb in (None, 4):          # whole-image block, and 4-row blocks (halo path)
        out1 = residual_forward(x1, p1, row_block=rb)
        jax.block_until_ready(out1)
        assert out1.shape == (N, Cout, H, W)
        np.testing.assert_allclose(np.asarray(out1), ref1, atol=2e-3, rtol=2e-3)

    # Case 2: in_channels == out_channels -> specialized identity skip.
    Cin2 = Cout2 = 8
    x2 = jax.random.normal(k_x2, (N, Cin2, H, W), jnp.float32)
    p2 = init_params(k_p2, Cin2, Cout2)
    ref2 = np.asarray(ref_forward(x2, p2))
    for rb in (None, 8):
        out2 = residual_forward(x2, p2, row_block=rb)
        jax.block_until_ready(out2)
        assert out2.shape == (N, Cout2, H, W)
        np.testing.assert_allclose(np.asarray(out2), ref2, atol=2e-3, rtol=2e-3)

    print("KERNEL_OK")
</pallas_src>

<mosaic_0001>
module attributes {stable_mosaic.version = 11 : i64} {
  func.func @_residual_kernel(%arg0: i32, %arg1: i32, %arg2: memref<1x16x16x128xbf16, #tpu.memory_space<vmem>>, %arg3: memref<1x1x16x128xbf16, #tpu.memory_space<vmem>>, %arg4: memref<1x1x16x128xbf16, #tpu.memory_space<vmem>>, %arg5: memref<128x128xbf16, #tpu.memory_space<vmem>>, %arg6: memref<1x128xf32, #tpu.memory_space<vmem>>, %arg7: memref<9x128x128xbf16, #tpu.memory_space<vmem>>, %arg8: memref<1x128xf32, #tpu.memory_space<vmem>>, %arg9: memref<256x128xbf16, #tpu.memory_space<vmem>>, %arg10: memref<1x128xf32, #tpu.memory_space<vmem>>, %arg11: memref<1x16x16x128xf32, #tpu.memory_space<vmem>>, %arg12: memref<18x18x128xbf16, #tpu.memory_space<vmem>>) attributes {dimension_semantics = [#tpu.dimension_semantics<parallel>, #tpu.dimension_semantics<parallel>], iteration_bounds = array<i64: 2, 1>, scalar_prefetch = 0 : i64, scratch_operands = 1 : i64, tpu.core_type = #tpu.core_type<tc>, window_params = [{transform_indices = @transform_0, window_bounds = array<i64: 1, 16, 16, 128>}, {transform_indices = @transform_1, window_bounds = array<i64: 1, 1, 16, 128>}, {transform_indices = @transform_2, window_bounds = array<i64: 1, 1, 16, 128>}, {pipeline_mode = #tpu.pipeline_mode<synchronous>, transform_indices = @transform_3, window_bounds = array<i64: 128, 128>}, {pipeline_mode = #tpu.pipeline_mode<synchronous>, transform_indices = @transform_4, window_bounds = array<i64: 1, 128>}, {pipeline_mode = #tpu.pipeline_mode<synchronous>, transform_indices = @transform_5, window_bounds = array<i64: 9, 128, 128>}, {pipeline_mode = #tpu.pipeline_mode<synchronous>, transform_indices = @transform_6, window_bounds = array<i64: 1, 128>}, {pipeline_mode = #tpu.pipeline_mode<synchronous>, transform_indices = @transform_7, window_bounds = array<i64: 256, 128>}, {pipeline_mode = #tpu.pipeline_mode<synchronous>, transform_indices = @transform_8, window_bounds = array<i64: 1, 128>}, {transform_indices = @transform_9, window_bounds = array<i64: 1, 16, 16, 128>}]} {
    %c0 = arith.constant 0 : index
    %c0_0 = arith.constant 0 : index
    %c0_1 = arith.constant 0 : index
    %c0_2 = arith.constant 0 : index
    %0 = vector.load %arg2[%c0, %c0_0, %c0_1, %c0_2] : memref<1x16x16x128xbf16, #tpu.memory_space<vmem>>, vector<1x16x16x128xbf16>
    %1 = vector.shape_cast %0 : vector<1x16x16x128xbf16> to vector<16x16x128xbf16>
    %2 = vector.shape_cast %1 : vector<16x16x128xbf16> to vector<256x128xbf16>
    %c0_3 = arith.constant 0 : index
    %c0_4 = arith.constant 0 : index
    %3 = vector.load %arg5[%c0_3, %c0_4] : memref<128x128xbf16, #tpu.memory_space<vmem>>, vector<128x128xbf16>
    %cst = arith.constant dense<0.000000e+00> : vector<256x128xf32>
    %4 = tpu.matmul %2, %3, %cst {dimension_numbers = #tpu.dot_dimension_numbers<[1], [0], [0], [1], [0, 0, 1, 1], [], []>} : vector<256x128xbf16>, vector<128x128xbf16>, vector<256x128xf32> -> vector<256x128xf32>
    %c0_5 = arith.constant 0 : index
    %c0_6 = arith.constant 0 : index
    %5 = vector.load %arg6[%c0_5, %c0_6] : memref<1x128xf32, #tpu.memory_space<vmem>>, vector<1x128xf32>
    %6 = vector.broadcast %5 : vector<1x128xf32> to vector<256x128xf32>
    %7 = arith.addf %4, %6 : vector<256x128xf32>
    %cst_7 = arith.constant 0.000000e+00 : f32
    %8 = vector.broadcast %cst_7 : f32 to vector<256x128xf32>
    %9 = arith.maximumf %7, %8 : vector<256x128xf32>
    %c0_i32 = arith.constant 0 : i32
    %10 = arith.cmpi sgt, %arg1, %c0_i32 : i32
    %cst_8 = arith.constant 1.000000e+00 : f32
    %cst_9 = arith.constant 0.000000e+00 : f32
    %11 = arith.select %10, %cst_8, %cst_9 : f32
    %c0_i32_10 = arith.constant 0 : i32
    %12 = arith.cmpi slt, %arg1, %c0_i32_10 : i32
    %cst_11 = arith.constant 1.000000e+00 : f32
    %cst_12 = arith.constant 0.000000e+00 : f32
    %13 = arith.select %12, %cst_11, %cst_12 : f32
    %c0_13 = arith.constant 0 : index
    %c0_14 = arith.constant 0 : index
    %c0_15 = arith.constant 0 : index
    %c0_16 = arith.constant 0 : index
    %14 = vector.load %arg3[%c0_13, %c0_14, %c0_15, %c0_16] : memref<1x1x16x128xbf16, #tpu.memory_space<vmem>>, vector<1x1x16x128xbf16>
    %15 = vector.shape_cast %14 : vector<1x1x16x128xbf16> to vector<16x128xbf16>
    %c0_17 = arith.constant 0 : index
    %c0_18 = arith.constant 0 : index
    %16 = vector.load %arg5[%c0_17, %c0_18] : memref<128x128xbf16, #tpu.memory_space<vmem>>, vector<128x128xbf16>
    %cst_19 = arith.constant dense<0.000000e+00> : vector<16x128xf32>
    %17 = tpu.matmul %15, %16, %cst_19 {dimension_numbers = #tpu.dot_dimension_numbers<[1], [0], [0], [1], [0, 0, 1, 1], [], []>} : vector<16x128xbf16>, vector<128x128xbf16>, vector<16x128xf32> -> vector<16x128xf32>
    %c0_20 = arith.constant 0 : index
    %c0_21 = arith.constant 0 : index
    %18 = vector.load %arg6[%c0_20, %c0_21] : memref<1x128xf32, #tpu.memory_space<vmem>>, vector<1x128xf32>
    %19 = vector.broadcast %18 : vector<1x128xf32> to vector<16x128xf32>
    %20 = arith.addf %17, %19 : vector<16x128xf32>
    %cst_22 = arith.constant 0.000000e+00 : f32
    %21 = vector.broadcast %cst_22 : f32 to vector<16x128xf32>
    %22 = arith.maximumf %20, %21 : vector<16x128xf32>
    %23 = vector.broadcast %11 : f32 to vector<16x128xf32>
    %24 = arith.mulf %22, %23 : vector<16x128xf32>
    %c0_23 = arith.constant 0 : index
    %c0_24 = arith.constant 0 : index
    %c0_25 = arith.constant 0 : index
    %c0_26 = arith.constant 0 : index
    %25 = vector.load %arg4[%c0_23, %c0_24, %c0_25, %c0_26] : memref<1x1x16x128xbf16, #tpu.memory_space<vmem>>, vector<1x1x16x128xbf16>
    %26 = vector.shape_cast %25 : vector<1x1x16x128xbf16> to vector<16x128xbf16>
    %c0_27 = arith.constant 0 : index
    %c0_28 = arith.constant 0 : index
    %27 = vector.load %arg5[%c0_27, %c0_28] : memref<128x128xbf16, #tpu.memory_space<vmem>>, vector<128x128xbf16>
    %cst_29 = arith.constant dense<0.000000e+00> : vector<16x128xf32>
    %28 = tpu.matmul %26, %27, %cst_29 {dimension_numbers = #tpu.dot_dimension_numbers<[1], [0], [0], [1], [0, 0, 1, 1], [], []>} : vector<16x128xbf16>, vector<128x128xbf16>, vector<16x128xf32> -> vector<16x128xf32>
    %c0_30 = arith.constant 0 : index
    %c0_31 = arith.constant 0 : index
    %29 = vector.load %arg6[%c0_30, %c0_31] : memref<1x128xf32, #tpu.memory_space<vmem>>, vector<1x128xf32>
    %30 = vector.broadcast %29 : vector<1x128xf32> to vector<16x128xf32>
    %31 = arith.addf %28, %30 : vector<16x128xf32>
    %cst_32 = arith.constant 0.000000e+00 : f32
    %32 = vector.broadcast %cst_32 : f32 to vector<16x128xf32>
    %33 = arith.maximumf %31, %32 : vector<16x128xf32>
    %34 = vector.broadcast %13 : f32 to vector<16x128xf32>
    %35 = arith.mulf %33, %34 : vector<16x128xf32>
    %cst_33 = arith.constant 0.000000e+00 : bf16
    %36 = vector.broadcast %cst_33 : bf16 to vector<18x1x128xbf16>
    %c0_34 = arith.constant 0 : index
    %c0_35 = arith.constant 0 : index
    %c0_36 = arith.constant 0 : index
    %37 = vector.load %arg12[%c0_34, %c0_35, %c0_36] : memref<18x18x128xbf16, #tpu.memory_space<vmem>>, vector<18x1x128xbf16>
    tpu.vector_store %arg12[%c0_34, %c0_35, %c0_36], %36 {strides = array<i32>} : memref<18x18x128xbf16, #tpu.memory_space<vmem>>, vector<18x1x128xbf16>,
    %c0_37 = arith.constant 0 : index
    %c17 = arith.constant 17 : index
    %c0_38 = arith.constant 0 : index
    %38 = vector.load %arg12[%c0_37, %c17, %c0_38] : memref<18x18x128xbf16, #tpu.memory_space<vmem>>, vector<18x1x128xbf16>
    tpu.vector_store %arg12[%c0_37, %c17, %c0_38], %36 {strides = array<i32>} : memref<18x18x128xbf16, #tpu.memory_space<vmem>>, vector<18x1x128xbf16>,
    %39 = arith.truncf %24 : vector<16x128xf32> to vector<16x128xbf16>
    %40 = vector.shape_cast %39 : vector<16x128xbf16> to vector<1x16x128xbf16>
    %c0_39 = arith.constant 0 : index
    %c1 = arith.constant 1 : index
    %c0_40 = arith.constant 0 : index
    %41 = vector.load %arg12[%c0_39, %c1, %c0_40] : memref<18x18x128xbf16, #tpu.memory_space<vmem>>, vector<1x16x128xbf16>
    tpu.vector_store %arg12[%c0_39, %c1, %c0_40], %40 {strides = array<i32>} : memref<18x18x128xbf16, #tpu.memory_space<vmem>>, vector<1x16x128xbf16>,
    %42 = arith.truncf %35 : vector<16x128xf32> to vector<16x128xbf16>
    %43 = vector.shape_cast %42 : vector<16x128xbf16> to vector<1x16x128xbf16>
    %c17_41 = arith.constant 17 : index
    %c1_42 = arith.constant 1 : index
    %c0_43 = arith.constant 0 : index
    %44 = vector.load %arg12[%c17_41, %c1_42, %c0_43] : memref<18x18x128xbf16, #tpu.memory_space<vmem>>, vector<1x16x128xbf16>
    tpu.vector_store %arg12[%c17_41, %c1_42, %c0_43], %43 {strides = array<i32>} : memref<18x18x128xbf16, #tpu.memory_space<vmem>>, vector<1x16x128xbf16>,
    %45 = arith.truncf %9 : vector<256x128xf32> to vector<256x128xbf16>
    %46 = vector.shape_cast %45 : vector<256x128xbf16> to vector<16x16x128xbf16>
    %c1_44 = arith.constant 1 : index
    %c1_45 = arith.constant 1 : index
    %c0_46 = arith.constant 0 : index
    %47 = vector.load %arg12[%c1_44, %c1_45, %c0_46] : memref<18x18x128xbf16, #tpu.memory_space<vmem>>, vector<16x16x128xbf16>
    tpu.vector_store %arg12[%c1_44, %c1_45, %c0_46], %46 {strides = array<i32>} : memref<18x18x128xbf16, #tpu.memory_space<vmem>>, vector<16x16x128xbf16>,
    %c0_47 = arith.constant 0 : index
    %c0_48 = arith.constant 0 : index
    %c0_49 = arith.constant 0 : index
    %48 = vector.load %arg12[%c0_47, %c0_48, %c0_49] : memref<18x18x128xbf16, #tpu.memory_space<vmem>>, vector<16x16x128xbf16>
    %49 = vector.shape_cast %48 : vector<16x16x128xbf16> to vector<256x128xbf16>
    %c0_50 = arith.constant 0 : index
    %c0_51 = arith.constant 0 : index
    %c0_52 = arith.constant 0 : index
    %50 = vector.load %arg7[%c0_50, %c0_51, %c0_52] : memref<9x128x128xbf16, #tpu.memory_space<vmem>>, vector<1x128x128xbf16>
    %51 = vector.shape_cast %50 : vector<1x128x128xbf16> to vector<128x128xbf16>
    %cst_53 = arith.constant dense<0.000000e+00> : vector<256x128xf32>
    %52 = tpu.matmul %49, %51, %cst_53 {dimension_numbers = #tpu.dot_dimension_numbers<[1], [0], [0], [1], [0, 0, 1, 1], [], []>} : vector<256x128xbf16>, vector<128x128xbf16>, vector<256x128xf32> -> vector<256x128xf32>
    %c0_54 = arith.constant 0 : index
    %c1_55 = arith.constant 1 : index
    %c0_56 = arith.constant 0 : index
    %53 = vector.load %arg12[%c0_54, %c1_55, %c0_56] : memref<18x18x128xbf16, #tpu.memory_space<vmem>>, vector<16x16x128xbf16>
    %54 = vector.shape_cast %53 : vector<16x16x128xbf16> to vector<256x128xbf16>
    %c1_57 = arith.constant 1 : index
    %c0_58 = arith.constant 0 : index
    %c0_59 = arith.constant 0 : index
    %55 = vector.load %arg7[%c1_57, %c0_58, %c0_59] : memref<9x128x128xbf16, #tpu.memory_space<vmem>>, vector<1x128x128xbf16>
    %56 = vector.shape_cast %55 : vector<1x128x128xbf16> to vector<128x128xbf16>
    %cst_60 = arith.constant dense<0.000000e+00> : vector<256x128xf32>
    %57 = tpu.matmul %54, %56, %cst_60 {dimension_numbers = #tpu.dot_dimension_numbers<[1], [0], [0], [1], [0, 0, 1, 1], [], []>} : vector<256x128xbf16>, vector<128x128xbf16>, vector<256x128xf32> -> vector<256x128xf32>
    %58 = arith.addf %52, %57 : vector<256x128xf32>
    %c0_61 = arith.constant 0 : index
    %c2 = arith.constant 2 : index
    %c0_62 = arith.constant 0 : index
    %59 = vector.load %arg12[%c0_61, %c2, %c0_62] : memref<18x18x128xbf16, #tpu.memory_space<vmem>>, vector<16x16x128xbf16>
    %60 = vector.shape_cast %59 : vector<16x16x128xbf16> to vector<256x128xbf16>
    %c2_63 = arith.constant 2 : index
    %c0_64 = arith.constant 0 : index
    %c0_65 = arith.constant 0 : index
    %61 = vector.load %arg7[%c2_63, %c0_64, %c0_65] : memref<9x128x128xbf16, #tpu.memory_space<vmem>>, vector<1x128x128xbf16>
    %62 = vector.shape_cast %61 : vector<1x128x128xbf16> to vector<128x128xbf16>
    %cst_66 = arith.constant dense<0.000000e+00> : vector<256x128xf32>
    %63 = tpu.matmul %60, %62, %cst_66 {dimension_numbers = #tpu.dot_dimension_numbers<[1], [0], [0], [1], [0, 0, 1, 1], [], []>} : vector<256x128xbf16>, vector<128x128xbf16>, vector<256x128xf32> -> vector<256x128xf32>
    %64 = arith.addf %58, %63 : vector<256x128xf32>
    %c1_67 = arith.constant 1 : index
    %c0_68 = arith.constant 0 : index
    %c0_69 = arith.constant 0 : index
    %65 = vector.load %arg12[%c1_67, %c0_68, %c0_69] : memref<18x18x128xbf16, #tpu.memory_space<vmem>>, vector<16x16x128xbf16>
    %66 = vector.shape_cast %65 : vector<16x16x128xbf16> to vector<256x128xbf16>
    %c3 = arith.constant 3 : index
    %c0_70 = arith.constant 0 : index
    %c0_71 = arith.constant 0 : index
    %67 = vector.load %arg7[%c3, %c0_70, %c0_71] : memref<9x128x128xbf16, #tpu.memory_space<vmem>>, vector<1x128x128xbf16>
    %68 = vector.shape_cast %67 : vector<1x128x128xbf16> to vector<128x128xbf16>
    %cst_72 = arith.constant dense<0.000000e+00> : vector<256x128xf32>
    %69 = tpu.matmul %66, %68, %cst_72 {dimension_numbers = #tpu.dot_dimension_numbers<[1], [0], [0], [1], [0, 0, 1, 1], [], []>} : vector<256x128xbf16>, vector<128x128xbf16>, vector<256x128xf32> -> vector<256x128xf32>
    %70 = arith.addf %64, %69 : vector<256x128xf32>
    %c1_73 = arith.constant 1 : index
    %c1_74 = arith.constant 1 : index
    %c0_75 = arith.constant 0 : index
    %71 = vector.load %arg12[%c1_73, %c1_74, %c0_75] : memref<18x18x128xbf16, #tpu.memory_space<vmem>>, vector<16x16x128xbf16>
    %72 = vector.shape_cast %71 : vector<16x16x128xbf16> to vector<256x128xbf16>
    %c4 = arith.constant 4 : index
    %c0_76 = arith.constant 0 : index
    %c0_77 = arith.constant 0 : index
    %73 = vector.load %arg7[%c4, %c0_76, %c0_77] : memref<9x128x128xbf16, #tpu.memory_space<vmem>>, vector<1x128x128xbf16>
    %74 = vector.shape_cast %73 : vector<1x128x128xbf16> to vector<128x128xbf16>
    %cst_78 = arith.constant dense<0.000000e+00> : vector<256x128xf32>
    %75 = tpu.matmul %72, %74, %cst_78 {dimension_numbers = #tpu.dot_dimension_numbers<[1], [0], [0], [1], [0, 0, 1, 1], [], []>} : vector<256x128xbf16>, vector<128x128xbf16>, vector<256x128xf32> -> vector<256x128xf32>
    %76 = arith.addf %70, %75 : vector<256x128xf32>
    %c1_79 = arith.constant 1 : index
    %c2_80 = arith.constant 2 : index
    %c0_81 = arith.constant 0 : index
    %77 = vector.load %arg12[%c1_79, %c2_80, %c0_81] : memref<18x18x128xbf16, #tpu.memory_space<vmem>>, vector<16x16x128xbf16>
    %78 = vector.shape_cast %77 : vector<16x16x128xbf16> to vector<256x128xbf16>
    %c5 = arith.constant 5 : index
    %c0_82 = arith.constant 0 : index
    %c0_83 = arith.constant 0 : index
    %79 = vector.load %arg7[%c5, %c0_82, %c0_83] : memref<9x128x128xbf16, #tpu.memory_space<vmem>>, vector<1x128x128xbf16>
    %80 = vector.shape_cast %79 : vector<1x128x128xbf16> to vector<128x128xbf16>
    %cst_84 = arith.constant dense<0.000000e+00> : vector<256x128xf32>
    %81 = tpu.matmul %78, %80, %cst_84 {dimension_numbers = #tpu.dot_dimension_numbers<[1], [0], [0], [1], [0, 0, 1, 1], [], []>} : vector<256x128xbf16>, vector<128x128xbf16>, vector<256x128xf32> -> vector<256x128xf32>
    %82 = arith.addf %76, %81 : vector<256x128xf32>
    %c2_85 = arith.constant 2 : index
    %c0_86 = arith.constant 0 : index
    %c0_87 = arith.constant 0 : index
    %83 = vector.load %arg12[%c2_85, %c0_86, %c0_87] : memref<18x18x128xbf16, #tpu.memory_space<vmem>>, vector<16x16x128xbf16>
    %84 = vector.shape_cast %83 : vector<16x16x128xbf16> to vector<256x128xbf16>
    %c6 = arith.constant 6 : index
    %c0_88 = arith.constant 0 : index
    %c0_89 = arith.constant 0 : index
    %85 = vector.load %arg7[%c6, %c0_88, %c0_89] : memref<9x128x128xbf16, #tpu.memory_space<vmem>>, vector<1x128x128xbf16>
    %86 = vector.shape_cast %85 : vector<1x128x128xbf16> to vector<128x128xbf16>
    %cst_90 = arith.constant dense<0.000000e+00> : vector<256x128xf32>
    %87 = tpu.matmul %84, %86, %cst_90 {dimension_numbers = #tpu.dot_dimension_numbers<[1], [0], [0], [1], [0, 0, 1, 1], [], []>} : vector<256x128xbf16>, vector<128x128xbf16>, vector<256x128xf32> -> vector<256x128xf32>
    %88 = arith.addf %82, %87 : vector<256x128xf32>
    %c2_91 = arith.constant 2 : index
    %c1_92 = arith.constant 1 : index
    %c0_93 = arith.constant 0 : index
    %89 = vector.load %arg12[%c2_91, %c1_92, %c0_93] : memref<18x18x128xbf16, #tpu.memory_space<vmem>>, vector<16x16x128xbf16>
    %90 = vector.shape_cast %89 : vector<16x16x128xbf16> to vector<256x128xbf16>
    %c7 = arith.constant 7 : index
    %c0_94 = arith.constant 0 : index
    %c0_95 = arith.constant 0 : index
    %91 = vector.load %arg7[%c7, %c0_94, %c0_95] : memref<9x128x128xbf16, #tpu.memory_space<vmem>>, vector<1x128x128xbf16>
    %92 = vector.shape_cast %91 : vector<1x128x128xbf16> to vector<128x128xbf16>
    %cst_96 = arith.constant dense<0.000000e+00> : vector<256x128xf32>
    %93 = tpu.matmul %90, %92, %cst_96 {dimension_numbers = #tpu.dot_dimension_numbers<[1], [0], [0], [1], [0, 0, 1, 1], [], []>} : vector<256x128xbf16>, vector<128x128xbf16>, vector<256x128xf32> -> vector<256x128xf32>
    %94 = arith.addf %88, %93 : vector<256x128xf32>
    %c2_97 = arith.constant 2 : index
    %c2_98 = arith.constant 2 : index
    %c0_99 = arith.constant 0 : index
    %95 = vector.load %arg12[%c2_97, %c2_98, %c0_99] : memref<18x18x128xbf16, #tpu.memory_space<vmem>>, vector<16x16x128xbf16>
    %96 = vector.shape_cast %95 : vector<16x16x128xbf16> to vector<256x128xbf16>
    %c8 = arith.constant 8 : index
    %c0_100 = arith.constant 0 : index
    %c0_101 = arith.constant 0 : index
    %97 = vector.load %arg7[%c8, %c0_100, %c0_101] : memref<9x128x128xbf16, #tpu.memory_space<vmem>>, vector<1x128x128xbf16>
    %98 = vector.shape_cast %97 : vector<1x128x128xbf16> to vector<128x128xbf16>
    %cst_102 = arith.constant dense<0.000000e+00> : vector<256x128xf32>
    %99 = tpu.matmul %96, %98, %cst_102 {dimension_numbers = #tpu.dot_dimension_numbers<[1], [0], [0], [1], [0, 0, 1, 1], [], []>} : vector<256x128xbf16>, vector<128x128xbf16>, vector<256x128xf32> -> vector<256x128xf32>
    %100 = arith.addf %94, %99 : vector<256x128xf32>
    %c0_103 = arith.constant 0 : index
    %c0_104 = arith.constant 0 : index
    %101 = vector.load %arg8[%c0_103, %c0_104] : memref<1x128xf32, #tpu.memory_space<vmem>>, vector<1x128xf32>
    %102 = vector.broadcast %101 : vector<1x128xf32> to vector<256x128xf32>
    %103 = arith.addf %100, %102 : vector<256x128xf32>
    %cst_105 = arith.constant 0.000000e+00 : f32
    %104 = vector.broadcast %cst_105 : f32 to vector<256x128xf32>
    %105 = arith.maximumf %103, %104 : vector<256x128xf32>
    %106 = arith.truncf %105 : vector<256x128xf32> to vector<256x128xbf16>
    %107 = tpu.concatenate %106, %2 in 1 : vector<256x128xbf16>, vector<256x128xbf16> -> vector<256x256xbf16>
    %c0_106 = arith.constant 0 : index
    %c0_107 = arith.constant 0 : index
    %108 = vector.load %arg9[%c0_106, %c0_107] : memref<256x128xbf16, #tpu.memory_space<vmem>>, vector<256x128xbf16>
    %cst_108 = arith.constant dense<0.000000e+00> : vector<256x128xf32>
    %109 = tpu.matmul %107, %108, %cst_108 {dimension_numbers = #tpu.dot_dimension_numbers<[1], [0], [0], [1], [0, 0, 1, 1], [], []>} : vector<256x256xbf16>, vector<256x128xbf16>, vector<256x128xf32> -> vector<256x128xf32>
    %c0_109 = arith.constant 0 : index
    %c0_110 = arith.constant 0 : index
    %110 = vector.load %arg10[%c0_109, %c0_110] : memref<1x128xf32, #tpu.memory_space<vmem>>, vector<1x128xf32>
    %111 = vector.broadcast %110 : vector<1x128xf32> to vector<256x128xf32>
    %112 = arith.addf %109, %111 : vector<256x128xf32>
    %cst_111 = arith.constant 0.000000e+00 : f32
    %113 = vector.broadcast %cst_111 : f32 to vector<256x128xf32>
    %114 = arith.maximumf %112, %113 : vector<256x128xf32>
    %115 = vector.shape_cast %114 : vector<256x128xf32> to vector<16x16x128xf32>
    %c0_112 = arith.constant 0 : index
    %c0_113 = arith.constant 0 : index
    %c0_114 = arith.constant 0 : index
    %c0_115 = arith.constant 0 : index
    %116 = vector.load %arg11[%c0_112, %c0_113, %c0_114, %c0_115] : memref<1x16x16x128xf32, #tpu.memory_space<vmem>>, vector<1x16x16x128xf32>
    %117 = vector.shape_cast %116 : vector<1x16x16x128xf32> to vector<16x16x128xf32>
    %118 = vector.shape_cast %115 : vector<16x16x128xf32> to vector<1x16x16x128xf32>
    tpu.vector_store %arg11[%c0_112, %c0_113, %c0_114, %c0_115], %118 {strides = array<i32>} : memref<1x16x16x128xf32, #tpu.memory_space<vmem>>, vector<1x16x16x128xf32>,
    return
  }
  func.func @transform_0(%arg0: i32, %arg1: i32) -> (i32, i32, i32, i32) {
    %c0_i32 = arith.constant 0 : i32
    %c0_i32_0 = arith.constant 0 : i32
    %c0_i32_1 = arith.constant 0 : i32
    return %arg0, %arg1, %c0_i32, %c0_i32_0 : i32, i32, i32, i32
  }
  func.func @transform_1(%arg0: i32, %arg1: i32) -> (i32, i32, i32, i32) {
    %c0_i32 = arith.constant 0 : i32
    %c0_i32_0 = arith.constant 0 : i32
    %c0_i32_1 = arith.constant 0 : i32
    return %arg0, %arg1, %c0_i32, %c0_i32_0 : i32, i32, i32, i32
  }
  func.func @transform_2(%arg0: i32, %arg1: i32) -> (i32, i32, i32, i32) {
    %c0_i32 = arith.constant 0 : i32
    %c0_i32_0 = arith.constant 0 : i32
    %c0_i32_1 = arith.constant 0 : i32
    return %arg0, %arg1, %c0_i32, %c0_i32_0 : i32, i32, i32, i32
  }
  func.func @transform_3(%arg0: i32, %arg1: i32) -> (i32, i32) {
    %c0_i32 = arith.constant 0 : i32
    %c0_i32_0 = arith.constant 0 : i32
    %c0_i32_1 = arith.constant 0 : i32
    return %c0_i32, %c0_i32_0 : i32, i32
  }
  func.func @transform_4(%arg0: i32, %arg1: i32) -> (i32, i32) {
    %c0_i32 = arith.constant 0 : i32
    %c0_i32_0 = arith.constant 0 : i32
    %c0_i32_1 = arith.constant 0 : i32
    return %c0_i32, %c0_i32_0 : i32, i32
  }
  func.func @transform_5(%arg0: i32, %arg1: i32) -> (i32, i32, i32) {
    %c0_i32 = arith.constant 0 : i32
    %c0_i32_0 = arith.constant 0 : i32
    %c0_i32_1 = arith.constant 0 : i32
    %c0_i32_2 = arith.constant 0 : i32
    return %c0_i32, %c0_i32_0, %c0_i32_1 : i32, i32, i32
  }
  func.func @transform_6(%arg0: i32, %arg1: i32) -> (i32, i32) {
    %c0_i32 = arith.constant 0 : i32
    %c0_i32_0 = arith.constant 0 : i32
    %c0_i32_1 = arith.constant 0 : i32
    return %c0_i32, %c0_i32_0 : i32, i32
  }
  func.func @transform_7(%arg0: i32, %arg1: i32) -> (i32, i32) {
    %c0_i32 = arith.constant 0 : i32
    %c0_i32_0 = arith.constant 0 : i32
    %c0_i32_1 = arith.constant 0 : i32
    return %c0_i32, %c0_i32_0 : i32, i32
  }
  func.func @transform_8(%arg0: i32, %arg1: i32) -> (i32, i32) {
    %c0_i32 = arith.constant 0 : i32
    %c0_i32_0 = arith.constant 0 : i32
    %c0_i32_1 = arith.constant 0 : i32
    return %c0_i32, %c0_i32_0 : i32, i32
  }
  func.func @transform_9(%arg0: i32, %arg1: i32) -> (i32, i32, i32, i32) {
    %c0_i32 = arith.constant 0 : i32
    %c0_i32_0 = arith.constant 0 : i32
    %c0_i32_1 = arith.constant 0 : i32
    return %arg0, %arg1, %c0_i32, %c0_i32_0 : i32, i32, i32, i32
  }
}

</mosaic_0001>

<bundles_post_ra>
// kernel: residual_forward.1
= control target key start
LH: loop header
LB: loop body
LE: loop exit
PB: predicated region body
PF: predicated region fallthrough
CT: control target
= control target key end

     0   :  { %s7470_s30 = smov 0   ;;  %s7472_s10 = smov 0   ;;  %s9964_s0 = inlined_call_operand.vmem [shape: bf16[2,16,16,128], index: 0, kind: input, shape index: {}]   ;;  %s9965_s1 = inlined_call_operand.vmem [shape: bf16[2,1,16,128], index: 1, kind: input, shape index: {}, may-alias: {1,2}]   ;;  %s9966_s2 = inlined_call_operand.vmem [shape: bf16[2,1,16,128], index: 2, kind: input, shape index: {}, may-alias: {1,2}]   ;;  %s9967_s3 = inlined_call_operand.vmem [shape: bf16[128,128], index: 3, kind: input, shape index: {}]   ;;  %s9968_s4 = inlined_call_operand.vmem [shape: f32[1,128], index: 4, kind: input, shape index: {}]   ;;  %s9969_s5 = inlined_call_operand.vmem [shape: bf16[9,128,128], index: 5, kind: input, shape index: {}]   ;;  %s9970_s6 = inlined_call_operand.vmem [shape: f32[1,128], index: 6, kind: input, shape index: {}]   ;;  %s9971_s7 = inlined_call_operand.vmem [shape: bf16[256,128], index: 7, kind: input, shape index: {}]   ;;  %s9972_s8 = inlined_call_operand.vmem [shape: f32[1,128], index: 8, kind: input, shape index: {}]   ;;  %s9973_s9 = inlined_call_operand.vmem [shape: f32[2,16,16,128], index: 9, kind: output, shape index: {}]  }
   0x1   :  { %s7474_s11 = smov 0  }
   0x2 LB: > { %s31_s12 = sadd.s32 1, %s7414_s10  ;;  %p6334_p0 = scmp.ge.s32.totalorder %s7418_s11, 1  ;;  %s7418_s11 = sphi %s7474_s11, %s19_s11   ;;  %s7414_s10 = sphi %s7472_s10, %s10108_s10   ;;  %s7410_s30 = sphi %s7470_s30, %s10107_s30  }
   0x3   : > { %p33_p1 = scmp.ge.s32.totalorder %s31_s12, 2  ;;  %p341_p2 = scmp.lt.s32.totalorder %s7418_s11, 3 }
   0x5   : > { %s10110_s12 = smov (%p33_p1, %s31_s12), 0  ;;  %p342_p3 = pnand %p6334_p0, %p341_p2 }
   0x7   : > { %345 = sbr.rel (%p342_p3) target bundleno = 1261 (0x4ed), region = 56 }
   0xc   : > { %v7196_v0 = vld [vmem:[%s9967_s3 + $0x38] sm:$0xff]  ;;  %v7195_v1 = vld [vmem:[%s9967_s3 + $0x30] sm:$0xff]  ;;  %v7194_v2 = vld [vmem:[%s9967_s3 + $0x28] sm:$0xff]  ;;  %p406_p4 = scmp.lt.s32.totalorder %s7410_s30, 1  ;;  %vm821_vm0 = vcmask 1040384   ;;  %vm958_vm5 = vcmask 1043456  }
   0xd   : > { %642 = vmatpush.bf16.msra.mxu0 %v7196_v0  ;;  %775 = vmatpush.bf16.msra.mxu1 %v7196_v0  ;;  %v7193_v3 = vld [vmem:[%s9967_s3 + $0x20] sm:$0xff]  ;;  %v7192_v4 = vld [vmem:[%s9967_s3 + $0x18] sm:$0xff]  ;;  %v7191_v5 = vld [vmem:[%s9967_s3 + $0x10] sm:$0xff]  ;;  %vm822_vm1 = vsmask.f32 256  ;;  %vm2412_vm9 = vcmask 1042432  }
   0xe   : > { %802 = vmatpush.bf16.msra.mxu2 %v7196_v0  ;;  %s10112_s30 = smov (!%p406_p4, %s7410_s30), 1  ;;  %v7190_v6 = vld [vmem:[%s9967_s3 + $0x8] sm:$0xff]  ;;  %v7189_v7 = vld [vmem:[%s9967_s3] sm:$0xff]  ;;  %v7222_v16 = vld [vmem:[%s9969_s5 + $0x38] sm:$0xff]  ;;  %vm878_vm3 = vsmask.f32 7938 }
   0xf   : > { %s7169_s27 = sshll.u32 %s10112_s30, 7  ;;  %s7170_s28 = sshll.u32 %s10112_s30, 3  ;;  %v827_v17 = vld [vmem:[#allocation2 + $0xc] sm:$0x1]  ;;  %vm7542_vm2 = vmand %vm821_vm0, %vm822_vm1  ;;  %v7221_v19 = vld [vmem:[%s9969_s5 + $0x30] sm:$0xff]  ;;  %vm2413_vm11 = vcmask 1046532  }
  0x10   : > { %s7523_s16 = scalar_lea.vmem %s9964_s0, %s7169_s27  ;;  %s424_s19 = scalar_lea.vmem %s9965_s1, %s7170_s28  ;;  %v828_v20 = vsel %vm7542_vm2, 0, %v827_v17  ;;  %v824_v21 = vld [vmem:[#allocation2] sm:$0x1]  ;;  %v7238_v23 = vld [vmem:[%s9969_s5 + $0xb8] sm:$0xff]  ;;  %v7220_v24 = vld [vmem:[%s9969_s5 + $0x28] sm:$0xff] }
  0x11   : > { %643 = vmatpush.bf16.msra.mxu0 %v7195_v1  ;;  %776 = vmatpush.bf16.msra.mxu1 %v7195_v1  ;;  %v7173_v8 = vld [vmem:[%s7523_s16] sm:$0xff]  ;;  %v7174_v10 = vld [vmem:[%s7523_s16 + $0x8] sm:$0xff]  ;;  %v7175_v11 = vld [vmem:[%s7523_s16 + $0x10] sm:$0xff]  ;;  %829 = vst [vmem:[#allocation2 + $0xc] sm:$0x1] %v828_v20  ;;  %v825_v22 = vsel %vm7542_vm2, 0, %v824_v21  ;;  %s433_s18 = scalar_lea.vmem %s9966_s2, %s7170_s28 }
  0x12   : > { %803 = vmatpush.bf16.msra.mxu2 %v7195_v1  ;;  %v7197_v9 = vld [vmem:[%s424_s19] sm:$0xff]  ;;  %v7176_v12 = vld [vmem:[%s7523_s16 + $0x18] sm:$0xff]  ;;  %v7178_v14 = vld [vmem:[%s7523_s16 + $0x28] sm:$0xff]  ;;  %826 = vst [vmem:[#allocation2] sm:$0x1] %v825_v22  ;;  %s7172_s19 = sshll.u32 %s10112_s30, 8 }
  0x13   : > { %v7177_v13 = vld [vmem:[%s7523_s16 + $0x20] sm:$0xff]  ;;  %v7179_v15 = vld [vmem:[%s7523_s16 + $0x30] sm:$0xff]  ;;  %vm7561_vm4 = vmand %vm821_vm0, %vm878_vm3  ;;  %vm936_vm7 = vsmask.f32 4368  ;;  %vm1526_vm10 = vsmask.f32 3328  ;;  %s9855_s22 = scalar_lea.vmem %s9973_s9, %s7172_s19 }
  0x14   : > { %v880_v26 = vld [vmem:[#allocation2 + $0x8] sm:$0x1]  ;;  %v7230_v27 = vld [vmem:[%s9969_s5 + $0x78] sm:$0xff]  ;;  %v7237_v30 = vld [vmem:[%s9969_s5 + $0xb0] sm:$0xff]  ;;  %vm1527_vm12 = vsmask.f32 7440 }
  0x15   : > { %644 = vmatpush.bf16.msra.mxu0 %v7194_v2  ;;  %777 = vmatpush.bf16.msra.mxu1 %v7194_v2  ;;  %v7180_v28 = vld [vmem:[%s7523_s16 + $0x38] sm:$0xff]  ;;  %v881_v29 = vsel %vm7561_vm4, 0, %v880_v26  ;;  %v7219_v31 = vld [vmem:[%s9969_s5 + $0x20] sm:$0xff]  ;;  %v883_v32 = vld [vmem:[#allocation2 + $0x14] sm:$0x1] }
  0x16   : > { %804 = vmatpush.bf16.msra.mxu2 %v7194_v2  ;;  %882 = vst [vmem:[#allocation2 + $0x8] sm:$0x1] %v881_v29  ;;  %2042 = vmatpush.bf16.msra.mxu3 %v7230_v27  ;;  %v884_v33 = vsel %vm7561_vm4, 0, %v883_v32  ;;  %v7229_v34 = vld [vmem:[%s9969_s5 + $0x70] sm:$0xff]  ;;  %v7236_v35 = vld [vmem:[%s9969_s5 + $0xa8] sm:$0xff]  ;;  %v7218_v36 = vld [vmem:[%s9969_s5 + $0x18] sm:$0xff] }
  0x17   : > { %885 = vst [vmem:[#allocation2 + $0x14] sm:$0x1] %v884_v33  ;;  %v7228_v37 = vld [vmem:[%s9969_s5 + $0x68] sm:$0xff]  ;;  %v7235_v38 = vld [vmem:[%s9969_s5 + $0xa0] sm:$0xff]  ;;  %v7217_v39 = vld [vmem:[%s9969_s5 + $0x10] sm:$0xff] }
  0x18   : > { %v7198_v40 = vld [vmem:[%s433_s18] sm:$0xff]  ;;  %v830_v41 = vld [vmem:[#allocation2 + $0x18] sm:$0x1]  ;;  %v7216_v45 = vld [vmem:[%s9969_s5 + $0x8] sm:$0xff] }
  0x19   : > { %645 = vmatpush.bf16.msra.mxu0 %v7193_v3  ;;  %778 = vmatpush.bf16.msra.mxu1 %v7193_v3  ;;  %v7227_v42 = vld [vmem:[%s9969_s5 + $0x60] sm:$0xff]  ;;  %v7234_v43 = vld [vmem:[%s9969_s5 + $0x98] sm:$0xff]  ;;  %v831_v44 = vsel %vm7542_vm2, 0, %v830_v41  ;;  %v7233_v49 = vld [vmem:[%s9969_s5 + $0x90] sm:$0xff] }
  0x1a   : > { %805 = vmatpush.bf16.msra.mxu2 %v7193_v3  ;;  %2043 = vmatpush.bf16.msra.mxu3 %v7229_v34  ;;  %832 = vst [vmem:[#allocation2 + $0x18] sm:$0x1] %v831_v44  ;;  %v7616_v46 = vld [vmem:[%s9968_s4] ss:$0 sm:$0xff]  ;;  %v7226_v48 = vld [vmem:[%s9969_s5 + $0x58] sm:$0xff]  ;;  %v7225_v57 = vld [vmem:[%s9969_s5 + $0x50] sm:$0xff] }
  0x1b   : > { %v886_v47 = vld [vmem:[#allocation2 + $0x20] sm:$0x1]  ;;  %v7232_v58 = vld [vmem:[%s9969_s5 + $0x88] sm:$0xff]  ;;  %vm7652_vm6 = vmand %vm958_vm5, %vm878_vm3 }
  0x1c   : > { %v7181_v50 = vld [vmem:[%s7523_s16 + $0x40] sm:$0xff]  ;;  %v887_v51 = vsel %vm7561_vm4, 0, %v886_v47  ;;  %v7224_v63 = vld [vmem:[%s9969_s5 + $0x48] sm:$0xff]  ;;  %vm7665_vm8 = vmor %vm822_vm1, %vm936_vm7 }
  0x1d   : > { %646 = vmatpush.bf16.msra.mxu0 %v7192_v4  ;;  %779 = vmatpush.bf16.msra.mxu1 %v7192_v4  ;;  %v7215_v52 = vld [vmem:[%s9969_s5] sm:$0xff]  ;;  %888 = vst [vmem:[#allocation2 + $0x20] sm:$0x1] %v887_v51  ;;  %v889_v27 = vld [vmem:[#allocation2 + $0x2c] sm:$0x1]  ;;  %vm7697_vm13 = vmor %vm2412_vm9, %vm2413_vm11 }
  0x1e   : > { %806 = vmatpush.bf16.msra.mxu2 %v7192_v4  ;;  %2044 = vmatpush.bf16.msra.mxu3 %v7228_v37  ;;  %v7231_v0 = vld [vmem:[%s9969_s5 + $0x80] sm:$0xff]  ;;  %v890_v32 = vsel %vm7561_vm4, 0, %v889_v27  ;;  %vm7713_vm14 = vmor %vm1526_vm10, %vm1527_vm12 }
  0x1f   : > { %v833_v4 = vld [vmem:[#allocation2 + $0x24] sm:$0x1]  ;;  %v960_v20 = vld [vmem:[#allocation2] sm:$0xf]  ;;  %891 = vst [vmem:[#allocation2 + $0x2c] sm:$0x1] %v890_v32 }
  0x21   : > { %647 = vmatpush.bf16.msra.mxu0 %v7191_v5  ;;  %780 = vmatpush.bf16.msra.mxu1 %v7191_v5 }
  0x22   : > { %807 = vmatpush.bf16.msra.mxu2 %v7191_v5  ;;  %2045 = vmatpush.bf16.msra.mxu3 %v7227_v42 }
  0x25   : > { %648 = vmatpush.bf16.msra.mxu0 %v7190_v6  ;;  %781 = vmatpush.bf16.msra.mxu1 %v7190_v6 }
  0x26   : > { %808 = vmatpush.bf16.msra.mxu2 %v7190_v6  ;;  %2046 = vmatpush.bf16.msra.mxu3 %v7226_v48 }
  0x29   : > { %649 = vmatpush.bf16.msra.mxu0 %v7189_v7  ;;  %782 = vmatpush.bf16.msra.mxu1 %v7189_v7 }
  0x2a   : > { %809 = vmatpush.bf16.msra.mxu2 %v7189_v7  ;;  %2047 = vmatpush.bf16.msra.mxu3 %v7225_v57  ;;  %v834_v7 = vsel %vm7542_vm2, 0, %v833_v4 }
  0x2b   : > { %835 = vst [vmem:[#allocation2 + $0x24] sm:$0x1] %v834_v7 }
  0x2c   : > { %650 = vmatmul.bf16.vlgmr.msra.gmra.mxu0 %v7173_v8  ;;  %783 = vmatmul.bf16.vlgmr.msra.gmra.mxu1 %v7197_v9 }
  0x2d   : > { %2275 = vmatpush.bf16.msrb.mxu1 %v7222_v16  ;;  %810 = vmatmul.bf16.vlgmr.msra.gmra.mxu2 %v7198_v40 }
  0x2e   : > { %2656 = vmatpush.bf16.msrb.mxu2 %v7238_v23  ;;  %2048 = vmatpush.bf16.msra.mxu3 %v7224_v63 }
  0x31   : > { %2276 = vmatpush.bf16.msrb.mxu1 %v7221_v19  ;;  %v7297_v19 = vld [vmem:[%s9969_s5 + $0x190] sm:$0xff] }
  0x32   : > { %2657 = vmatpush.bf16.msrb.mxu2 %v7237_v30 }
  0x35   : > { %2277 = vmatpush.bf16.msrb.mxu1 %v7220_v24 }
  0x36   : > { %2658 = vmatpush.bf16.msrb.mxu2 %v7236_v35 }
  0x39   : > { %2278 = vmatpush.bf16.msrb.mxu1 %v7219_v31  ;;  %v7182_v31 = vld [vmem:[%s7523_s16 + $0x48] sm:$0xff] }
  0x3a   : > { %2659 = vmatpush.bf16.msrb.mxu2 %v7235_v38  ;;  %v1354_v38 = vld [vmem:[#allocation2 + $0x14] sm:$0x1] }
  0x3c   : > { %655 = vmatmul.bf16.gmra.mxu0 %v7174_v10 }
  0x3d   : > { %2279 = vmatpush.bf16.msrb.mxu1 %v7218_v36 }
  0x3e   : > { %2660 = vmatpush.bf16.msrb.mxu2 %v7234_v43 }
  0x41   : > { %2280 = vmatpush.bf16.msrb.mxu1 %v7217_v39 }
  0x42   : > { %2661 = vmatpush.bf16.msrb.mxu2 %v7233_v49  ;;  %v964_v49 = vld [vmem:[#allocation2 + $0x8] sm:$0x1] }
  0x45   : > { %2281 = vmatpush.bf16.msrb.mxu1 %v7216_v45 }
  0x46   : > { %2662 = vmatpush.bf16.msrb.mxu2 %v7232_v58  ;;  %v1357_v58 = vld [vmem:[#allocation2 + $0x18] sm:$0xf] }
  0x49   : > { %2282 = vmatpush.bf16.msrb.mxu1 %v7215_v52 }
  0x4a   : > { %2663 = vmatpush.bf16.msrb.mxu2 %v7231_v0 }
  0x4c   : > { %660 = vmatmul.bf16.gmra.mxu0 %v7175_v11  ;;  %v1350_v11 = vld [vmem:[#allocation2 + $0xc] sm:$0xf] }
  0x5c   : > { %665 = vmatmul.bf16.gmra.mxu0 %v7176_v12 }
  0x6c   : > { %670 = vmatmul.bf16.gmra.mxu0 %v7177_v13  ;;  %v7223_v13 = vld [vmem:[%s9969_s5 + $0x40] sm:$0xff] }
  0x6d   : > { %2049 = vmatpush.bf16.msra.mxu3 %v7223_v13  ;;  %v7262_v13 = vld [vmem:[%s9969_s5 + $0xf8] sm:$0xff] }
  0x6e   : > { %2970 = vmatpush.bf16.msrb.mxu0 %v7262_v13 }
  0x7c   : > { %675 = vmatmul.bf16.gmra.mxu0 %v7178_v14 }
  0x8c   : > { %680 = vmatmul.bf16.gmra.mxu0 %v7179_v15 }
  0x9c   : > { %685 = vmatmul.bf16.gmra.mxu0 %v7180_v28 }
  0xa9   : > { %v651_v53 = vpop.f32.mrf.mxu0  ;;  %v784_v54 = vpop.f32.mrf.mxu1 }
  0xaa   : > { %v652_v55 = vadd.f32 %v7616_v46, %v651_v53  ;;  %v785_v56 = vadd.f32 %v7616_v46, %v784_v54 }
  0xac   : > { %v731_v59 = vmax.f32 %v652_v55, 0.0  ;;  %v789_v60 = vmax.f32 %v785_v56, 0.0  ;;  %690 = vmatmul.bf16.gmra.mxu0 %v7181_v50 }
  0xae   : > { %v997_v61 = vpack.c.bf16 %v731_v59, %v731_v59  ;;  %v792_v62 = vmul.f32 0.0, %v789_v60 }
  0xb0   : > { %v1030_v1 = vshrl.u32 %v997_v61, 16  ;;  %v1033_v2 = vshll.u32 %v997_v61, 16  ;;  %v934_v3 = vpack.c.bf16 %v792_v62, %v792_v62  ;;  %v7270_v61 = vld [vmem:[%s9969_s5 + $0x138] sm:$0xff] }
  0xb1   : > { %v653_v5 = vpop.f32.mrf.mxu0  ;;  %v786_v6 = vpop.f32.mrf.mxu1  ;;  %3652 = vmatpush.bf16.msrb.mxu3 %v7270_v61 }
  0xb2   : > { %v1032_v8 = vrot.slane %v1030_v1, 7  ;;  %v939_v9 = vshrl.u32 %v934_v3, 16  ;;  %v654_v10 = vadd.f32 %v7616_v46, %v653_v5  ;;  %v787_v12 = vadd.f32 %v7616_v46, %v786_v6 }
  0xb3   : > { %v942_v16 = vshll.u32 %v934_v3, 16  ;;  %v836_v3 = vld [vmem:[#allocation2 + $0x30] sm:$0x1] }
  0xb4   : > { %v1035_v14 = vor.u32 %v1033_v2, %v1032_v8  ;;  %v941_v15 = vrot.slane %v939_v9, 7  ;;  %v732_v17 = vmax.f32 %v654_v10, 0.0  ;;  %v790_v21 = vmax.f32 %v787_v12, 0.0 }
  0xb5   : > { %v1036_v35 = vrot.slane %v1032_v8, 4  ;;  %v837_v7 = vsel %vm7542_vm2, 0, %v836_v3 }
  0xb6   : > { %v1351_v22 = vsel %vm7652_vm6, %v1035_v14, %v1350_v11  ;;  %v944_v23 = vor.u32 %v942_v16, %v941_v15  ;;  %v998_v24 = vpack.c.bf16 %v732_v17, %v732_v17  ;;  %v793_v26 = vmul.f32 0.0, %v790_v21  ;;  %838 = vst [vmem:[#allocation2 + $0x30] sm:$0x1] %v837_v7  ;;  %v892_v14 = vld [vmem:[#allocation2 + $0x38] sm:$0x1]  ;;  %v7183_v17 = vld [vmem:[%s7523_s16 + $0x50] sm:$0xff] }
  0xb7   : > { %1352 = vst [vmem:[#allocation2 + $0xc] sm:$0xf] %v1351_v22  ;;  %v945_v51 = vrot.slane %v941_v15, 4  ;;  %v893_v21 = vsel %vm7561_vm4, 0, %v892_v14 }
  0xb8   : > { %v961_v28 = vsel %vm7652_vm6, %v944_v23, %v960_v20  ;;  %v1038_v29 = vshrl.u32 %v998_v24, 16  ;;  %v1041_v30 = vshll.u32 %v998_v24, 16  ;;  %v935_v33 = vpack.c.bf16 %v793_v26, %v793_v26  ;;  %894 = vst [vmem:[#allocation2 + $0x38] sm:$0x1] %v893_v21 }
  0xb9   : > { %962 = vst [vmem:[#allocation2] sm:$0xf] %v961_v28  ;;  %v656_v34 = vpop.f32.mrf.mxu0 }
  0xba   : > { %v1040_v36 = vrot.slane %v1038_v29, 7  ;;  %v657_v37 = vadd.f32 %v7616_v46, %v656_v34  ;;  %v947_v39 = vshrl.u32 %v935_v33, 16  ;;  %v950_v45 = vshll.u32 %v935_v33, 16  ;;  %v1361_v33 = vld [vmem:[#allocation2 + $0x20] sm:$0x1] }
  0xbc   : > { %v1043_v40 = vor.u32 %v1041_v30, %v1040_v36  ;;  %v1045_v41 = vrot.slane %v1040_v36, 4  ;;  %v733_v42 = vmax.f32 %v657_v37, 0.0  ;;  %695 = vmatmul.bf16.gmra.mxu0 %v7182_v31  ;;  %v949_v44 = vrot.slane %v947_v39, 7 }
  0xbd   : > { %v9994_v30 = vmov 0 }
  0xbe   : > { %v1044_v47 = vsel %vm7665_vm8, %v1036_v35, %v1043_v40  ;;  %v1355_v48 = vsel %vm7542_vm2, %v1045_v41, %v1354_v38  ;;  %v999_v50 = vpack.c.bf16 %v733_v42, %v733_v42  ;;  %v952_v52 = vor.u32 %v950_v45, %v949_v44  ;;  %v7681_v1 = vld [vmem:[#allocation2 + $0xc] sm:$0xf] }
  0xbf   : > { %1353 = vst [vmem:[#allocation2 + $0x10] sm:$0xf] %v1044_v47  ;;  %v954_v53 = vrot.slane %v949_v44, 4  ;;  %v1554_v11 = vshrl.u32 %v7681_v1, 16  ;;  %v9995_v30 = vsel %vm7697_vm13, 4294967295, %v9994_v30 }
  0xc0   : > { %1356 = vst [vmem:[#allocation2 + $0x14] sm:$0x1] %v1355_v48  ;;  %v1047_v54 = vshrl.u32 %v999_v50, 16  ;;  %v1050_v55 = vshll.u32 %v999_v50, 16  ;;  %v953_v56 = vsel %vm7665_vm8, %v945_v51, %v952_v52  ;;  %v1462_v60 = vld [vmem:[#allocation2] sm:$0xf] }
  0xc1   : > { %v965_v57 = vsel %vm7542_vm2, %v954_v53, %v964_v49  ;;  %v658_v59 = vpop.f32.mrf.mxu0  ;;  %963 = vst [vmem:[#allocation2 + $0x4] sm:$0xf] %v953_v56  ;;  %v1530_v0 = vshrl.u32 %v1462_v60, 16  ;;  %v1533_v2 = vshll.u32 %v1462_v60, 16  ;;  %v2364_v6 = vld [vmem:[#allocation2] sm:$0xe] }
  0xc2   : > { %v1049_v62 = vrot.slane %v1047_v54, 7  ;;  %v659_v63 = vadd.f32 %v7616_v46, %v658_v59  ;;  %966 = vst [vmem:[#allocation2 + $0x8] sm:$0x1] %v965_v57  ;;  %v6591_v20 = vrot.slane %v2364_v6, 9  ;;  %v7701_v37 = vrot.slane %v1554_v11, 4 }
  0xc3   : > { %v1532_v10 = vrot.slane %v1530_v0, 4  ;;  %v1535_v12 = vrot.slane %v1533_v2, 5  ;;  %9996 = vst [vmem:[#allocation3_spill] sm:$0xff] %v9995_v30  ;;  %v1557_v53 = vshll.u32 %v7681_v1, 16  ;;  %v2365_v7 = vld [vmem:[#allocation2 + $0xc] sm:$0xe] }
  0xc4   : > { %v1052_v4 = vor.u32 %v1050_v55, %v1049_v62  ;;  %v734_v5 = vmax.f32 %v659_v63, 0.0  ;;  %v1053_v22 = vrot.slane %v1049_v62, 4 }
  0xc5   : > { %v1536_v35 = vor.u32 %v1535_v12, %v1532_v10 }
  0xc6   : > { %v1358_v8 = vsel %vm7652_vm6, %v1052_v4, %v1357_v58  ;;  %v1000_v9 = vpack.c.bf16 %v734_v5, %v734_v5  ;;  %v7703_v42 = vld [vmem:[#allocation2 + $0x10] sm:$0xf] }
  0xc7   : > { %1359 = vst [vmem:[#allocation2 + $0x18] sm:$0xf] %v1358_v8  ;;  %v1537_v55 = vrot.slane %v1536_v35, 4  ;;  %v1563_v57 = vshll.u32 %v7703_v42, 16  ;;  %v2424_v1 = vrot.slane %v7703_v42, 5  ;;  %v1559_v8 = vrot.slane %v1557_v53, 5 }
  0xc8   : > { %v1055_v15 = vshrl.u32 %v1000_v9, 16  ;;  %v1058_v16 = vshll.u32 %v1000_v9, 16  ;;  %v7199_v24 = vld [vmem:[#allocation2] sm:$0xff]  ;;  %v1511_v6 = vld [vmem:[#allocation2 + $0x14] sm:$0x1]  ;;  %v1567_v12 = vshrl.u32 %v7703_v42, 16 }
  0xc9   : > { %v661_v23 = vpop.f32.mrf.mxu0  ;;  %v1463_v26 = vld [vmem:[#allocation2 + $0x4] sm:$0xf]  ;;  %v1510_v29 = vld [vmem:[#allocation2 + $0x8] sm:$0x1]  ;;  %2283 = vmatmul.bf16.vlgmr.msrb.gmra.mxu1 %v7199_v24  ;;  %v7727_v11 = vrot.slane %v1563_v57, 5  ;;  %v2426_v21 = vrot.slane %v2424_v1, 4 }
  0xca   : > { %v1057_v27 = vrot.slane %v1055_v15, 7  ;;  %v662_v28 = vadd.f32 %v7616_v46, %v661_v23  ;;  %v2417_v31 = vrot.slane %v1463_v26, 5  ;;  %v1539_v32 = vshll.u32 %v1463_v26, 16  ;;  %v1364_v9 = vld [vmem:[#allocation2 + $0x24] sm:$0xf] }
  0xcb   : > { %v2420_v34 = vrot.slane %v1510_v29, 5  ;;  %v1543_v36 = vshrl.u32 %v1463_v26, 16  ;;  %v1549_v41 = vshll.u32 %v1510_v29, 16  ;;  %v1569_v23 = vrot.slane %v1567_v12, 4 }
  0xcc   : > { %v1060_v38 = vor.u32 %v1058_v16, %v1057_v27  ;;  %v1062_v39 = vrot.slane %v1057_v27, 4  ;;  %v735_v40 = vmax.f32 %v662_v28, 0.0  ;;  %700 = vmatmul.bf16.gmra.mxu0 %v7183_v17  ;;  %v2418_v44 = vsel %vm7697_vm13, %v6591_v20, %v2417_v31  ;;  %v839_v17 = vld [vmem:[#allocation2 + $0x3c] sm:$0x1] }
  0xcd   : > { %v2419_v45 = vrot.slane %v2417_v31, 4  ;;  %v1541_v47 = vrot.slane %v1539_v32, 5  ;;  %v1545_v48 = vrot.slane %v1543_v36, 4  ;;  %v2544_v60 = vunpack.c.l.b16 %v2418_v44  ;;  %v7184_v36 = vld [vmem:[%s7523_s16 + $0x58] sm:$0xff] }
  0xce   : > { %v1061_v49 = vsel %vm7665_vm8, %v1053_v22, %v1060_v38  ;;  %v1362_v50 = vsel %vm7542_vm2, %v1062_v39, %v1361_v33  ;;  %v1001_v51 = vpack.c.bf16 %v735_v40, %v735_v40  ;;  %v1551_v2 = vrot.slane %v1549_v41, 5  ;;  %v895_v33 = vld [vmem:[#allocation2 + $0x44] sm:$0x1]  ;;  %v7200_v40 = vld [vmem:[#allocation2 + $0xc] sm:$0xff] }
  0xcf   : > { %1360 = vst [vmem:[#allocation2 + $0x1c] sm:$0xf] %v1061_v49  ;;  %v2421_v54 = vsel %vm7697_vm13, %v2419_v45, %v2420_v34  ;;  %v1546_v56 = vor.u32 %v1545_v48, %v1541_v47  ;;  %v1542_v63 = vsel %vm7713_vm14, %v1537_v55, %v1541_v47  ;;  %v6592_v20 = vrot.slane %v2365_v7, 9  ;;  %v1466_v48 = vld [vmem:[#allocation2 + $0x18] sm:$0xf] }
  0xd0   : > { %1363 = vst [vmem:[#allocation2 + $0x20] sm:$0x1] %v1362_v50  ;;  %v1064_v58 = vshrl.u32 %v1001_v51, 16  ;;  %v1067_v59 = vshll.u32 %v1001_v51, 16  ;;  %v2545_v61 = vunpack.c.l.b16 %v2421_v54  ;;  %v1930_v15 = vunpack.c.l.b16 %v1542_v63  ;;  %v1368_v49 = vld [vmem:[#allocation2 + $0x2c] sm:$0x1] }
  0xd1   : > { %v663_v62 = vpop.f32.mrf.mxu0  ;;  %v1547_v0 = vrot.slane %v1546_v56, 4  ;;  %v2427_v22 = vrot.slane %v1511_v6, 5  ;;  %v1560_v28 = vor.u32 %v1559_v8, %v7701_v37  ;;  %v1570_v29 = vor.u32 %v1569_v23, %v7727_v11 }
  0xd2   : > { %v1066_v3 = vrot.slane %v1064_v58, 7  ;;  %v664_v4 = vadd.f32 %v7616_v46, %v663_v62  ;;  %v2576_v5 = vpack.c.b16 %v2545_v61, %v2544_v60  ;;  %v1573_v31 = vshll.u32 %v1511_v6, 16 }
  0xd3   : > { %v1552_v10 = vsel %vm7713_vm14, %v1547_v0, %v1551_v2  ;;  %v840_v32 = vsel %vm7542_vm2, 0, %v839_v17  ;;  %v896_v38 = vsel %vm7561_vm4, 0, %v895_v33  ;;  %v2425_v37 = vsel %vm7697_vm13, %v6592_v20, %v2424_v1  ;;  %v2366_v2 = vld [vmem:[#allocation2 + $0x18] sm:$0xe]  ;;  %v1371_v17 = vld [vmem:[#allocation2 + $0x30] sm:$0xf] }
  0xd4   : > { %v1069_v13 = vor.u32 %v1067_v59, %v1066_v3  ;;  %v736_v14 = vmax.f32 %v664_v4, 0.0  ;;  %2664 = vmatmul.bf16.vlgmr.msrb.gmra.mxu2 %v2576_v5  ;;  %v1931_v16 = vunpack.c.l.b16 %v1552_v10  ;;  %841 = vst [vmem:[#allocation2 + $0x3c] sm:$0x1] %v840_v32  ;;  %v2428_v41 = vsel %vm7697_vm13, %v2426_v21, %v2427_v22 }
  0xd5   : > { %897 = vst [vmem:[#allocation2 + $0x44] sm:$0x1] %v896_v38  ;;  %v1070_v42 = vrot.slane %v1066_v3, 4  ;;  %v1561_v47 = vrot.slane %v1560_v28, 4  ;;  %v1571_v50 = vrot.slane %v1570_v29, 4  ;;  %v1575_v51 = vrot.slane %v1573_v31, 5 }
  0xd6   : > { %v1365_v24 = vsel %vm7652_vm6, %v1069_v13, %v1364_v9  ;;  %v1002_v26 = vpack.c.bf16 %v736_v14, %v736_v14  ;;  %v1962_v27 = vpack.c.b16 %v1931_v16, %v1930_v15  ;;  %v1467_v56 = vld [vmem:[#allocation2 + $0x1c] sm:$0xf]  ;;  %v2546_v57 = vunpack.c.l.b16 %v2425_v37  ;;  %v842_v15 = vld [vmem:[#allocation2 + $0x48] sm:$0x1]  ;;  %v898_v37 = vld [vmem:[#allocation2 + $0x50] sm:$0x1] }
  0xd7   : > { %1366 = vst [vmem:[#allocation2 + $0x24] sm:$0xf] %v1365_v24  ;;  %v2547_v58 = vunpack.c.l.b16 %v2428_v41  ;;  %v1578_v59 = vshrl.u32 %v1466_v48, 16  ;;  %v1581_v60 = vshll.u32 %v1466_v48, 16  ;;  %v1566_v0 = vsel %vm7713_vm14, %v1561_v47, %v7727_v11  ;;  %v1512_v8 = vld [vmem:[#allocation2 + $0x20] sm:$0x1] }
  0xd8   : > { %v1072_v34 = vshrl.u32 %v1002_v26, 16  ;;  %v1075_v35 = vshll.u32 %v1002_v26, 16  ;;  %2050 = vmatmul.bf16.vlgmr.msra.gmra.mxu3 %v1962_v27  ;;  %v1576_v1 = vsel %vm7713_vm14, %v1571_v50, %v1575_v51  ;;  %v2431_v3 = vrot.slane %v1467_v56, 5  ;;  %v7269_v11 = vld [vmem:[%s9969_s5 + $0x130] sm:$0xff] }
  0xd9   : > { %v666_v39 = vpop.f32.mrf.mxu0  ;;  %2288 = vmatmul.bf16.gmra.mxu1 %v7200_v40  ;;  %v1587_v4 = vshll.u32 %v1467_v56, 16  ;;  %v1591_v5 = vshrl.u32 %v1467_v56, 16  ;;  %v2577_v10 = vpack.c.b16 %v2547_v58, %v2546_v57  ;;  %v1932_v12 = vunpack.c.l.b16 %v1566_v0  ;;  %3653 = vmatpush.bf16.msrb.mxu3 %v7269_v11  ;;  %v7261_v40 = vld [vmem:[%s9969_s5 + $0xf0] sm:$0xff]  ;;  %v1375_v57 = vld [vmem:[#allocation2 + $0x38] sm:$0x1] }
  0xda   : > { %v1074_v44 = vrot.slane %v1072_v34, 7  ;;  %v667_v45 = vadd.f32 %v7616_v46, %v666_v39  ;;  %v1580_v13 = vrot.slane %v1578_v59, 4  ;;  %v1583_v14 = vrot.slane %v1581_v60, 5  ;;  %2971 = vmatpush.bf16.msrb.mxu0 %v7261_v40 }
  0xdb   : > { %v1933_v21 = vunpack.c.l.b16 %v1576_v1  ;;  %v843_v22 = vsel %vm7542_vm2, 0, %v842_v15  ;;  %v6593_v23 = vrot.slane %v2366_v2, 9  ;;  %v1589_v24 = vrot.slane %v1587_v4, 5 }
  0xdc   : > { %v1077_v53 = vor.u32 %v1075_v35, %v1074_v44  ;;  %v1079_v54 = vrot.slane %v1074_v44, 4  ;;  %v737_v55 = vmax.f32 %v667_v45, 0.0  ;;  %705 = vmatmul.bf16.gmra.mxu0 %v7184_v36  ;;  %v1593_v26 = vrot.slane %v1591_v5, 4  ;;  %844 = vst [vmem:[#allocation2 + $0x48] sm:$0x1] %v843_v22  ;;  %v7185_v44 = vld [vmem:[%s7523_s16 + $0x60] sm:$0xff] }
  0xdd   : > { %v2433_v29 = vrot.slane %v2431_v3, 4  ;;  %v2434_v31 = vrot.slane %v1512_v8, 5  ;;  %v1584_v32 = vor.u32 %v1583_v14, %v1580_v13  ;;  %v1963_v35 = vpack.c.b16 %v1933_v21, %v1932_v12 }
  0xde   : > { %v1078_v61 = vsel %vm7665_vm8, %v1070_v42, %v1077_v53  ;;  %v1369_v62 = vsel %vm7542_vm2, %v1079_v54, %v1368_v49  ;;  %v1003_v63 = vpack.c.bf16 %v737_v55, %v737_v55  ;;  %v2432_v36 = vsel %vm7697_vm13, %v6593_v23, %v2431_v3  ;;  %v7201_v49 = vld [vmem:[#allocation2 + $0x18] sm:$0xff]  ;;  %v1468_v51 = vld [vmem:[#allocation2 + $0x24] sm:$0xf]  ;;  %v845_v23 = vld [vmem:[#allocation2 + $0x54] sm:$0x1] }
  0xdf   : > { %1367 = vst [vmem:[#allocation2 + $0x28] sm:$0xf] %v1078_v61  ;;  %v1594_v38 = vor.u32 %v1593_v26, %v1589_v24  ;;  %v1597_v39 = vshll.u32 %v1512_v8, 16  ;;  %v2435_v45 = vsel %vm7697_vm13, %v2433_v29, %v2434_v31  ;;  %v899_v47 = vsel %vm7561_vm4, 0, %v898_v37  ;;  %v2367_v12 = vld [vmem:[#allocation2 + $0x24] sm:$0xe] }
  0xe0   : > { %1370 = vst [vmem:[#allocation2 + $0x2c] sm:$0x1] %v1369_v62  ;;  %v1081_v6 = vshrl.u32 %v1003_v63, 16  ;;  %v1084_v7 = vshll.u32 %v1003_v63, 16  ;;  %v1585_v50 = vrot.slane %v1584_v32, 4  ;;  %v2548_v58 = vunpack.c.l.b16 %v2432_v36 }
  0xe1   : > { %v668_v9 = vpop.f32.mrf.mxu0  ;;  %900 = vst [vmem:[#allocation2 + $0x50] sm:$0x1] %v899_v47  ;;  %v2549_v59 = vunpack.c.l.b16 %v2435_v45  ;;  %v1595_v60 = vrot.slane %v1594_v38, 4  ;;  %v1599_v61 = vrot.slane %v1597_v39, 5  ;;  %v1602_v2 = vshrl.u32 %v1468_v51, 16 }
  0xe2   : > { %v1083_v16 = vrot.slane %v1081_v6, 7  ;;  %v669_v20 = vadd.f32 %v7616_v46, %v668_v9  ;;  %v1590_v1 = vsel %vm7713_vm14, %v1585_v50, %v1589_v24  ;;  %v1605_v3 = vshll.u32 %v1468_v51, 16  ;;  %v1378_v31 = vld [vmem:[#allocation2 + $0x3c] sm:$0xf] }
  0xe3   : > { %v2578_v9 = vpack.c.b16 %v2549_v59, %v2548_v58  ;;  %v1934_v11 = vunpack.c.l.b16 %v1590_v1  ;;  %v1604_v15 = vrot.slane %v1602_v2, 4  ;;  %v846_v29 = vsel %vm7542_vm2, 0, %v845_v23 }
  0xe4   : > { %v1086_v27 = vor.u32 %v1084_v7, %v1083_v16  ;;  %v738_v28 = vmax.f32 %v669_v20, 0.0  ;;  %2669 = vmatmul.bf16.gmra.mxu2 %v2577_v10  ;;  %v1087_v53 = vrot.slane %v1083_v16, 4  ;;  %v1600_v10 = vsel %vm7713_vm14, %v1595_v60, %v1599_v61  ;;  %847 = vst [vmem:[#allocation2 + $0x54] sm:$0x1] %v846_v29 }
  0xe5   : > { %v1607_v20 = vrot.slane %v1605_v3, 5 }
  0xe6   : > { %v1372_v33 = vsel %vm7652_vm6, %v1086_v27, %v1371_v17  ;;  %v1004_v34 = vpack.c.bf16 %v738_v28, %v738_v28  ;;  %v7772_v56 = vld [vmem:[#allocation2 + $0x28] sm:$0xf]  ;;  %v1935_v27 = vunpack.c.l.b16 %v1600_v10 }
  0xe7   : > { %1373 = vst [vmem:[#allocation2 + $0x30] sm:$0xf] %v1372_v33  ;;  %v1611_v4 = vshll.u32 %v7772_v56, 16  ;;  %v1615_v5 = vshrl.u32 %v7772_v56, 16  ;;  %v2438_v17 = vrot.slane %v7772_v56, 5  ;;  %v1608_v36 = vor.u32 %v1607_v20, %v1604_v15  ;;  %v7259_v20 = vld [vmem:[%s9969_s5 + $0xe0] sm:$0xff] }
  0xe8   : > { %v1089_v41 = vshrl.u32 %v1004_v34, 16  ;;  %v1092_v42 = vshll.u32 %v1004_v34, 16  ;;  %2055 = vmatmul.bf16.gmra.mxu3 %v1963_v35  ;;  %v1513_v28 = vld [vmem:[#allocation2 + $0x2c] sm:$0x1]  ;;  %v6594_v34 = vrot.slane %v2367_v12, 9 }
  0xe9   : > { %v671_v48 = vpop.f32.mrf.mxu0  ;;  %2293 = vmatmul.bf16.gmra.mxu1 %v7201_v49  ;;  %v7785_v21 = vrot.slane %v1611_v4, 5  ;;  %v1617_v22 = vrot.slane %v1615_v5, 4  ;;  %v2440_v35 = vrot.slane %v2438_v17, 4  ;;  %v1621_v39 = vshll.u32 %v1513_v28, 16 }
  0xea   : > { %v1091_v54 = vrot.slane %v1089_v41, 7  ;;  %v672_v55 = vadd.f32 %v7616_v46, %v671_v48  ;;  %v1964_v41 = vpack.c.b16 %v1935_v27, %v1934_v11  ;;  %v7186_v48 = vld [vmem:[%s7523_s16 + $0x68] sm:$0xff] }
  0xeb   : > { %v1618_v38 = vor.u32 %v1617_v22, %v7785_v21 }
  0xec   : > { %v1094_v62 = vor.u32 %v1092_v42, %v1091_v54  ;;  %v1096_v63 = vrot.slane %v1091_v54, 4  ;;  %v739_v0 = vmax.f32 %v672_v55, 0.0  ;;  %710 = vmatmul.bf16.gmra.mxu0 %v7185_v44  ;;  %v2441_v42 = vrot.slane %v1513_v28, 5  ;;  %v901_v44 = vld [vmem:[#allocation2 + $0x5c] sm:$0x1] }
  0xed   : > { %v902_v49 = vsel %vm7561_vm4, 0, %v901_v44  ;;  %v2439_v54 = vsel %vm7697_vm13, %v6594_v34, %v2438_v17  ;;  %v1609_v55 = vrot.slane %v1608_v36, 4  ;;  %v1619_v56 = vrot.slane %v1618_v38, 4 }
  0xee   : > { %v1095_v6 = vsel %vm7665_vm8, %v1087_v53, %v1094_v62  ;;  %v1376_v7 = vsel %vm7542_vm2, %v1096_v63, %v1375_v57  ;;  %v1005_v8 = vpack.c.bf16 %v739_v0, %v739_v0  ;;  %v1470_v50 = vld [vmem:[#allocation2 + $0x30] sm:$0xf]  ;;  %v7202_v53 = vld [vmem:[#allocation2 + $0x24] sm:$0xff]  ;;  %v1623_v57 = vrot.slane %v1621_v39, 5  ;;  %903 = vst [vmem:[#allocation2 + $0x5c] sm:$0x1] %v902_v49 }
  0xef   : > { %1374 = vst [vmem:[#allocation2 + $0x34] sm:$0xf] %v1095_v6  ;;  %v2442_v61 = vsel %vm7697_vm13, %v2440_v35, %v2441_v42  ;;  %v1382_v63 = vld [vmem:[#allocation2 + $0x44] sm:$0x1]  ;;  %v7260_v0 = vld [vmem:[%s9969_s5 + $0xe8] sm:$0xff]  ;;  %v1626_v2 = vshrl.u32 %v1470_v50, 16  ;;  %v2550_v6 = vunpack.c.l.b16 %v2439_v54 }
  0xf0   : > { %1377 = vst [vmem:[#allocation2 + $0x38] sm:$0x1] %v1376_v7  ;;  %v1098_v13 = vshrl.u32 %v1005_v8, 16  ;;  %v1101_v14 = vshll.u32 %v1005_v8, 16  ;;  %v1629_v1 = vshll.u32 %v1470_v50, 16  ;;  %v2551_v7 = vunpack.c.l.b16 %v2442_v61  ;;  %2972 = vmatpush.bf16.msrb.mxu0 %v7260_v0 }
  0xf1   : > { %v673_v16 = vpop.f32.mrf.mxu0  ;;  %v1614_v8 = vsel %vm7713_vm14, %v1609_v55, %v7785_v21  ;;  %v2368_v11 = vld [vmem:[#allocation2 + $0x30] sm:$0xe]  ;;  %v1385_v39 = vld [vmem:[#allocation2 + $0x48] sm:$0xf] }
  0xf2   : > { %v1100_v24 = vrot.slane %v1098_v13, 7  ;;  %v674_v26 = vadd.f32 %v7616_v46, %v673_v16  ;;  %v1628_v16 = vrot.slane %v1626_v2, 4  ;;  %v1631_v17 = vrot.slane %v1629_v1, 5 }
  0xf3   : > { %v1936_v27 = vunpack.c.l.b16 %v1614_v8  ;;  %v1389_v8 = vld [vmem:[#allocation2 + $0x50] sm:$0x1] }
  0xf4   : > { %v1103_v32 = vor.u32 %v1101_v14, %v1100_v24  ;;  %v740_v33 = vmax.f32 %v674_v26, 0.0  ;;  %2674 = vmatmul.bf16.gmra.mxu2 %v2578_v9  ;;  %v1104_v58 = vrot.slane %v1100_v24, 4  ;;  %v1624_v9 = vsel %vm7713_vm14, %v1619_v56, %v1623_v57  ;;  %2973 = vmatpush.bf16.msrb.mxu0 %v7259_v20  ;;  %v904_v56 = vld [vmem:[#allocation2 + $0x68] sm:$0x1]  ;;  %v7257_v57 = vld [vmem:[%s9969_s5 + $0xd0] sm:$0xff] }
  0xf5   : > { %v2579_v26 = vpack.c.b16 %v2551_v7, %v2550_v6  ;;  %v1937_v28 = vunpack.c.l.b16 %v1624_v9 }
  0xf6   : > { %v1379_v40 = vsel %vm7652_vm6, %v1103_v32, %v1378_v31  ;;  %v1006_v37 = vpack.c.bf16 %v740_v33, %v740_v33  ;;  %v1471_v62 = vld [vmem:[#allocation2 + $0x34] sm:$0xf]  ;;  %v7268_v32 = vld [vmem:[%s9969_s5 + $0x128] sm:$0xff]  ;;  %v848_v33 = vld [vmem:[#allocation2 + $0x60] sm:$0x1] }
  0xf7   : > { %1380 = vst [vmem:[#allocation2 + $0x3c] sm:$0xf] %v1379_v40  ;;  %v1635_v10 = vshll.u32 %v1471_v62, 16  ;;  %v1639_v15 = vshrl.u32 %v1471_v62, 16  ;;  %v2445_v23 = vrot.slane %v1471_v62, 5  ;;  %v849_v38 = vsel %vm7542_vm2, 0, %v848_v33  ;;  %3654 = vmatpush.bf16.msrb.mxu3 %v7268_v32 }
  0xf8   : > { %v1106_v45 = vshrl.u32 %v1006_v37, 16  ;;  %v1109_v47 = vshll.u32 %v1006_v37, 16  ;;  %2060 = vmatmul.bf16.gmra.mxu3 %v1964_v41  ;;  %v1514_v29 = vld [vmem:[#allocation2 + $0x38] sm:$0x1]  ;;  %v6595_v40 = vrot.slane %v2368_v11, 9  ;;  %v1632_v37 = vor.u32 %v1631_v17, %v1628_v16  ;;  %v7203_v0 = vld [vmem:[#allocation2 + $0x30] sm:$0xff] }
  0xf9   : > { %v676_v51 = vpop.f32.mrf.mxu0  ;;  %2298 = vmatmul.bf16.gmra.mxu1 %v7202_v53  ;;  %v7816_v31 = vrot.slane %v1635_v10, 5  ;;  %v1641_v36 = vrot.slane %v1639_v15, 4  ;;  %850 = vst [vmem:[#allocation2 + $0x60] sm:$0x1] %v849_v38  ;;  %v7258_v41 = vld [vmem:[%s9969_s5 + $0xd8] sm:$0xff]  ;;  %v905_v62 = vsel %vm7561_vm4, 0, %v904_v56 }
  0xfa   : > { %v1108_v59 = vrot.slane %v1106_v45, 7  ;;  %v677_v60 = vadd.f32 %v7616_v46, %v676_v51  ;;  %v2447_v45 = vrot.slane %v2445_v23, 4  ;;  %2974 = vmatpush.bf16.msrb.mxu0 %v7258_v41  ;;  %v1965_v51 = vpack.c.b16 %v1937_v28, %v1936_v27  ;;  %906 = vst [vmem:[#allocation2 + $0x68] sm:$0x1] %v905_v62 }
  0xfb   : > { %v1642_v53 = vor.u32 %v1641_v36, %v7816_v31  ;;  %v2446_v54 = vsel %vm7697_vm13, %v6595_v40, %v2445_v23  ;;  %v1633_v55 = vrot.slane %v1632_v37, 4  ;;  %v851_v37 = vld [vmem:[#allocation2 + $0x6c] sm:$0x1] }
  0xfc   : > { %v1111_v3 = vor.u32 %v1109_v47, %v1108_v59  ;;  %v1113_v4 = vrot.slane %v1108_v59, 4  ;;  %v741_v5 = vmax.f32 %v677_v60, 0.0  ;;  %715 = vmatmul.bf16.gmra.mxu0 %v7186_v48  ;;  %v2448_v47 = vrot.slane %v1514_v29, 5  ;;  %v7187_v60 = vld [vmem:[%s7523_s16 + $0x70] sm:$0xff] }
  0xfd   : > { %v1645_v48 = vshll.u32 %v1514_v29, 16  ;;  %v1643_v6 = vrot.slane %v1642_v53, 4  ;;  %v2552_v9 = vunpack.c.l.b16 %v2446_v54  ;;  %v7255_v29 = vld [vmem:[%s9969_s5 + $0xc0] sm:$0xff] }
  0xfe   : > { %v1112_v12 = vsel %vm7665_vm8, %v1104_v58, %v1111_v3  ;;  %v1383_v13 = vsel %vm7542_vm2, %v1113_v4, %v1382_v63  ;;  %v1007_v14 = vpack.c.bf16 %v741_v5, %v741_v5  ;;  %v2449_v61 = vsel %vm7697_vm13, %v2447_v45, %v2448_v47  ;;  %2975 = vmatpush.bf16.msrb.mxu0 %v7257_v57  ;;  %v1472_v1 = vld [vmem:[#allocation2 + $0x3c] sm:$0xf] }
  0xff   : > { %1381 = vst [vmem:[#allocation2 + $0x40] sm:$0xf] %v1112_v12  ;;  %v1647_v2 = vrot.slane %v1645_v48, 5  ;;  %v2553_v10 = vunpack.c.l.b16 %v2449_v61  ;;  %v1638_v12 = vsel %vm7713_vm14, %v1633_v55, %v7816_v31  ;;  %v1650_v16 = vshrl.u32 %v1472_v1, 16  ;;  %v2369_v28 = vld [vmem:[#allocation2 + $0x3c] sm:$0xe] }
 0x100   : > { %1384 = vst [vmem:[#allocation2 + $0x44] sm:$0x1] %v1383_v13  ;;  %v1115_v21 = vshrl.u32 %v1007_v14, 16  ;;  %v1118_v22 = vshll.u32 %v1007_v14, 16  ;;  %v7256_v13 = vld [vmem:[%s9969_s5 + $0xc8] sm:$0xff]  ;;  %v1653_v17 = vshll.u32 %v1472_v1, 16  ;;  %v1938_v27 = vunpack.c.l.b16 %v1638_v12 }
 0x101   : > { %v678_v24 = vpop.f32.mrf.mxu0  ;;  %v2580_v33 = vpack.c.b16 %v2553_v10, %v2552_v9  ;;  %v852_v47 = vsel %vm7542_vm2, 0, %v851_v37  ;;  %v1392_v48 = vld [vmem:[#allocation2 + $0x54] sm:$0xf]  ;;  %v7877_v10 = vld [vmem:[%s9968_s4] ss:$0 sm:$0xff] }
 0x102   : > { %v1117_v34 = vrot.slane %v1115_v21, 7  ;;  %v679_v35 = vadd.f32 %v7616_v46, %v678_v24  ;;  %2976 = vmatpush.bf16.msrb.mxu0 %v7256_v13  ;;  %v1655_v38 = vrot.slane %v1653_v17, 5  ;;  %853 = vst [vmem:[#allocation2 + $0x6c] sm:$0x1] %v852_v47  ;;  %v7267_v47 = vld [vmem:[%s9969_s5 + $0x120] sm:$0xff] }
 0x103   : > { %3655 = vmatpush.bf16.msrb.mxu3 %v7267_v47 }
 0x104   : > { %v1120_v42 = vor.u32 %v1118_v22, %v1117_v34  ;;  %v742_v44 = vmax.f32 %v679_v35, 0.0  ;;  %2679 = vmatmul.bf16.gmra.mxu2 %v2579_v26  ;;  %v1121_v3 = vrot.slane %v1117_v34, 4  ;;  %v1648_v26 = vsel %vm7713_vm14, %v1643_v6, %v1647_v2 }
 0x105   : > { %v1652_v34 = vrot.slane %v1650_v16, 4  ;;  %v1939_v36 = vunpack.c.l.b16 %v1648_v26 }
 0x106   : > { %v1386_v49 = vsel %vm7652_vm6, %v1120_v42, %v1385_v39  ;;  %v1008_v50 = vpack.c.bf16 %v742_v44, %v742_v44  ;;  %v7841_v7 = vld [vmem:[#allocation2 + $0x40] sm:$0xf]  ;;  %2977 = vmatpush.bf16.msrb.mxu0 %v7255_v29 }
 0x107   : > { %1387 = vst [vmem:[#allocation2 + $0x48] sm:$0xf] %v1386_v49  ;;  %v1659_v20 = vshll.u32 %v7841_v7, 16  ;;  %v1663_v21 = vshrl.u32 %v7841_v7, 16  ;;  %v1515_v44 = vld [vmem:[#allocation2 + $0x44] sm:$0x1]  ;;  %v1966_v53 = vpack.c.b16 %v1939_v36, %v1938_v27  ;;  %v1656_v54 = vor.u32 %v1655_v38, %v1652_v34 }
 0x108   : > { %v1123_v58 = vshrl.u32 %v1008_v50, 16  ;;  %v1126_v59 = vshll.u32 %v1008_v50, 16  ;;  %2065 = vmatmul.bf16.gmra.mxu3 %v1965_v51  ;;  %v2452_v45 = vrot.slane %v7841_v7, 5  ;;  %v6596_v51 = vrot.slane %v2369_v28, 9 }
 0x109   : > { %v681_v63 = vpop.f32.mrf.mxu0  ;;  %2303 = vmatmul.bf16.gmra.mxu1 %v7203_v0  ;;  %v7860_v39 = vrot.slane %v1659_v20, 5  ;;  %v1665_v40 = vrot.slane %v1663_v21, 4  ;;  %v1669_v56 = vshll.u32 %v1515_v44, 16 }
 0x10a   : > { %v1125_v4 = vrot.slane %v1123_v58, 7  ;;  %v682_v5 = vadd.f32 %v7616_v46, %v681_v63  ;;  %v2454_v58 = vrot.slane %v2452_v45, 4  ;;  %v7188_v63 = vld [vmem:[%s7523_s16 + $0x78] sm:$0xff] }
 0x10b   : > { %v1666_v55 = vor.u32 %v1665_v40, %v7860_v39  ;;  %v1671_v7 = vrot.slane %v1669_v56, 5 }
 0x10c   : > { %v1128_v14 = vor.u32 %v1126_v59, %v1125_v4  ;;  %v1130_v11 = vrot.slane %v1125_v4, 4  ;;  %v743_v15 = vmax.f32 %v682_v5, 0.0  ;;  %720 = vmatmul.bf16.gmra.mxu0 %v7187_v60  ;;  %v2455_v59 = vrot.slane %v1515_v44, 5  ;;  %v907_v60 = vld [vmem:[#allocation2 + $0x74] sm:$0x1] }
 0x10d   : > { %v908_v0 = vsel %vm7561_vm4, 0, %v907_v60  ;;  %v2453_v4 = vsel %vm7697_vm13, %v6596_v51, %v2452_v45  ;;  %v1657_v5 = vrot.slane %v1656_v54, 4  ;;  %v1667_v6 = vrot.slane %v1666_v55, 4 }
 0x10e   : > { %v1129_v22 = vsel %vm7665_vm8, %v1121_v3, %v1128_v14  ;;  %v1390_v23 = vsel %vm7542_vm2, %v1130_v11, %v1389_v8  ;;  %v1009_v24 = vpack.c.bf16 %v743_v15, %v743_v15  ;;  %v1474_v2 = vld [vmem:[#allocation2 + $0x48] sm:$0xf]  ;;  %v7204_v3 = vld [vmem:[#allocation2 + $0x3c] sm:$0xff]  ;;  %909 = vst [vmem:[#allocation2 + $0x74] sm:$0x1] %v908_v0  ;;  %v2456_v13 = vsel %vm7697_vm13, %v2454_v58, %v2455_v59 }
 0x10f   : > { %1388 = vst [vmem:[#allocation2 + $0x4c] sm:$0xf] %v1129_v22  ;;  %v1396_v11 = vld [vmem:[#allocation2 + $0x5c] sm:$0x1]  ;;  %v1674_v15 = vshrl.u32 %v1474_v2, 16  ;;  %v1677_v16 = vshll.u32 %v1474_v2, 16  ;;  %v2554_v22 = vunpack.c.l.b16 %v2453_v4  ;;  %v1672_v26 = vsel %vm7713_vm14, %v1667_v6, %v1671_v7 }
 0x110   : > { %1391 = vst [vmem:[#allocation2 + $0x50] sm:$0x1] %v1390_v23  ;;  %v1132_v31 = vshrl.u32 %v1009_v24, 16  ;;  %v1135_v32 = vshll.u32 %v1009_v24, 16  ;;  %v2555_v23 = vunpack.c.l.b16 %v2456_v13  ;;  %v1662_v24 = vsel %vm7713_vm14, %v1657_v5, %v7860_v39  ;;  %v910_v6 = vld [vmem:[#allocation2 + $0x80] sm:$0x1] }
 0x111   : > { %v683_v35 = vpop.f32.mrf.mxu0  ;;  %v1679_v36 = vrot.slane %v1677_v16, 5  ;;  %v1941_v44 = vunpack.c.l.b16 %v1672_v26  ;;  %v911_v13 = vsel %vm7561_vm4, 0, %v910_v6  ;;  %v1403_v26 = vld [vmem:[#allocation2 + $0x68] sm:$0x1] }
 0x112   : > { %v1134_v41 = vrot.slane %v1132_v31, 7  ;;  %v684_v42 = vadd.f32 %v7616_v46, %v683_v35  ;;  %v1676_v35 = vrot.slane %v1674_v15, 4  ;;  %912 = vst [vmem:[#allocation2 + $0x80] sm:$0x1] %v911_v13 }
 0x114   : > { %v1137_v49 = vor.u32 %v1135_v32, %v1134_v41  ;;  %v744_v50 = vmax.f32 %v684_v42, 0.0  ;;  %2684 = vmatmul.bf16.gmra.mxu2 %v2580_v33  ;;  %v1138_v8 = vrot.slane %v1134_v41, 4  ;;  %v2370_v32 = vld [vmem:[#allocation2 + $0x48] sm:$0xe]  ;;  %v2581_v41 = vpack.c.b16 %v2555_v23, %v2554_v22  ;;  %v7239_v23 = vld [vmem:[#allocation2 + $0xc] sm:$0xff] }
 0x115   : > { %v1940_v42 = vunpack.c.l.b16 %v1662_v24  ;;  %v6597_v55 = vrot.slane %v2370_v32, 9 }
 0x116   : > { %v1393_v46 = vsel %vm7652_vm6, %v1137_v49, %v1392_v48  ;;  %v1010_v57 = vpack.c.bf16 %v744_v50, %v744_v50  ;;  %v1475_v14 = vld [vmem:[#allocation2 + $0x4c] sm:$0xf]  ;;  %v854_v48 = vld [vmem:[#allocation2 + $0x78] sm:$0x1]  ;;  %v1399_v50 = vld [vmem:[#allocation2 + $0x60] sm:$0xf] }
 0x117   : > { %1394 = vst [vmem:[#allocation2 + $0x54] sm:$0xf] %v1393_v46  ;;  %v1683_v27 = vshll.u32 %v1475_v14, 16  ;;  %v1687_v33 = vshrl.u32 %v1475_v14, 16  ;;  %v2459_v34 = vrot.slane %v1475_v14, 5  ;;  %v855_v54 = vsel %vm7542_vm2, 0, %v854_v48 }
 0x118   : > { %v1140_v61 = vshrl.u32 %v1010_v57, 16  ;;  %v1143_v62 = vshll.u32 %v1010_v57, 16  ;;  %2070 = vmatmul.bf16.gmra.mxu3 %v1966_v53  ;;  %v1516_v40 = vld [vmem:[#allocation2 + $0x50] sm:$0x1]  ;;  %v1680_v57 = vor.u32 %v1679_v36, %v1676_v35  ;;  %856 = vst [vmem:[#allocation2 + $0x78] sm:$0x1] %v855_v54 }
 0x119   : > { %v686_v1 = vpop.f32.mrf.mxu0  ;;  %2308 = vmatmul.bf16.gmra.mxu1 %v7204_v3  ;;  %v7891_v45 = vrot.slane %v1683_v27, 5  ;;  %v1689_v53 = vrot.slane %v1687_v33, 4  ;;  %v2461_v56 = vrot.slane %v2459_v34, 4  ;;  %v2462_v46 = vrot.slane %v1516_v40, 5 }
 0x11a   : > { %v1142_v9 = vrot.slane %v1140_v61, 7  ;;  %v687_v12 = vadd.f32 %v7877_v10, %v686_v1  ;;  %v1693_v60 = vshll.u32 %v1516_v40, 16  ;;  %v2460_v3 = vsel %vm7697_vm13, %v6597_v55, %v2459_v34 }
 0x11b   : > { %v1690_v0 = vor.u32 %v1689_v53, %v7891_v45  ;;  %v2463_v4 = vsel %vm7697_vm13, %v2461_v56, %v2462_v46  ;;  %v1681_v5 = vrot.slane %v1680_v57, 4  ;;  %v2556_v27 = vunpack.c.l.b16 %v2460_v3 }
 0x11c   : > { %v1145_v17 = vor.u32 %v1143_v62, %v1142_v9  ;;  %v1147_v20 = vrot.slane %v1142_v9, 4  ;;  %v745_v21 = vmax.f32 %v687_v12, 0.0  ;;  %725 = vmatmul.bf16.gmra.mxu0 %v7188_v63  ;;  %v1967_v63 = vpack.c.b16 %v1941_v44, %v1940_v42  ;;  %v7205_v9 = vld [vmem:[#allocation2 + $0x48] sm:$0xff] }
 0x11d   : > { %v1695_v12 = vrot.slane %v1693_v60, 5  ;;  %v1691_v24 = vrot.slane %v1690_v0, 4  ;;  %v1406_v0 = vld [vmem:[#allocation2 + $0x6c] sm:$0xf] }
 0x11e   : > { %v1146_v28 = vsel %vm7665_vm8, %v1138_v8, %v1145_v17  ;;  %v1397_v29 = vsel %vm7542_vm2, %v1147_v20, %v1396_v11  ;;  %v1011_v31 = vpack.c.bf16 %v745_v21, %v745_v21  ;;  %v1476_v1 = vld [vmem:[#allocation2 + $0x54] sm:$0xf] }
 0x11f   : > { %1395 = vst [vmem:[#allocation2 + $0x58] sm:$0xf] %v1146_v28  ;;  %v1698_v11 = vshrl.u32 %v1476_v1, 16  ;;  %v1701_v15 = vshll.u32 %v1476_v1, 16  ;;  %v2557_v28 = vunpack.c.l.b16 %v2463_v4  ;;  %v1696_v47 = vsel %vm7713_vm14, %v1691_v24, %v1695_v12 }
 0x120   : > { %1398 = vst [vmem:[#allocation2 + $0x5c] sm:$0x1] %v1397_v29  ;;  %v1149_v38 = vshrl.u32 %v1011_v31, 16  ;;  %v1152_v39 = vshll.u32 %v1011_v31, 16  ;;  %v1686_v29 = vsel %vm7713_vm14, %v1681_v5, %v7891_v45  ;;  %v2371_v31 = vld [vmem:[#allocation2 + $0x54] sm:$0xe]  ;;  %v1943_v57 = vunpack.c.l.b16 %v1696_v47 }
 0x121   : > { %v688_v37 = vpop.f32.mrf.mxu0  ;;  %v1703_v40 = vrot.slane %v1701_v15, 5  ;;  %v2582_v48 = vpack.c.b16 %v2557_v28, %v2556_v27  ;;  %v931_v27 = vld [vmem:[#allocation2 + $0xd4] sm:$0x1]  ;;  %v913_v28 = vld [vmem:[#allocation2 + $0x8c] sm:$0x1] }
 0x122   : > { %v1151_v49 = vrot.slane %v1149_v38, 7  ;;  %v689_v51 = vadd.f32 %v7877_v10, %v688_v37  ;;  %v811_v38 = vpop.f32.mrf.mxu2 }
 0x123   : > { %v812_v56 = vadd.f32 %v7877_v10, %v811_v38 }
 0x124   : > { %v1154_v58 = vor.u32 %v1152_v39, %v1151_v49  ;;  %v746_v59 = vmax.f32 %v689_v51, 0.0  ;;  %2689 = vmatmul.bf16.gmra.mxu2 %v2581_v41  ;;  %v1155_v20 = vrot.slane %v1151_v49, 4  ;;  %v1700_v39 = vrot.slane %v1698_v11, 4 }
 0x125   : > { %v1942_v49 = vunpack.c.l.b16 %v1686_v29  ;;  %v816_v1 = vmax.f32 %v812_v56, 0.0 }
 0x126   : > { %v1400_v61 = vsel %vm7652_vm6, %v1154_v58, %v1399_v50  ;;  %v1012_v62 = vpack.c.bf16 %v746_v59, %v746_v59  ;;  %v7902_v2 = vld [vmem:[#allocation2 + $0x58] sm:$0xf]  ;;  %v6598_v50 = vrot.slane %v2371_v31, 9  ;;  %v875_v58 = vld [vmem:[#allocation2 + $0xcc] sm:$0x1]  ;;  %v1704_v59 = vor.u32 %v1703_v40, %v1700_v39 }
 0x127   : > { %1401 = vst [vmem:[#allocation2 + $0x60] sm:$0xf] %v1400_v61  ;;  %v1707_v16 = vshll.u32 %v7902_v2, 16  ;;  %v1711_v17 = vshrl.u32 %v7902_v2, 16  ;;  %v1517_v35 = vld [vmem:[#allocation2 + $0x5c] sm:$0x1]  ;;  %v1968_v13 = vpack.c.b16 %v1943_v57, %v1942_v49 }
 0x128   : > { %v1157_v7 = vshrl.u32 %v1012_v62, 16  ;;  %v1160_v8 = vshll.u32 %v1012_v62, 16  ;;  %2075 = vmatmul.bf16.gmra.mxu3 %v1967_v63  ;;  %v2466_v36 = vrot.slane %v7902_v2, 5  ;;  %v2469_v51 = vrot.slane %v1517_v35, 5  ;;  %v857_v62 = vld [vmem:[#allocation2 + $0x84] sm:$0x1] }
 0x129   : > { %v691_v14 = vpop.f32.mrf.mxu0  ;;  %2313 = vmatmul.bf16.gmra.mxu1 %v7205_v9  ;;  %v7917_v37 = vrot.slane %v1707_v16, 5  ;;  %v1713_v41 = vrot.slane %v1711_v17, 4  ;;  %v1717_v61 = vshll.u32 %v1517_v35, 16  ;;  %v876_v3 = vsel %vm7542_vm2, 0, %v875_v58  ;;  %v1410_v35 = vld [vmem:[#allocation2 + $0x74] sm:$0x1] }
 0x12a   : > { %v1159_v21 = vrot.slane %v1157_v7, 7  ;;  %v692_v22 = vadd.f32 %v7877_v10, %v691_v14  ;;  %v2468_v55 = vrot.slane %v2466_v36, 4  ;;  %v7934_v4 = vsel %vm7697_vm13, %v6598_v50, %v2466_v36  ;;  %877 = vst [vmem:[#allocation2 + $0xcc] sm:$0x1] %v876_v3  ;;  %v7206_v38 = vld [vmem:[#allocation2 + $0x54] sm:$0xff] }
 0x12b   : > { %v1714_v60 = vor.u32 %v1713_v41, %v7917_v37  ;;  %v858_v5 = vsel %vm7542_vm2, 0, %v857_v62  ;;  %v819_v12 = vmul.f32 0.0, %v816_v1  ;;  %v1705_v14 = vrot.slane %v1704_v59, 4 }
 0x12c   : > { %v1162_v32 = vor.u32 %v1160_v8, %v1159_v21  ;;  %v1164_v33 = vrot.slane %v1159_v21, 4  ;;  %v747_v34 = vmax.f32 %v692_v22, 0.0  ;;  %2978 = vmatmul.bf16.vlgmr.msrb.gmra.mxu0 %v7239_v23  ;;  %v7941_v9 = vsel %vm7697_vm13, %v2468_v55, %v2469_v51  ;;  %859 = vst [vmem:[#allocation2 + $0x84] sm:$0x1] %v858_v5  ;;  %v813_v21 = vpop.f32.mrf.mxu2 }
 0x12d   : > { %v7943_v11 = vrot.slane %v1714_v60, 4  ;;  %v7945_v15 = vrot.slane %v1717_v61, 5  ;;  %v2558_v23 = vunpack.c.l.b16 %v7934_v4  ;;  %v2559_v24 = vunpack.c.l.b16 %v7941_v9 }
 0x12e   : > { %v1163_v42 = vsel %vm7665_vm8, %v1155_v20, %v1162_v32  ;;  %v1404_v44 = vsel %vm7542_vm2, %v1164_v33, %v1403_v26  ;;  %v1013_v45 = vpack.c.bf16 %v747_v34, %v747_v34  ;;  %v1478_v6 = vld [vmem:[#allocation2 + $0x60] sm:$0xf]  ;;  %v967_v20 = vpack.c.bf16 %v819_v12, %v819_v12 }
 0x12f   : > { %1402 = vst [vmem:[#allocation2 + $0x64] sm:$0xf] %v1163_v42  ;;  %v1722_v22 = vshrl.u32 %v1478_v6, 16  ;;  %v814_v26 = vadd.f32 %v7877_v10, %v813_v21  ;;  %v7952_v34 = vld [vmem:[#allocation2 + $0x60] sm:$0xe]  ;;  %v932_v40 = vsel %vm7561_vm4, 0, %v931_v27  ;;  %v1710_v51 = vsel %vm7713_vm14, %v1705_v14, %v7917_v37 }
 0x130   : > { %1405 = vst [vmem:[#allocation2 + $0x68] sm:$0x1] %v1404_v44  ;;  %v1166_v53 = vshrl.u32 %v1013_v45, 16  ;;  %v1169_v54 = vshll.u32 %v1013_v45, 16  ;;  %v970_v32 = vshrl.u32 %v967_v20, 16  ;;  %v973_v33 = vshll.u32 %v967_v20, 16 }
 0x131   : > { %v693_v46 = vpop.f32.mrf.mxu0  ;;  %v817_v39 = vmax.f32 %v814_v26, 0.0  ;;  %v914_v41 = vsel %vm7561_vm4, 0, %v913_v28  ;;  %v1725_v42 = vshll.u32 %v1478_v6, 16  ;;  %933 = vst [vmem:[#allocation2 + $0xd4] sm:$0x1] %v932_v40  ;;  %v6599_v55 = vrot.slane %v7952_v34, 9 }
 0x132   : > { %v7927_v63 = vrot.slane %v1166_v53, 7  ;;  %v694_v2 = vadd.f32 %v7877_v10, %v693_v46  ;;  %v972_v49 = vrot.slane %v970_v32, 7  ;;  %v990_v50 = vld [vmem:[#allocation2 + $0xcc] sm:$0xf]  ;;  %v1720_v53 = vsel %vm7713_vm14, %v7943_v11, %v7945_v15  ;;  %915 = vst [vmem:[#allocation2 + $0x8c] sm:$0x1] %v914_v41 }
 0x133   : > { %v1724_v62 = vrot.slane %v1722_v22, 4  ;;  %v1944_v3 = vunpack.c.l.b16 %v1710_v51  ;;  %v2583_v9 = vpack.c.b16 %v2559_v24, %v2558_v23  ;;  %v1413_v14 = vld [vmem:[#allocation2 + $0x78] sm:$0xf]  ;;  %v860_v32 = vld [vmem:[#allocation2 + $0x90] sm:$0x1] }
 0x134   : > { %v1171_v7 = vor.u32 %v1169_v54, %v7927_v63  ;;  %v748_v8 = vmax.f32 %v694_v2, 0.0  ;;  %2694 = vmatmul.bf16.gmra.mxu2 %v2582_v48  ;;  %v1172_v44 = vrot.slane %v7927_v63, 4  ;;  %v7240_v48 = vld [vmem:[#allocation2 + $0x18] sm:$0xff]  ;;  %v820_v54 = vmul.f32 0.0, %v817_v39 }
 0x135   : > { %v975_v58 = vor.u32 %v973_v33, %v972_v49  ;;  %v1727_v63 = vrot.slane %v1725_v42, 5  ;;  %v976_v15 = vrot.slane %v972_v49, 4 }
 0x136   : > { %v1407_v16 = vsel %vm7652_vm6, %v1171_v7, %v1406_v0  ;;  %v1014_v17 = vpack.c.bf16 %v748_v8, %v748_v8  ;;  %v1479_v59 = vld [vmem:[#allocation2 + $0x64] sm:$0xf]  ;;  %v968_v60 = vpack.c.bf16 %v820_v54, %v820_v54 }
 0x137   : > { %1408 = vst [vmem:[#allocation2 + $0x6c] sm:$0xf] %v1407_v16  ;;  %v2473_v61 = vrot.slane %v1479_v59, 5  ;;  %v991_v1 = vsel %vm7652_vm6, %v975_v58, %v990_v50  ;;  %v1518_v6 = vld [vmem:[#allocation2 + $0x68] sm:$0x1]  ;;  %v1731_v12 = vshll.u32 %v1479_v59, 16  ;;  %v1945_v16 = vunpack.c.l.b16 %v1720_v53 }
 0x138   : > { %v1174_v29 = vshrl.u32 %v1014_v17, 16  ;;  %v1177_v31 = vshll.u32 %v1014_v17, 16  ;;  %2080 = vmatmul.bf16.gmra.mxu3 %v1968_v13  ;;  %v978_v4 = vshrl.u32 %v968_v60, 16  ;;  %v981_v5 = vshll.u32 %v968_v60, 16  ;;  %v7266_v13 = vld [vmem:[%s9969_s5 + $0x118] sm:$0xff] }
 0x139   : > { %v696_v36 = vpop.f32.mrf.mxu0  ;;  %2318 = vmatmul.bf16.gmra.mxu1 %v7206_v38  ;;  %992 = vst [vmem:[#allocation2 + $0xcc] sm:$0xf] %v991_v1  ;;  %v1735_v20 = vshrl.u32 %v1479_v59, 16  ;;  %v994_v26 = vld [vmem:[#allocation2 + $0xd4] sm:$0x1]  ;;  %v2475_v27 = vrot.slane %v2473_v61, 4  ;;  %3656 = vmatpush.bf16.msrb.mxu3 %v7266_v13 }
 0x13a   : > { %v1176_v45 = vrot.slane %v1174_v29, 7  ;;  %v697_v47 = vadd.f32 %v7877_v10, %v696_v36  ;;  %v980_v17 = vrot.slane %v978_v4, 7  ;;  %v7978_v28 = vrot.slane %v1731_v12, 5  ;;  %v916_v50 = vld [vmem:[#allocation2 + $0x98] sm:$0x1] }
 0x13b   : > { %v2476_v29 = vrot.slane %v1518_v6, 5  ;;  %v1741_v40 = vshll.u32 %v1518_v6, 16 }
 0x13c   : > { %v1179_v56 = vor.u32 %v1177_v31, %v1176_v45  ;;  %v1181_v46 = vrot.slane %v1176_v45, 4  ;;  %v749_v57 = vmax.f32 %v697_v47, 0.0  ;;  %2983 = vmatmul.bf16.gmra.mxu0 %v7240_v48  ;;  %v983_v23 = vor.u32 %v981_v5, %v980_v17  ;;  %v7207_v47 = vld [vmem:[#allocation2 + $0x60] sm:$0xff] }
 0x13d   : > { %v985_v24 = vrot.slane %v980_v17, 4  ;;  %v1737_v31 = vrot.slane %v1735_v20, 4  ;;  %v861_v45 = vsel %vm7542_vm2, 0, %v860_v32  ;;  %v2474_v48 = vsel %vm7697_vm13, %v6599_v55, %v2473_v61 }
 0x13e   : > { %v1180_v37 = vsel %vm7665_vm8, %v1172_v44, %v1179_v56  ;;  %v1411_v0 = vsel %vm7542_vm2, %v1181_v46, %v1410_v35  ;;  %v1015_v2 = vpack.c.bf16 %v749_v57, %v749_v57  ;;  %v1728_v35 = vor.u32 %v1727_v63, %v1724_v62  ;;  %v7241_v56 = vld [vmem:[#allocation2 + $0x24] sm:$0xff]  ;;  %862 = vst [vmem:[#allocation2 + $0x90] sm:$0x1] %v861_v45  ;;  %v1480_v55 = vld [vmem:[#allocation2 + $0x6c] sm:$0xf] }
 0x13f   : > { %1409 = vst [vmem:[#allocation2 + $0x70] sm:$0xf] %v1180_v37  ;;  %v984_v36 = vsel %vm7665_vm8, %v976_v15, %v983_v23  ;;  %v995_v38 = vsel %vm7542_vm2, %v985_v24, %v994_v26  ;;  %v1738_v39 = vor.u32 %v1737_v31, %v7978_v28  ;;  %v1969_v44 = vpack.c.b16 %v1945_v16, %v1944_v3  ;;  %v2373_v16 = vld [vmem:[#allocation2 + $0x6c] sm:$0xe] }
 0x140   : > { %1412 = vst [vmem:[#allocation2 + $0x74] sm:$0x1] %v1411_v0  ;;  %v1183_v7 = vshrl.u32 %v1015_v2, 16  ;;  %v1186_v8 = vshll.u32 %v1015_v2, 16  ;;  %v2477_v49 = vsel %vm7697_vm13, %v2475_v27, %v2476_v29  ;;  %v1729_v46 = vrot.slane %v1728_v35, 4 }
 0x141   : > { %v698_v11 = vpop.f32.mrf.mxu0  ;;  %993 = vst [vmem:[#allocation2 + $0xd0] sm:$0xf] %v984_v36  ;;  %v917_v57 = vsel %vm7561_vm4, 0, %v916_v50  ;;  %v1739_v59 = vrot.slane %v1738_v39, 4  ;;  %v1743_v60 = vrot.slane %v1741_v40, 5  ;;  %v2560_v2 = vunpack.c.l.b16 %v2474_v48 }
 0x142   : > { %v1185_v21 = vrot.slane %v1183_v7, 7  ;;  %v699_v22 = vadd.f32 %v7877_v10, %v698_v11  ;;  %996 = vst [vmem:[#allocation2 + $0xd4] sm:$0x1] %v995_v38  ;;  %v1417_v0 = vld [vmem:[#allocation2 + $0x80] sm:$0x1]  ;;  %v2561_v1 = vunpack.c.l.b16 %v2477_v49  ;;  %v1734_v6 = vsel %vm7713_vm14, %v1729_v46, %v7978_v28 }
 0x143   : > { %918 = vst [vmem:[#allocation2 + $0x98] sm:$0x1] %v917_v57  ;;  %v1744_v7 = vsel %vm7713_vm14, %v1739_v59, %v1743_v60  ;;  %v1946_v27 = vunpack.c.l.b16 %v1734_v6  ;;  %v1420_v39 = vld [vmem:[#allocation2 + $0x84] sm:$0xf]  ;;  %v6600_v40 = vrot.slane %v2373_v16, 9 }
 0x144   : > { %v1188_v33 = vor.u32 %v1186_v8, %v1185_v21  ;;  %v750_v34 = vmax.f32 %v699_v22, 0.0  ;;  %2699 = vmatmul.bf16.gmra.mxu2 %v2583_v9  ;;  %v1189_v61 = vrot.slane %v1185_v21, 4  ;;  %v1746_v8 = vshrl.u32 %v1480_v55, 16  ;;  %v919_v57 = vld [vmem:[#allocation2 + $0xa4] sm:$0x1] }
 0x145   : > { %v1749_v9 = vshll.u32 %v1480_v55, 16  ;;  %v2584_v26 = vpack.c.b16 %v2561_v1, %v2560_v2  ;;  %v1947_v24 = vunpack.c.l.b16 %v1744_v7 }
 0x146   : > { %v1414_v41 = vsel %vm7652_vm6, %v1188_v33, %v1413_v14  ;;  %v1016_v42 = vpack.c.bf16 %v750_v34, %v750_v34  ;;  %v7993_v54 = vpop.f32.mrf.mxu1  ;;  %v1481_v37 = vld [vmem:[#allocation2 + $0x70] sm:$0xf]  ;;  %v1748_v29 = vrot.slane %v1746_v8, 4  ;;  %v863_v33 = vld [vmem:[#allocation2 + $0x9c] sm:$0x1] }
 0x147   : > { %1415 = vst [vmem:[#allocation2 + $0x78] sm:$0xf] %v1414_v41  ;;  %v1755_v12 = vshll.u32 %v1481_v37, 16  ;;  %v1759_v15 = vshrl.u32 %v1481_v37, 16  ;;  %v2480_v17 = vrot.slane %v1481_v37, 5  ;;  %v1751_v31 = vrot.slane %v1749_v9, 5 }
 0x148   : > { %v1191_v51 = vshrl.u32 %v1016_v42, 16  ;;  %v1194_v53 = vshll.u32 %v1016_v42, 16  ;;  %2085 = vmatmul.bf16.gmra.mxu3 %v1969_v44  ;;  %v1519_v28 = vld [vmem:[#allocation2 + $0x74] sm:$0x1]  ;;  %v864_v38 = vsel %vm7542_vm2, 0, %v863_v33  ;;  %v7208_v37 = vld [vmem:[#allocation2 + $0x6c] sm:$0xff] }
 0x149   : > { %v701_v58 = vpop.f32.mrf.mxu0  ;;  %2323 = vmatmul.bf16.gmra.mxu1 %v7207_v47  ;;  %v8009_v32 = vrot.slane %v1755_v12, 5  ;;  %v1761_v36 = vrot.slane %v1759_v15, 4  ;;  %865 = vst [vmem:[#allocation2 + $0x9c] sm:$0x1] %v864_v38  ;;  %v2482_v44 = vrot.slane %v2480_v17, 4  ;;  %v2483_v45 = vrot.slane %v1519_v28, 5 }
 0x14a   : > { %v1193_v62 = vrot.slane %v1191_v51, 7  ;;  %v702_v63 = vadd.f32 %v7877_v10, %v701_v58  ;;  %v1752_v47 = vor.u32 %v1751_v31, %v1748_v29  ;;  %v1765_v48 = vshll.u32 %v1519_v28, 16  ;;  %v1424_v8 = vld [vmem:[#allocation2 + $0x8c] sm:$0x1] }
 0x14b   : > { %v1970_v51 = vpack.c.b16 %v1947_v24, %v1946_v27  ;;  %v2481_v46 = vsel %vm7697_vm13, %v6600_v40, %v2480_v17  ;;  %v2484_v55 = vsel %vm7697_vm13, %v2482_v44, %v2483_v45 }
 0x14c   : > { %v1196_v3 = vor.u32 %v1194_v53, %v1193_v62  ;;  %v1198_v4 = vrot.slane %v1193_v62, 4  ;;  %v751_v5 = vmax.f32 %v702_v63, 0.0  ;;  %2988 = vmatmul.bf16.gmra.mxu0 %v7241_v56  ;;  %v1762_v53 = vor.u32 %v1761_v36, %v8009_v32 }
 0x14d   : > { %v1767_v2 = vrot.slane %v1765_v48, 5  ;;  %v2562_v12 = vunpack.c.l.b16 %v2481_v46  ;;  %v866_v48 = vld [vmem:[#allocation2 + $0xa8] sm:$0x1]  ;;  %v1427_v46 = vld [vmem:[#allocation2 + $0x90] sm:$0xf] }
 0x14e   : > { %v1197_v13 = vsel %vm7665_vm8, %v1189_v61, %v1196_v3  ;;  %v1418_v14 = vsel %vm7542_vm2, %v1198_v4, %v1417_v0  ;;  %v1017_v11 = vpack.c.bf16 %v751_v5, %v751_v5  ;;  %v8007_v22 = vpop.f32.mrf.mxu1  ;;  %v920_v61 = vsel %vm7561_vm4, 0, %v919_v57  ;;  %v1482_v62 = vld [vmem:[#allocation2 + $0x78] sm:$0xf]  ;;  %v7242_v5 = vld [vmem:[#allocation2 + $0x30] sm:$0xff] }
 0x14f   : > { %1416 = vst [vmem:[#allocation2 + $0x7c] sm:$0xf] %v1197_v13  ;;  %v1753_v0 = vrot.slane %v1752_v47, 4  ;;  %v1763_v6 = vrot.slane %v1762_v53, 4  ;;  %v2563_v13 = vunpack.c.l.b16 %v2484_v55  ;;  %v2374_v33 = vld [vmem:[#allocation2 + $0x78] sm:$0xe] }
 0x150   : > { %1419 = vst [vmem:[#allocation2 + $0x80] sm:$0x1] %v1418_v14  ;;  %v1200_v20 = vshrl.u32 %v1017_v11, 16  ;;  %v1203_v21 = vshll.u32 %v1017_v11, 16  ;;  %v1770_v14 = vshrl.u32 %v1482_v62, 16  ;;  %v1773_v11 = vshll.u32 %v1482_v62, 16 }
 0x151   : > { %v703_v23 = vpop.f32.mrf.mxu0  ;;  %921 = vst [vmem:[#allocation2 + $0xa4] sm:$0x1] %v920_v61  ;;  %v1768_v29 = vsel %vm7713_vm14, %v1763_v6, %v1767_v2  ;;  %v2585_v31 = vpack.c.b16 %v2563_v13, %v2562_v12  ;;  %v7265_v47 = vld [vmem:[%s9969_s5 + $0x110] sm:$0xff] }
 0x152   : > { %v1202_v34 = vrot.slane %v1200_v20, 7  ;;  %v704_v35 = vadd.f32 %v7877_v10, %v703_v23  ;;  %v1775_v38 = vrot.slane %v1773_v11, 5  ;;  %3657 = vmatpush.bf16.msrb.mxu3 %v7265_v47 }
 0x154   : > { %v1205_v41 = vor.u32 %v1203_v21, %v1202_v34  ;;  %v752_v42 = vmax.f32 %v704_v35, 0.0  ;;  %2704 = vmatmul.bf16.gmra.mxu2 %v2584_v26  ;;  %v1206_v1 = vrot.slane %v1202_v34, 4  ;;  %v1758_v21 = vsel %vm7713_vm14, %v1753_v0, %v8009_v32 }
 0x155   : > { %v1772_v34 = vrot.slane %v1770_v14, 4 }
 0x156   : > { %v1421_v49 = vsel %vm7652_vm6, %v1205_v41, %v1420_v39  ;;  %v1018_v50 = vpack.c.bf16 %v752_v42, %v752_v42  ;;  %v8019_v60 = vpop.f32.mrf.mxu1  ;;  %v8026_v7 = vld [vmem:[#allocation2 + $0x7c] sm:$0xf]  ;;  %v1948_v41 = vunpack.c.l.b16 %v1758_v21  ;;  %v1949_v42 = vunpack.c.l.b16 %v1768_v29 }
 0x157   : > { %1422 = vst [vmem:[#allocation2 + $0x84] sm:$0xf] %v1421_v49  ;;  %v2665_v56 = vpop.f32.mrf.mxu2  ;;  %v1779_v26 = vshll.u32 %v8026_v7, 16  ;;  %v1783_v27 = vshrl.u32 %v8026_v7, 16  ;;  %v2487_v53 = vrot.slane %v8026_v7, 5  ;;  %v1776_v62 = vor.u32 %v1775_v38, %v1772_v34  ;;  %v7278_v7 = vld [vmem:[%s9969_s5 + $0x178] sm:$0xff] }
 0x158   : > { %v1208_v58 = vshrl.u32 %v1018_v50, 16  ;;  %v1211_v59 = vshll.u32 %v1018_v50, 16  ;;  %2090 = vmatmul.bf16.gmra.mxu3 %v1970_v51  ;;  %v1520_v51 = vld [vmem:[#allocation2 + $0x80] sm:$0x1]  ;;  %4078 = vmatpush.bf16.msra.mxu1 %v7278_v7 }
 0x159   : > { %v706_v63 = vpop.f32.mrf.mxu0  ;;  %2328 = vmatmul.bf16.gmra.mxu1 %v7208_v37  ;;  %v8044_v44 = vrot.slane %v1779_v26, 5  ;;  %v1785_v45 = vrot.slane %v1783_v27, 4  ;;  %v2490_v37 = vrot.slane %v1520_v51, 5  ;;  %v1789_v2 = vshll.u32 %v1520_v51, 16 }
 0x15a   : > { %v1210_v3 = vrot.slane %v1208_v58, 7  ;;  %v707_v4 = vadd.f32 %v7877_v10, %v706_v63  ;;  %v6601_v58 = vrot.slane %v2374_v33, 9  ;;  %v1971_v63 = vpack.c.b16 %v1949_v42, %v1948_v41 }
 0x15b   : > { %v2051_v9 = vpop.f32.mrf.mxu3  ;;  %v1786_v0 = vor.u32 %v1785_v45, %v8044_v44  ;;  %v1791_v26 = vrot.slane %v1789_v2, 5 }
 0x15c   : > { %v1213_v15 = vor.u32 %v1211_v59, %v1210_v3  ;;  %v1215_v16 = vrot.slane %v1210_v3, 4  ;;  %v753_v17 = vmax.f32 %v707_v4, 0.0  ;;  %v2285_v20 = vadd.f32 %v7993_v54, %v2051_v9  ;;  %2993 = vmatmul.bf16.gmra.mxu0 %v7242_v5 }
 0x15d   : > { %v2489_v4 = vrot.slane %v2487_v53, 4  ;;  %v2488_v14 = vsel %vm7697_vm13, %v6601_v58, %v2487_v53  ;;  %v1787_v21 = vrot.slane %v1786_v0, 4 }
 0x15e   : > { %v1214_v28 = vsel %vm7665_vm8, %v1206_v1, %v1213_v15  ;;  %v1425_v23 = vsel %vm7542_vm2, %v1215_v16, %v1424_v8  ;;  %v1019_v24 = vpack.c.bf16 %v753_v17, %v753_v17  ;;  %v8040_v36 = vpop.f32.mrf.mxu1  ;;  %v8042_v39 = vadd.f32 %v2665_v56, %v2285_v20  ;;  %v922_v8 = vld [vmem:[#allocation2 + $0xb0] sm:$0x1]  ;;  %v1484_v15 = vld [vmem:[#allocation2 + $0x84] sm:$0xf]  ;;  %v7209_v17 = vld [vmem:[#allocation2 + $0x78] sm:$0xff] }
 0x15f   : > { %1423 = vst [vmem:[#allocation2 + $0x88] sm:$0xf] %v1214_v28  ;;  %v2667_v54 = vpop.f32.mrf.mxu2  ;;  %v867_v56 = vsel %vm7542_vm2, 0, %v866_v48  ;;  %v923_v11 = vsel %vm7561_vm4, 0, %v922_v8  ;;  %v1777_v20 = vrot.slane %v1776_v62, 4  ;;  %v2491_v29 = vsel %vm7697_vm13, %v2489_v4, %v2490_v37 }
 0x160   : > { %1426 = vst [vmem:[#allocation2 + $0x8c] sm:$0x1] %v1425_v23  ;;  %v1217_v32 = vshrl.u32 %v1019_v24, 16  ;;  %v1220_v35 = vshll.u32 %v1019_v24, 16  ;;  %v7243_v24 = vld [vmem:[#allocation2 + $0x3c] sm:$0xff]  ;;  %v2564_v34 = vunpack.c.l.b16 %v2488_v14  ;;  %v2565_v45 = vunpack.c.l.b16 %v2491_v29 }
 0x161   : > { %v708_v40 = vpop.f32.mrf.mxu0  ;;  %868 = vst [vmem:[#allocation2 + $0xa8] sm:$0x1] %v867_v56  ;;  %v1782_v47 = vsel %vm7713_vm14, %v1777_v20, %v8044_v44  ;;  %v1792_v48 = vsel %vm7713_vm14, %v1787_v21, %v1791_v26  ;;  %v2375_v0 = vld [vmem:[#allocation2 + $0x84] sm:$0xe] }
 0x162   : > { %v8049_v49 = vrot.slane %v1217_v32, 7  ;;  %v709_v50 = vadd.f32 %v7877_v10, %v708_v40  ;;  %924 = vst [vmem:[#allocation2 + $0xb0] sm:$0x1] %v923_v11  ;;  %v1794_v32 = vshrl.u32 %v1484_v15, 16  ;;  %v1951_v37 = vunpack.c.l.b16 %v1792_v48 }
 0x163   : > { %v2053_v57 = vpop.f32.mrf.mxu3 }
 0x164   : > { %v1222_v59 = vor.u32 %v1220_v35, %v8049_v49  ;;  %v754_v55 = vmax.f32 %v709_v50, 0.0  ;;  %v2287_v61 = vadd.f32 %v8007_v22, %v2053_v57  ;;  %2709 = vmatmul.bf16.gmra.mxu2 %v2585_v31  ;;  %v7302_v22 = vld [vmem:[%s9969_s5 + $0x1b8] sm:$0xff]  ;;  %v1223_v27 = vrot.slane %v8049_v49, 4 }
 0x165   : > { %4393 = vmatpush.bf16.msra.mxu2 %v7302_v22  ;;  %v1431_v31 = vld [vmem:[#allocation2 + $0x98] sm:$0x1]  ;;  %v1797_v35 = vshll.u32 %v1484_v15, 16 }
 0x166   : > { %v1428_v1 = vsel %vm7652_vm6, %v1222_v59, %v1427_v46  ;;  %v1020_v3 = vpack.c.bf16 %v754_v55, %v754_v55  ;;  %v8060_v5 = vadd.f32 %v2667_v54, %v2287_v61  ;;  %v8068_v13 = vpop.f32.mrf.mxu1  ;;  %v8078_v54 = vld [vmem:[#allocation2 + $0x88] sm:$0xf]  ;;  %v1796_v46 = vrot.slane %v1794_v32, 4 }
 0x167   : > { %1429 = vst [vmem:[#allocation2 + $0x90] sm:$0xf] %v1428_v1  ;;  %v2670_v6 = vpop.f32.mrf.mxu2  ;;  %v1803_v49 = vshll.u32 %v8078_v54, 16  ;;  %v1799_v57 = vrot.slane %v1797_v35, 5  ;;  %v1950_v55 = vunpack.c.l.b16 %v1782_v47  ;;  %v2494_v2 = vrot.slane %v8078_v54, 5 }
 0x168   : > { %v1225_v9 = vshrl.u32 %v1020_v3, 16  ;;  %v1228_v12 = vshll.u32 %v1020_v3, 16  ;;  %2095 = vmatmul.bf16.gmra.mxu3 %v1971_v63  ;;  %v2586_v63 = vpack.c.b16 %v2565_v45, %v2564_v34  ;;  %v869_v3 = vld [vmem:[#allocation2 + $0xb4] sm:$0x1]  ;;  %v1521_v7 = vld [vmem:[#allocation2 + $0x8c] sm:$0x1] }
 0x169   : > { %v711_v16 = vpop.f32.mrf.mxu0  ;;  %2333 = vmatmul.bf16.gmra.mxu1 %v7209_v17  ;;  %v8097_v1 = vrot.slane %v1803_v49, 5  ;;  %v1800_v14 = vor.u32 %v1799_v57, %v1796_v46  ;;  %v6602_v17 = vrot.slane %v2375_v0, 9  ;;  %v1972_v20 = vpack.c.b16 %v1951_v37, %v1950_v55  ;;  %v925_v34 = vld [vmem:[#allocation2 + $0xbc] sm:$0x1]  ;;  %v1438_v46 = vld [vmem:[#allocation2 + $0xa4] sm:$0x1] }
 0x16a   : > { %v1227_v28 = vrot.slane %v1225_v9, 7  ;;  %v712_v23 = vadd.f32 %v7877_v10, %v711_v16  ;;  %v870_v9 = vsel %vm7542_vm2, 0, %v869_v3  ;;  %v2496_v21 = vrot.slane %v2494_v2, 4 }
 0x16b   : > { %v2056_v33 = vpop.f32.mrf.mxu3  ;;  %871 = vst [vmem:[#allocation2 + $0xb4] sm:$0x1] %v870_v9  ;;  %v2497_v26 = vrot.slane %v1521_v7, 5 }
 0x16c   : > { %v1230_v38 = vor.u32 %v1228_v12, %v1227_v28  ;;  %v1232_v40 = vrot.slane %v1227_v28, 4  ;;  %v755_v41 = vmax.f32 %v712_v23, 0.0  ;;  %v2290_v42 = vadd.f32 %v8019_v60, %v2056_v33  ;;  %2998 = vmatmul.bf16.gmra.mxu0 %v7243_v24  ;;  %v1434_v12 = vld [vmem:[#allocation2 + $0x9c] sm:$0xf] }
 0x16d   : > { %v1807_v60 = vshrl.u32 %v8078_v54, 16  ;;  %v1801_v33 = vrot.slane %v1800_v14, 4  ;;  %v2498_v45 = vsel %vm7697_vm13, %v2496_v21, %v2497_v26 }
 0x16e   : > { %v1231_v50 = vsel %vm7665_vm8, %v1223_v27, %v1230_v38  ;;  %v1432_v51 = vsel %vm7542_vm2, %v1232_v40, %v1431_v31  ;;  %v1021_v53 = vpack.c.bf16 %v755_v41, %v755_v41  ;;  %v8092_v59 = vpop.f32.mrf.mxu1  ;;  %v8094_v61 = vadd.f32 %v2670_v6, %v2290_v42  ;;  %v1486_v29 = vld [vmem:[#allocation2 + $0x90] sm:$0xf]  ;;  %v7210_v42 = vld [vmem:[#allocation2 + $0x84] sm:$0xff] }
 0x16f   : > { %1430 = vst [vmem:[#allocation2 + $0x94] sm:$0xf] %v1231_v50  ;;  %v2672_v56 = vpop.f32.mrf.mxu2  ;;  %v1809_v8 = vrot.slane %v1807_v60, 4  ;;  %v1813_v27 = vshll.u32 %v1521_v7, 16  ;;  %v2495_v38 = vsel %vm7697_vm13, %v6602_v17, %v2494_v2  ;;  %v926_v40 = vsel %vm7561_vm4, 0, %v925_v34  ;;  %v7244_v60 = vld [vmem:[#allocation2 + $0x48] sm:$0xff] }
 0x170   : > { %1433 = vst [vmem:[#allocation2 + $0x98] sm:$0x1] %v1432_v51  ;;  %v1234_v44 = vshrl.u32 %v1021_v53, 16  ;;  %v1237_v58 = vshll.u32 %v1021_v53, 16  ;;  %v1818_v48 = vshrl.u32 %v1486_v29, 16  ;;  %v1821_v49 = vshll.u32 %v1486_v29, 16 }
 0x171   : > { %v713_v62 = vpop.f32.mrf.mxu0  ;;  %v1810_v24 = vor.u32 %v1809_v8, %v8097_v1  ;;  %v1815_v47 = vrot.slane %v1813_v27, 5  ;;  %927 = vst [vmem:[#allocation2 + $0xbc] sm:$0x1] %v926_v40  ;;  %v2567_v0 = vunpack.c.l.b16 %v2498_v45  ;;  %v1806_v2 = vsel %vm7713_vm14, %v1801_v33, %v8097_v1  ;;  %v8139_v29 = vld [vmem:[%s9968_s4] ss:$0 sm:$0xff] }
 0x172   : > { %v1236_v4 = vrot.slane %v1234_v44, 7  ;;  %v714_v22 = vadd.f32 %v7877_v10, %v713_v62  ;;  %v2566_v44 = vunpack.c.l.b16 %v2495_v38  ;;  %v1820_v3 = vrot.slane %v1818_v48, 4 }
 0x173   : > { %v2058_v6 = vpop.f32.mrf.mxu3  ;;  %v1952_v21 = vunpack.c.l.b16 %v1806_v2 }
 0x174   : > { %v1239_v11 = vor.u32 %v1237_v58, %v1236_v4  ;;  %v756_v15 = vmax.f32 %v714_v22, 0.0  ;;  %v2292_v16 = vadd.f32 %v8040_v36, %v2058_v6  ;;  %2714 = vmatmul.bf16.gmra.mxu2 %v2586_v63  ;;  %v1240_v50 = vrot.slane %v1236_v4, 4 }
 0x176   : > { %v1435_v28 = vsel %vm7652_vm6, %v1239_v11, %v1434_v12  ;;  %v1022_v23 = vpack.c.bf16 %v756_v15, %v756_v15  ;;  %v8106_v54 = vadd.f32 %v2672_v56, %v2292_v16  ;;  %v8108_v35 = vpop.f32.mrf.mxu1  ;;  %v1811_v56 = vrot.slane %v1810_v24, 4  ;;  %v1487_v37 = vld [vmem:[#allocation2 + $0x94] sm:$0xf]  ;;  %v2376_v11 = vld [vmem:[#allocation2 + $0x90] sm:$0xe] }
 0x177   : > { %1436 = vst [vmem:[#allocation2 + $0x9c] sm:$0xf] %v1435_v28  ;;  %v2675_v31 = vpop.f32.mrf.mxu2  ;;  %v1827_v9 = vshll.u32 %v1487_v37, 16  ;;  %v1831_v12 = vshrl.u32 %v1487_v37, 16  ;;  %v1441_v16 = vld [vmem:[#allocation2 + $0xa8] sm:$0xf] }
 0x178   : > { %v1242_v36 = vshrl.u32 %v1022_v23, 16  ;;  %v1245_v32 = vshll.u32 %v1022_v23, 16  ;;  %2100 = vmatmul.bf16.gmra.mxu3 %v1972_v20  ;;  %v1816_v8 = vsel %vm7713_vm14, %v1811_v56, %v1815_v47  ;;  %v2587_v20 = vpack.c.b16 %v2567_v0, %v2566_v44  ;;  %v7264_v28 = vld [vmem:[%s9969_s5 + $0x108] sm:$0xff]  ;;  %v872_v23 = vld [vmem:[#allocation2 + $0xc0] sm:$0x1] }
 0x179   : > { %v716_v41 = vpop.f32.mrf.mxu0  ;;  %2338 = vmatmul.bf16.gmra.mxu1 %v7210_v42  ;;  %v1953_v26 = vunpack.c.l.b16 %v1816_v8  ;;  %v1522_v33 = vld [vmem:[#allocation2 + $0x98] sm:$0x1]  ;;  %v2501_v34 = vrot.slane %v1487_v37, 5  ;;  %v6603_v38 = vrot.slane %v2376_v11, 9  ;;  %v8144_v40 = vrot.slane %v1827_v9, 5  ;;  %3658 = vmatpush.bf16.msrb.mxu3 %v7264_v28 }
 0x17a   : > { %v1244_v51 = vrot.slane %v1242_v36, 7  ;;  %v717_v53 = vadd.f32 %v7877_v10, %v716_v41  ;;  %v1823_v10 = vrot.slane %v1821_v49, 5  ;;  %v873_v36 = vsel %vm7542_vm2, 0, %v872_v23 }
 0x17b   : > { %v2061_v57 = vpop.f32.mrf.mxu3  ;;  %v1833_v41 = vrot.slane %v1831_v12, 4  ;;  %874 = vst [vmem:[#allocation2 + $0xc0] sm:$0x1] %v873_v36  ;;  %v1973_v48 = vpack.c.b16 %v1953_v26, %v1952_v21  ;;  %v2504_v49 = vrot.slane %v1522_v33, 5  ;;  %v1837_v56 = vshll.u32 %v1522_v33, 16 }
 0x17c   : > { %v1247_v58 = vor.u32 %v1245_v32, %v1244_v51  ;;  %v1249_v55 = vrot.slane %v1244_v51, 4  ;;  %v757_v62 = vmax.f32 %v717_v53, 0.0  ;;  %v2295_v63 = vadd.f32 %v8068_v13, %v2061_v57  ;;  %3003 = vmatmul.bf16.gmra.mxu0 %v7244_v60 }
 0x17d   : > { %v1824_v27 = vor.u32 %v1823_v10, %v1820_v3  ;;  %v2503_v60 = vrot.slane %v2501_v34, 4  ;;  %v2502_v57 = vsel %vm7697_vm13, %v6603_v38, %v2501_v34  ;;  %v1834_v44 = vor.u32 %v1833_v41, %v8144_v40  ;;  %v7211_v10 = vld [vmem:[#allocation2 + $0x90] sm:$0xff] }
 0x17e   : > { %v1248_v4 = vsel %vm7665_vm8, %v1240_v50, %v1247_v58  ;;  %v1439_v22 = vsel %vm7542_vm2, %v1249_v55, %v1438_v46  ;;  %v1023_v7 = vpack.c.bf16 %v757_v62, %v757_v62  ;;  %v8127_v1 = vpop.f32.mrf.mxu1  ;;  %v8129_v15 = vadd.f32 %v2675_v31, %v2295_v63  ;;  %v7277_v58 = vld [vmem:[%s9969_s5 + $0x170] sm:$0xff]  ;;  %v928_v55 = vld [vmem:[#allocation2 + $0xc8] sm:$0x1]  ;;  %v1488_v12 = vld [vmem:[#allocation2 + $0x9c] sm:$0xf] }
 0x17f   : > { %1437 = vst [vmem:[#allocation2 + $0xa0] sm:$0xf] %v1248_v4  ;;  %v2677_v13 = vpop.f32.mrf.mxu2  ;;  %v1825_v50 = vrot.slane %v1824_v27, 4  ;;  %v929_v2 = vsel %vm7561_vm4, 0, %v928_v55  ;;  %v7245_v4 = vld [vmem:[#allocation2 + $0x54] sm:$0xff]  ;;  %4079 = vmatpush.bf16.msra.mxu1 %v7277_v58  ;;  %v2505_v25 = vsel %vm7697_vm13, %v2503_v60, %v2504_v49  ;;  %v1842_v28 = vshrl.u32 %v1488_v12, 16 }
 0x180   : > { %1440 = vst [vmem:[#allocation2 + $0xa4] sm:$0x1] %v1439_v22  ;;  %v1251_v6 = vshrl.u32 %v1023_v7, 16  ;;  %v1254_v14 = vshll.u32 %v1023_v7, 16  ;;  %v1845_v23 = vshll.u32 %v1488_v12, 16 }
 0x181   : > { %v718_v17 = vpop.f32.mrf.mxu0  ;;  %930 = vst [vmem:[#allocation2 + $0xc8] sm:$0x1] %v929_v2  ;;  %v1830_v11 = vsel %vm7713_vm14, %v1825_v50, %v8144_v40  ;;  %v1844_v49 = vrot.slane %v1842_v28, 4  ;;  %v1448_v58 = vld [vmem:[#allocation2 + $0xb4] sm:$0xf] }
 0x182   : > { %v8134_v24 = vrot.slane %v1251_v6, 7  ;;  %v719_v31 = vadd.f32 %v8139_v29, %v718_v17  ;;  %v1445_v6 = vld [vmem:[#allocation2 + $0xb0] sm:$0x1]  ;;  %v1839_v17 = vrot.slane %v1837_v56, 5  ;;  %v1847_v50 = vrot.slane %v1845_v23, 5 }
 0x183   : > { %v2063_v32 = vpop.f32.mrf.mxu3 }
 0x184   : > { %v1256_v42 = vor.u32 %v1254_v14, %v8134_v24  ;;  %v758_v45 = vmax.f32 %v719_v31, 0.0  ;;  %v2297_v47 = vadd.f32 %v8092_v59, %v2063_v32  ;;  %2719 = vmatmul.bf16.gmra.mxu2 %v2587_v20  ;;  %v7301_v59 = vld [vmem:[%s9969_s5 + $0x1b0] sm:$0xff]  ;;  %v1257_v22 = vrot.slane %v8134_v24, 4 }
 0x185   : > { %4394 = vmatpush.bf16.msra.mxu2 %v7301_v59  ;;  %v2569_v32 = vunpack.c.l.b16 %v2505_v25 }
 0x186   : > { %v1442_v51 = vsel %vm7652_vm6, %v1256_v42, %v1441_v16  ;;  %v1024_v53 = vpack.c.bf16 %v758_v45, %v758_v45  ;;  %v8161_v62 = vadd.f32 %v2677_v13, %v2297_v47  ;;  %v8163_v0 = vpop.f32.mrf.mxu1  ;;  %v2568_v13 = vunpack.c.l.b16 %v2502_v57  ;;  %v8169_v9 = vld [vmem:[#allocation2 + $0xa0] sm:$0xf] }
 0x187   : > { %1443 = vst [vmem:[#allocation2 + $0xa8] sm:$0xf] %v1442_v51  ;;  %v8150_v46 = vpop.f32.mrf.mxu2  ;;  %v1835_v16 = vrot.slane %v1834_v44, 4  ;;  %v1851_v24 = vshll.u32 %v8169_v9, 16  ;;  %v1855_v31 = vshrl.u32 %v8169_v9, 16  ;;  %v1954_v45 = vunpack.c.l.b16 %v1830_v11  ;;  %v7212_v28 = vld [vmem:[#allocation2 + $0x9c] sm:$0xff] }
 0x188   : > { %v1259_v63 = vshrl.u32 %v1024_v53, 16  ;;  %v1262_v37 = vshll.u32 %v1024_v53, 16  ;;  %2105 = vmatmul.bf16.gmra.mxu3 %v1973_v48  ;;  %v2377_v48 = vld [vmem:[#allocation2 + $0x9c] sm:$0xe]  ;;  %v2588_v57 = vpack.c.b16 %v2569_v32, %v2568_v13  ;;  %v1523_v59 = vld [vmem:[#allocation2 + $0xa4] sm:$0x1] }
 0x189   : > { %v721_v3 = vpop.f32.mrf.mxu0  ;;  %2343 = vmatmul.bf16.gmra.mxu1 %v7211_v10  ;;  %v8191_v51 = vrot.slane %v1851_v24, 5  ;;  %v1857_v53 = vrot.slane %v1855_v31, 4  ;;  %v6604_v10 = vrot.slane %v2377_v48, 9  ;;  %v7246_v32 = vld [vmem:[#allocation2 + $0x60] sm:$0xff] }
 0x18a   : > { %v1261_v7 = vrot.slane %v1259_v63, 7  ;;  %v722_v8 = vadd.f32 %v8139_v29, %v721_v3  ;;  %v2508_v63 = vrot.slane %v8169_v9, 5 }
 0x18b   : > { %v2066_v14 = vpop.f32.mrf.mxu3 }
 0x18c   : > { %v1264_v20 = vor.u32 %v1262_v37, %v1261_v7  ;;  %v1266_v21 = vrot.slane %v1261_v7, 4  ;;  %v759_v26 = vmax.f32 %v722_v8, 0.0  ;;  %v8177_v27 = vadd.f32 %v8108_v35, %v2066_v14  ;;  %3008 = vmatmul.bf16.gmra.mxu0 %v7245_v4  ;;  %v7276_v4 = vld [vmem:[%s9969_s5 + $0x168] sm:$0xff] }
 0x18d   : > { %v1840_v35 = vsel %vm7713_vm14, %v1835_v16, %v1839_v17  ;;  %v1858_v7 = vor.u32 %v1857_v53, %v8191_v51  ;;  %v1861_v8 = vshll.u32 %v1523_v59, 16  ;;  %4080 = vmatpush.bf16.msra.mxu1 %v7276_v4  ;;  %v2511_v14 = vrot.slane %v1523_v59, 5 }
 0x18e   : > { %v1265_v33 = vsel %vm7665_vm8, %v1257_v22, %v1264_v20  ;;  %v1446_v34 = vsel %vm7542_vm2, %v1266_v21, %v1445_v6  ;;  %v1025_v36 = vpack.c.bf16 %v759_v26, %v759_v26  ;;  %v8189_v42 = vpop.f32.mrf.mxu1  ;;  %v1955_v44 = vunpack.c.l.b16 %v1840_v35  ;;  %v7263_v20 = vld [vmem:[%s9969_s5 + $0x100] sm:$0xff]  ;;  %v1490_v35 = vld [vmem:[#allocation2 + $0xa8] sm:$0xf] }
 0x18f   : > { %1444 = vst [vmem:[#allocation2 + $0xac] sm:$0xf] %v1265_v33  ;;  %v8185_v38 = vpop.f32.mrf.mxu2  ;;  %v1848_v22 = vor.u32 %v1847_v50, %v1844_v49  ;;  %v2509_v17 = vsel %vm7697_vm13, %v6604_v10, %v2508_v63  ;;  %v7275_v21 = vld [vmem:[%s9969_s5 + $0x160] sm:$0xff]  ;;  %v1859_v24 = vrot.slane %v1858_v7, 4  ;;  %v1863_v31 = vrot.slane %v1861_v8, 5  ;;  %3659 = vmatpush.bf16.msrb.mxu3 %v7263_v20 }
 0x190   : > { %1447 = vst [vmem:[#allocation2 + $0xb0] sm:$0x1] %v1446_v34  ;;  %v1268_v40 = vshrl.u32 %v1025_v36, 16  ;;  %v1271_v41 = vshll.u32 %v1025_v36, 16  ;;  %v1974_v12 = vpack.c.b16 %v1955_v44, %v1954_v45 }
 0x191   : > { %v723_v47 = vpop.f32.mrf.mxu0  ;;  %v1849_v23 = vrot.slane %v1848_v22, 4  ;;  %4081 = vmatpush.bf16.msra.mxu1 %v7275_v21  ;;  %v1864_v59 = vsel %vm7713_vm14, %v1859_v24, %v1863_v31  ;;  %v7299_v22 = vld [vmem:[%s9969_s5 + $0x1a0] sm:$0xff] }
 0x192   : > { %v8193_v60 = vrot.slane %v1268_v40, 7  ;;  %v724_v56 = vadd.f32 %v8139_v29, %v723_v47  ;;  %v1452_v40 = vld [vmem:[#allocation2 + $0xbc] sm:$0x1]  ;;  %v2570_v47 = vunpack.c.l.b16 %v2509_v17 }
 0x193   : > { %v2068_v55 = vpop.f32.mrf.mxu3  ;;  %v1854_v44 = vsel %vm7713_vm14, %v1849_v23, %v8191_v51  ;;  %v1455_v23 = vld [vmem:[#allocation2 + $0xc0] sm:$0xf] }
 0x194   : > { %v1273_v37 = vor.u32 %v1271_v41, %v8193_v60  ;;  %v760_v2 = vmax.f32 %v724_v56, 0.0  ;;  %v8199_v3 = vadd.f32 %v8127_v1, %v2068_v55  ;;  %2724 = vmatmul.bf16.gmra.mxu2 %v2588_v57  ;;  %v2510_v1 = vrot.slane %v2508_v63, 4  ;;  %v7300_v56 = vld [vmem:[%s9969_s5 + $0x1a8] sm:$0xff]  ;;  %v7274_v57 = vld [vmem:[%s9969_s5 + $0x158] sm:$0xff] }
 0x195   : > { %v1274_v33 = vrot.slane %v8193_v60, 4  ;;  %4395 = vmatpush.bf16.msra.mxu2 %v7300_v56  ;;  %4082 = vmatpush.bf16.msra.mxu1 %v7274_v57 }
 0x196   : > { %v1449_v13 = vsel %vm7652_vm6, %v1273_v37, %v1448_v58  ;;  %v1026_v9 = vpack.c.bf16 %v760_v2, %v760_v2  ;;  %v8209_v16 = vpop.f32.mrf.mxu1  ;;  %v2512_v45 = vsel %vm7697_vm13, %v2510_v1, %v2511_v14  ;;  %v8226_v60 = vld [vmem:[#allocation2 + $0xac] sm:$0xf]  ;;  %v1869_v58 = vshll.u32 %v1490_v35, 16 }
 0x197   : > { %1450 = vst [vmem:[#allocation2 + $0xb4] sm:$0xf] %v1449_v13  ;;  %v8207_v6 = vpop.f32.mrf.mxu2  ;;  %v2571_v2 = vunpack.c.l.b16 %v2512_v45  ;;  %v1875_v51 = vshll.u32 %v8226_v60, 16  ;;  %v1879_v4 = vshrl.u32 %v8226_v60, 16  ;;  %v1956_v1 = vunpack.c.l.b16 %v1854_v44  ;;  %v1524_v31 = vld [vmem:[#allocation2 + $0xb0] sm:$0x1] }
 0x198   : > { %v1276_v25 = vshrl.u32 %v1026_v9, 16  ;;  %v1279_v11 = vshll.u32 %v1026_v9, 16  ;;  %2110 = vmatmul.bf16.gmra.mxu3 %v1974_v12  ;;  %v7273_v9 = vld [vmem:[%s9969_s5 + $0x150] sm:$0xff]  ;;  %v1957_v14 = vunpack.c.l.b16 %v1864_v59  ;;  %v1885_v57 = vshll.u32 %v1524_v31, 16 }
 0x199   : > { %v726_v26 = vpop.f32.mrf.mxu0  ;;  %2348 = vmatmul.bf16.gmra.mxu1 %v7212_v28  ;;  %v2589_v21 = vpack.c.b16 %v2571_v2, %v2570_v47  ;;  %v2515_v28 = vrot.slane %v8226_v60, 5  ;;  %4396 = vmatpush.bf16.msra.mxu2 %v7299_v22  ;;  %v2518_v60 = vrot.slane %v1524_v31, 5 }
 0x19a   : > { %v1278_v34 = vrot.slane %v1276_v25, 7  ;;  %v727_v36 = vadd.f32 %v8139_v29, %v726_v26  ;;  %v2378_v26 = vld [vmem:[#allocation2 + $0xa8] sm:$0xe]  ;;  %4083 = vmatpush.bf16.msra.mxu1 %v7273_v9  ;;  %v1459_v9 = vld [vmem:[#allocation2 + $0xc8] sm:$0x1] }
 0x19b   : > { %v2071_v41 = vpop.f32.mrf.mxu3  ;;  %v6605_v45 = vrot.slane %v2378_v26, 9  ;;  %v7296_v26 = vld [vmem:[%s9969_s5 + $0x188] sm:$0xff] }
 0x19c   : > { %v1281_v48 = vor.u32 %v1279_v11, %v1278_v34  ;;  %v1283_v49 = vrot.slane %v1278_v34, 4  ;;  %v761_v50 = vmax.f32 %v727_v36, 0.0  ;;  %v8224_v53 = vadd.f32 %v8163_v0, %v2071_v41  ;;  %3013 = vmatmul.bf16.gmra.mxu0 %v7246_v32 }
 0x19d   : > { %v1866_v0 = vshrl.u32 %v1490_v35, 16  ;;  %v1871_v11 = vrot.slane %v1869_v58, 5  ;;  %v1881_v34 = vrot.slane %v1879_v4, 4  ;;  %v1975_v41 = vpack.c.b16 %v1957_v14, %v1956_v1  ;;  %v7271_v58 = vld [vmem:[%s9969_s5 + $0x140] sm:$0xff] }
 0x19e   : > { %v1282_v55 = vsel %vm7665_vm8, %v1274_v33, %v1281_v48  ;;  %v1453_v63 = vsel %vm7542_vm2, %v1283_v49, %v1452_v40  ;;  %v1027_v37 = vpack.c.bf16 %v761_v50, %v761_v50  ;;  %v8250_v13 = vpop.f32.mrf.mxu1  ;;  %v8259_v33 = vrot.slane %v1875_v51, 5  ;;  %v7272_v40 = vld [vmem:[%s9969_s5 + $0x148] sm:$0xff] }
 0x19f   : > { %1451 = vst [vmem:[#allocation2 + $0xb8] sm:$0xf] %v1282_v55  ;;  %v8243_v10 = vpop.f32.mrf.mxu2  ;;  %v1868_v25 = vrot.slane %v1866_v0, 4  ;;  %v2517_v50 = vrot.slane %v2515_v28, 4  ;;  %4084 = vmatpush.bf16.msra.mxu1 %v7272_v40  ;;  %v1887_v14 = vrot.slane %v1885_v57, 5 }
 0x1a0   : > { %1454 = vst [vmem:[#allocation2 + $0xbc] sm:$0x1] %v1453_v63  ;;  %v1285_v7 = vshrl.u32 %v1027_v37, 16  ;;  %v1288_v8 = vshll.u32 %v1027_v37, 16  ;;  %v1882_v56 = vor.u32 %v1881_v34, %v8259_v33  ;;  %v7213_v63 = vld [vmem:[#allocation2 + $0xa8] sm:$0xff]  ;;  %v2516_v37 = vsel %vm7697_vm13, %v6605_v45, %v2515_v28 }
 0x1a1   : > { %v728_v12 = vpop.f32.mrf.mxu0  ;;  %v1872_v47 = vor.u32 %v1871_v11, %v1868_v25  ;;  %v1492_v25 = vld [vmem:[#allocation2 + $0xb4] sm:$0xf]  ;;  %v8294_v11 = vadd.f32 %v8150_v46, %v8177_v27  ;;  %v2572_v28 = vunpack.c.l.b16 %v2516_v37 }
 0x1a2   : > { %v8255_v17 = vrot.slane %v1285_v7, 7  ;;  %v729_v20 = vadd.f32 %v8139_v29, %v728_v12  ;;  %v7298_v29 = vld [vmem:[%s9969_s5 + $0x198] sm:$0xff]  ;;  %v7247_v7 = vld [vmem:[#allocation2 + $0x6c] sm:$0xff]  ;;  %v1883_v1 = vrot.slane %v1882_v56, 4  ;;  %v1893_v31 = vshll.u32 %v1492_v25, 16 }
 0x1a3   : > { %v2073_v24 = vpop.f32.mrf.mxu3  ;;  %4397 = vmatpush.bf16.msra.mxu2 %v7298_v29  ;;  %v1873_v2 = vrot.slane %v1872_v47, 4  ;;  %4085 = vmatpush.bf16.msra.mxu1 %v7271_v58 }
 0x1a4   : > { %v1290_v36 = vor.u32 %v1288_v8, %v8255_v17  ;;  %v762_v32 = vmax.f32 %v729_v20, 0.0  ;;  %v8263_v35 = vadd.f32 %v8189_v42, %v2073_v24  ;;  %2729 = vmatmul.bf16.gmra.mxu2 %v2589_v21  ;;  %v1291_v51 = vrot.slane %v8255_v17, 4 }
 0x1a5   : > { %v2519_v8 = vsel %vm7697_vm13, %v2517_v50, %v2518_v60  ;;  %v1878_v24 = vsel %vm7713_vm14, %v1873_v2, %v8259_v33  ;;  %v7295_v33 = vld [vmem:[%s9969_s5 + $0x180] sm:$0xff]  ;;  %v2379_v60 = vld [vmem:[#allocation2 + $0xb4] sm:$0xe] }
 0x1a6   : > { %v1456_v48 = vsel %vm7652_vm6, %v1290_v36, %v1455_v23  ;;  %v1028_v49 = vpack.c.bf16 %v762_v32, %v762_v32  ;;  %v8276_v0 = vpop.f32.mrf.mxu1  ;;  %v1493_v21 = vld [vmem:[#allocation2 + $0xb8] sm:$0xf]  ;;  %v2573_v23 = vunpack.c.l.b16 %v2519_v8  ;;  %v1888_v36 = vsel %vm7713_vm14, %v1883_v1, %v1887_v14  ;;  %v3092_v8 = vld [vmem:[#allocation2 + $0x10] sm:$0xf]  ;;  %v8335_v1 = vld [vmem:[#allocation2 + $0x14] sm:$0x1] }
 0x1a7   : > { %1457 = vst [vmem:[#allocation2 + $0xc0] sm:$0xf] %v1456_v48  ;;  %v8273_v42 = vpop.f32.mrf.mxu2  ;;  %4398 = vmatpush.bf16.msra.mxu2 %v7297_v19  ;;  %v1899_v32 = vshll.u32 %v1493_v21, 16  ;;  %v1903_v29 = vshrl.u32 %v1493_v21, 16  ;;  %v1959_v47 = vunpack.c.l.b16 %v1888_v36  ;;  %v2522_v56 = vrot.slane %v1493_v21, 5  ;;  %v7310_v36 = vld [vmem:[%s9969_s5 + $0x1f8] sm:$0xff] }
 0x1a8   : > { %v1293_v44 = vshrl.u32 %v1028_v49, 16  ;;  %v1296_v59 = vshll.u32 %v1028_v49, 16  ;;  %2115 = vmatmul.bf16.gmra.mxu3 %v1975_v41  ;;  %v2590_v40 = vpack.c.b16 %v2573_v23, %v2572_v28  ;;  %v1958_v41 = vunpack.c.l.b16 %v1878_v24  ;;  %v1525_v58 = vld [vmem:[#allocation2 + $0xbc] sm:$0x1]  ;;  %v3773_v14 = vld [vmem:[#allocation2 + $0xc] sm:$0xe]  ;;  %5075 = vmatpush.bf16.msra.mxu0 %v7310_v36 }
 0x1a9   : > { %v2979_v55 = vpop.f32.mrf.mxu0  ;;  %2353 = vmatmul.bf16.gmra.mxu1 %v7213_v63  ;;  %v1895_v49 = vrot.slane %v1893_v31, 5  ;;  %v1901_v57 = vrot.slane %v1899_v32, 5  ;;  %v2524_v2 = vrot.slane %v2522_v56, 4  ;;  %v3091_v21 = vld [vmem:[#allocation2 + $0xc] sm:$0xf]  ;;  %v3842_v31 = vrot.slane %v8335_v1, 5 }
 0x1aa   : > { %v1295_v4 = vrot.slane %v1293_v44, 7  ;;  %v8288_v22 = vadd.f32 %v2979_v55, %v8042_v39  ;;  %v1905_v44 = vrot.slane %v1903_v29, 4  ;;  %v6606_v55 = vrot.slane %v2379_v60, 9  ;;  %v7249_v36 = vld [vmem:[#allocation2 + $0x84] sm:$0xff] }
 0x1ab   : > { %v2076_v12 = vpop.f32.mrf.mxu3  ;;  %4399 = vmatpush.bf16.msra.mxu2 %v7296_v26  ;;  %v3140_v32 = vshrl.u32 %v3091_v21, 16  ;;  %v3143_v29 = vshll.u32 %v3091_v21, 16 }
 0x1ac   : > { %9999 = vst [vmem:[#allocation4_spill] sm:$0xff] %v8288_v22  ;;  %v1298_v17 = vor.u32 %v1296_v59, %v1295_v4  ;;  %v1300_v20 = vrot.slane %v1295_v4, 4  ;;  %v8297_v39 = vadd.f32 %v8209_v16, %v2076_v12  ;;  %3018 = vmatmul.bf16.gmra.mxu0 %v7247_v7  ;;  %v1890_v16 = vshrl.u32 %v1492_v25, 16  ;;  %v7214_v12 = vld [vmem:[#allocation2 + $0xb4] sm:$0xff] }
 0x1ad   : > { %v8323_v59 = vadd.f32 %v8185_v38, %v8199_v3  ;;  %v1906_v4 = vor.u32 %v1905_v44, %v1901_v57  ;;  %v1909_v7 = vshll.u32 %v1525_v58, 16  ;;  %v3839_v38 = vrot.slane %v3092_v8, 5  ;;  %v7318_v3 = vld [vmem:[%s9969_s5 + $0x238] sm:$0xff] }
 0x1ae   : > { %v1299_v46 = vsel %vm7665_vm8, %v1291_v51, %v1298_v17  ;;  %v1460_v27 = vsel %vm7542_vm2, %v1300_v20, %v1459_v9  ;;  %v8316_v43 = vpop.f32.mrf.mxu1  ;;  %v1892_v48 = vrot.slane %v1890_v16, 4  ;;  %v2525_v51 = vrot.slane %v1525_v58, 5  ;;  %v7248_v17 = vld [vmem:[#allocation2 + $0x78] sm:$0xff]  ;;  %5501 = vmatpush.bf16.msra.mxu3 %v7318_v3 }
 0x1af   : > { %1458 = vst [vmem:[#allocation2 + $0xc4] sm:$0xf] %v1299_v46  ;;  %v8309_v34 = vpop.f32.mrf.mxu2  ;;  %4400 = vmatpush.bf16.msra.mxu2 %v7295_v33  ;;  %v2523_v28 = vsel %vm7697_vm13, %v6606_v55, %v2522_v56  ;;  %v1907_v24 = vrot.slane %v1906_v4, 4  ;;  %v1911_v46 = vrot.slane %v1909_v7, 5  ;;  %v3841_v16 = vrot.slane %v3839_v38, 4 }
 0x1b0   : > { %1461 = vst [vmem:[#allocation2 + $0xc8] sm:$0x1] %v1460_v27  ;;  %v1896_v63 = vor.u32 %v1895_v49, %v1892_v48  ;;  %v2526_v23 = vsel %vm7697_vm13, %v2524_v2, %v2525_v51  ;;  %v3149_v33 = vshll.u32 %v3092_v8, 16  ;;  %v3142_v44 = vrot.slane %v3140_v32, 4 }
 0x1b1   : > { %v2981_v18 = vpop.f32.mrf.mxu0  ;;  %v1912_v48 = vsel %vm7713_vm14, %v1907_v24, %v1911_v46  ;;  %v3843_v60 = vsel %vm7697_vm13, %v3841_v16, %v3842_v31  ;;  %v3145_v58 = vrot.slane %v3143_v29, 5 }
 0x1b2   : > { %v8319_v45 = vadd.f32 %v2981_v18, %v8060_v5  ;;  %v1976_v5 = vpack.c.b16 %v1959_v47, %v1958_v41  ;;  %v1897_v20 = vrot.slane %v1896_v63, 4  ;;  %v3153_v18 = vshrl.u32 %v3092_v8, 16 }
 0x1b3   : > { %v2078_v50 = vpop.f32.mrf.mxu3  ;;  %v2575_v41 = vunpack.c.l.b16 %v2526_v23  ;;  %v1961_v51 = vunpack.c.l.b16 %v1912_v48  ;;  %v3146_v3 = vor.u32 %v3145_v58, %v3142_v44  ;;  %v5196_v58 = vld [vmem:[#allocation2 + $0x18] sm:$0xe] }
 0x1b4   : > { %10000 = vst [vmem:[#allocation5_spill] sm:$0xff] %v8319_v45  ;;  %v8326_v19 = vadd.f32 %v8250_v13, %v2078_v50  ;;  %2734 = vmatmul.bf16.gmra.mxu2 %v2590_v40  ;;  %v2574_v40 = vunpack.c.l.b16 %v2523_v28  ;;  %v3155_v55 = vrot.slane %v3153_v18, 4  ;;  %v4517_v45 = vld [vmem:[#allocation2 + $0x24] sm:$0xf] }
 0x1b5   : > { %v3147_v46 = vrot.slane %v3146_v3, 4  ;;  %v8401_v3 = vld [vmem:[#allocation2 + $0x1c] sm:$0xf] }
 0x1b6   : > { %v8330_v9 = vpop.f32.mrf.mxu1 }
 0x1b7   : > { %v8328_v37 = vpop.f32.mrf.mxu2 }
 0x1b8   : > { %2120 = vmatmul.bf16.gmra.mxu3 %v1976_v5  ;;  %v3151_v5 = vrot.slane %v3149_v33, 5 }
 0x1b9   : > { %v2984_v13 = vpop.f32.mrf.mxu0  ;;  %2358 = vmatmul.bf16.gmra.mxu1 %v7214_v12  ;;  %v3095_v12 = vld [vmem:[#allocation2 + $0x1c] sm:$0xf] }
 0x1ba   : > { %v8338_v25 = vadd.f32 %v2984_v13, %v8094_v61  ;;  %v6815_v61 = vrot.slane %v3773_v14, 9  ;;  %v3156_v13 = vor.u32 %v3155_v55, %v3151_v5  ;;  %v3846_v21 = vrot.slane %v3095_v12, 5 }
 0x1bb   : > { %v2081_v26 = vpop.f32.mrf.mxu3 }
 0x1bc   : > { %10001 = vst [vmem:[#allocation6_spill] sm:$0xff] %v8338_v25  ;;  %v8345_v27 = vadd.f32 %v8276_v0, %v2081_v26  ;;  %3023 = vmatmul.bf16.gmra.mxu0 %v7248_v17  ;;  %v1902_v0 = vsel %vm7713_vm14, %v1897_v20, %v1901_v57  ;;  %v3840_v50 = vsel %vm7697_vm13, %v6815_v61, %v3839_v38  ;;  %v3967_v38 = vunpack.c.l.b16 %v3843_v60  ;;  %v3774_v20 = vld [vmem:[#allocation2 + $0x18] sm:$0xe]  ;;  %v8372_v26 = vld [vmem:[#allocation2 + $0x20] sm:$0x1] }
 0x1bd   : > { %v2591_v57 = vpack.c.b16 %v2575_v41, %v2574_v40  ;;  %v1960_v2 = vunpack.c.l.b16 %v1902_v0  ;;  %v3966_v8 = vunpack.c.l.b16 %v3840_v50  ;;  %v3159_v17 = vshll.u32 %v8335_v1, 16 }
 0x1be   : > { %v8357_v49 = vpop.f32.mrf.mxu1  ;;  %v3157_v61 = vrot.slane %v3156_v13, 4  ;;  %v6816_v16 = vrot.slane %v3774_v20, 9  ;;  %v3848_v32 = vrot.slane %v3846_v21, 4  ;;  %v3849_v29 = vrot.slane %v8372_v26, 5  ;;  %v8403_v13 = vld [vmem:[#allocation2 + $0x20] sm:$0x1] }
 0x1bf   : > { %v8351_v47 = vpop.f32.mrf.mxu2  ;;  %v1977_v14 = vpack.c.b16 %v1961_v51, %v1960_v2  ;;  %v3998_v24 = vpack.c.b16 %v3967_v38, %v3966_v8  ;;  %v3161_v1 = vrot.slane %v3159_v17, 5  ;;  %v3173_v41 = vshll.u32 %v3095_v12, 16  ;;  %v7279_v17 = vld [vmem:[#allocation2 + $0x18] sm:$0xff] }
 0x1c0   : > { %v3177_v0 = vshrl.u32 %v3095_v12, 16  ;;  %v8385_v50 = vadd.f32 %v8207_v6, %v8224_v53  ;;  %v3850_v44 = vsel %vm7697_vm13, %v3848_v32, %v3849_v29  ;;  %v5197_v53 = vld [vmem:[#allocation2 + $0x24] sm:$0xe]  ;;  %v7039_v12 = vrot.slane %v5196_v58, 9  ;;  %v8422_v29 = vld [vmem:[#allocation2 + $0x28] sm:$0xf] }
 0x1c1   : > { %v2986_v56 = vpop.f32.mrf.mxu0  ;;  %v3162_v60 = vsel %vm7713_vm14, %v3157_v61, %v3161_v1  ;;  %v8397_v2 = vrot.slane %v3173_v41, 5  ;;  %v3969_v20 = vunpack.c.l.b16 %v3850_v44  ;;  %v3183_v61 = vshll.u32 %v8372_v26, 16  ;;  %v3775_v41 = vld [vmem:[#allocation2 + $0x24] sm:$0xe] }
 0x1c2   : > { %v8364_v63 = vadd.f32 %v2986_v56, %v8106_v54  ;;  %v3847_v56 = vsel %vm7697_vm13, %v6816_v16, %v3846_v21  ;;  %v3179_v6 = vrot.slane %v3177_v0, 4  ;;  %v3541_v8 = vunpack.c.l.b16 %v3162_v60  ;;  %v8411_v16 = vld [vmem:[#allocation2 + $0x28] sm:$0xf]  ;;  %v3097_v0 = vld [vmem:[#allocation2 + $0x24] sm:$0xf] }
 0x1c3   : > { %v2083_v4 = vpop.f32.mrf.mxu3  ;;  %v3968_v38 = vunpack.c.l.b16 %v3847_v56  ;;  %v5262_v21 = vrot.slane %v8401_v3, 5  ;;  %v5265_v1 = vrot.slane %v8403_v13, 5  ;;  %v5269_v32 = vrot.slane %v8411_v16, 5 }
 0x1c4   : > { %10002 = vst [vmem:[#allocation7_spill] sm:$0xff] %v8364_v63  ;;  %v8367_v7 = vadd.f32 %v8316_v43, %v2083_v4  ;;  %2739 = vmatmul.bf16.gmra.mxu2 %v2591_v57  ;;  %v3094_v43 = vld [vmem:[#allocation2 + $0x18] sm:$0xf]  ;;  %v3185_v44 = vrot.slane %v3183_v61, 5  ;;  %v3853_v58 = vrot.slane %v8422_v29, 5 }
 0x1c5   : > { %v3164_v18 = vshrl.u32 %v3094_v43, 16  ;;  %v3167_v40 = vshll.u32 %v3094_v43, 16  ;;  %v7040_v43 = vrot.slane %v5197_v53, 9  ;;  %v5263_v26 = vsel %vm7697_vm13, %v7039_v12, %v5262_v21 }
 0x1c6   : > { %v8374_v28 = vpop.f32.mrf.mxu1  ;;  %v6817_v12 = vrot.slane %v3775_v41, 9  ;;  %v8451_v41 = vld [vmem:[#allocation2 + $0x38] sm:$0x1] }
 0x1c7   : > { %v8370_v54 = vpop.f32.mrf.mxu2  ;;  %v3166_v55 = vrot.slane %v3164_v18, 4  ;;  %v3169_v57 = vrot.slane %v3167_v40, 5  ;;  %v8426_v18 = vld [vmem:[#allocation2 + $0x2c] sm:$0x1]  ;;  %v3999_v40 = vpack.c.b16 %v3969_v20, %v3968_v38  ;;  %v3188_v20 = vshrl.u32 %v3097_v0, 16 }
 0x1c8   : > { %2125 = vmatmul.bf16.gmra.mxu3 %v1977_v14 }
 0x1c9   : > { %v2989_v23 = vpop.f32.mrf.mxu0  ;;  %4086 = vmatmul.bf16.vlgmr.msra.gmra.mxu1 %v3998_v24  ;;  %v3170_v24 = vor.u32 %v3169_v57, %v3166_v55  ;;  %v5198_v55 = vld [vmem:[#allocation2 + $0x30] sm:$0xe] }
 0x1ca   : > { %v8377_v31 = vadd.f32 %v2989_v23, %v8129_v15  ;;  %v3152_v15 = vsel %vm7713_vm14, %v3147_v46, %v3151_v5  ;;  %v3180_v46 = vor.u32 %v3179_v6, %v8397_v2  ;;  %v7317_v6 = vld [vmem:[%s9969_s5 + $0x230] sm:$0xff] }
 0x1cb   : > { %v2086_v33 = vpop.f32.mrf.mxu3  ;;  %v3540_v4 = vunpack.c.l.b16 %v3152_v15  ;;  %v5264_v15 = vrot.slane %v5262_v21, 4  ;;  %v3171_v60 = vrot.slane %v3170_v24, 4  ;;  %5502 = vmatpush.bf16.msra.mxu3 %v7317_v6  ;;  %v8447_v24 = vld [vmem:[#allocation2 + $0x34] sm:$0xf]  ;;  %v3197_v6 = vshll.u32 %v8422_v29, 16 }
 0x1cc   : > { %10003 = vst [vmem:[#allocation8_spill] sm:$0xff] %v8377_v31  ;;  %v8381_v48 = vadd.f32 %v8330_v9, %v2086_v33  ;;  %3028 = vmatmul.bf16.gmra.mxu0 %v7249_v36  ;;  %v8424_v33 = vld [vmem:[#allocation2 + $0x2c] sm:$0x1]  ;;  %v3181_v56 = vrot.slane %v3180_v46, 4 }
 0x1cd   : > { %v5266_v53 = vsel %vm7697_vm13, %v5264_v15, %v5265_v1  ;;  %v7041_v1 = vrot.slane %v5198_v55, 9  ;;  %v3201_v55 = vshrl.u32 %v8422_v29, 16  ;;  %v3854_v29 = vsel %vm7697_vm13, %v6817_v12, %v3853_v58 }
 0x1ce   : > { %v8399_v51 = vpop.f32.mrf.mxu1  ;;  %v5390_v46 = vunpack.c.l.b16 %v5266_v53  ;;  %v8460_v53 = vadd.f32 %v8273_v42, %v8297_v39  ;;  %v3176_v42 = vsel %vm7713_vm14, %v3171_v60, %v8397_v2  ;;  %v3186_v39 = vsel %vm7713_vm14, %v3181_v56, %v3185_v44  ;;  %v7280_v44 = vld [vmem:[#allocation2 + $0x24] sm:$0xff] }
 0x1cf   : > { %v8395_v9 = vpop.f32.mrf.mxu2  ;;  %v3203_v2 = vrot.slane %v3201_v55, 4  ;;  %v3543_v12 = vunpack.c.l.b16 %v3186_v39  ;;  %v3207_v55 = vshll.u32 %v8424_v33, 16 }
 0x1d1   : > { %v2991_v5 = vpop.f32.mrf.mxu0 }
 0x1d2   : > { %v8406_v14 = vadd.f32 %v2991_v5, %v8161_v62  ;;  %v8418_v62 = vadd.f32 %v8243_v10, %v8263_v35  ;;  %v5270_v10 = vsel %vm7697_vm13, %v7040_v43, %v5269_v32  ;;  %v5389_v5 = vunpack.c.l.b16 %v5263_v26 }
 0x1d3   : > { %v2088_v23 = vpop.f32.mrf.mxu3  ;;  %v5391_v21 = vunpack.c.l.b16 %v5270_v10  ;;  %v3855_v26 = vrot.slane %v3853_v58, 4  ;;  %v5276_v10 = vrot.slane %v8447_v24, 5  ;;  %v3542_v58 = vunpack.c.l.b16 %v3176_v42 }
 0x1d4   : > { %10004 = vst [vmem:[#allocation9_spill] sm:$0xff] %v8406_v14  ;;  %v8414_v36 = vadd.f32 %v8357_v49, %v2088_v23  ;;  %4401 = vmatmul.bf16.vlgmr.msra.gmra.mxu2 %v7279_v17  ;;  %v3572_v49 = vpack.c.b16 %v3541_v8, %v3540_v4  ;;  %v5271_v4 = vrot.slane %v5269_v32, 4  ;;  %v5272_v8 = vrot.slane %v8426_v18, 5  ;;  %v7250_v23 = vld [vmem:[#allocation2 + $0x90] sm:$0xff] }
 0x1d5   : > { %v3856_v17 = vrot.slane %v8424_v33, 5 }
 0x1d6   : > { %v8435_v57 = vpop.f32.mrf.mxu1  ;;  %v5273_v61 = vsel %vm7697_vm13, %v5271_v4, %v5272_v8  ;;  %v5278_v8 = vrot.slane %v5276_v10, 4 }
 0x1d7   : > { %v8432_v35 = vpop.f32.mrf.mxu2  ;;  %v5392_v15 = vunpack.c.l.b16 %v5273_v61 }
 0x1d8   : > { %3660 = vmatmul.bf16.vlgmr.msrb.gmra.mxu3 %v3572_v49  ;;  %v3191_v49 = vshll.u32 %v3097_v0, 16  ;;  %v8465_v0 = vpack.c.b16 %v5390_v46, %v5389_v5  ;;  %v3190_v46 = vrot.slane %v3188_v20, 4 }
 0x1d9   : > { %v2994_v38 = vpop.f32.mrf.mxu0  ;;  %4091 = vmatmul.bf16.gmra.mxu1 %v3999_v40  ;;  %v7309_v40 = vld [vmem:[%s9969_s5 + $0x1f0] sm:$0xff]  ;;  %v8468_v4 = vpack.c.b16 %v5392_v15, %v5391_v21  ;;  %v3857_v21 = vsel %vm7697_vm13, %v3855_v26, %v3856_v17  ;;  %v8498_v26 = vadd.f32 %v8309_v34, %v8326_v19 }
 0x1da   : > { %v8445_v43 = vadd.f32 %v2994_v38, %v8294_v11  ;;  %10006 = vst [vmem:[#allocation11_spill] sm:$0xff] %v8465_v0  ;;  %5076 = vmatpush.bf16.msra.mxu0 %v7309_v40  ;;  %v5279_v38 = vrot.slane %v8451_v41, 5  ;;  %v3193_v15 = vrot.slane %v3191_v49, 5  ;;  %v3971_v20 = vunpack.c.l.b16 %v3857_v21  ;;  %v3100_v21 = vld [vmem:[#allocation2 + $0x30] sm:$0xf] }
 0x1db   : > { %v2091_v32 = vpop.f32.mrf.mxu3  ;;  %10007 = vst [vmem:[#allocation12_spill] sm:$0xff] %v8468_v4  ;;  %v3970_v4 = vunpack.c.l.b16 %v3854_v29 }
 0x1dc   : > { %10005 = vst [vmem:[#allocation10_spill] sm:$0xff] %v8445_v43  ;;  %v8455_v11 = vadd.f32 %v8374_v28, %v2091_v32  ;;  %3033 = vmatmul.bf16.gmra.mxu0 %v7250_v23  ;;  %v5277_v28 = vsel %vm7697_vm13, %v7041_v1, %v5276_v10  ;;  %v5280_v61 = vsel %vm7697_vm13, %v5278_v8, %v5279_v38  ;;  %v8488_v10 = vrot.slane %v3197_v6, 5  ;;  %v8506_v8 = vld [vmem:[#allocation2 + $0x44] sm:$0x1]  ;;  %v7282_v43 = vld [vmem:[#allocation2 + $0x3c] sm:$0xff] }
 0x1dd   : > { %v5393_v1 = vunpack.c.l.b16 %v5277_v28  ;;  %v5394_v60 = vunpack.c.l.b16 %v5280_v61  ;;  %v3194_v6 = vor.u32 %v3193_v15, %v3190_v46  ;;  %v8504_v28 = vld [vmem:[#allocation2 + $0x40] sm:$0xf]  ;;  %v3573_v38 = vpack.c.b16 %v3543_v12, %v3542_v58  ;;  %v8519_v12 = vld [vmem:[#allocation2 + $0x38] sm:$0x1] }
 0x1de   : > { %v8482_v5 = vpop.f32.mrf.mxu1  ;;  %v5283_v42 = vrot.slane %v8504_v28, 5  ;;  %v4000_v19 = vpack.c.b16 %v3971_v20, %v3970_v4  ;;  %v5286_v61 = vrot.slane %v8506_v8, 5  ;;  %v3209_v15 = vrot.slane %v3207_v55, 5  ;;  %v7251_v58 = vld [vmem:[#allocation2 + $0x9c] sm:$0xff] }
 0x1df   : > { %v8473_v23 = vpop.f32.mrf.mxu2  ;;  %v8500_v49 = vpack.c.b16 %v5394_v60, %v5393_v1  ;;  %v3195_v1 = vrot.slane %v3194_v6, 4  ;;  %v3212_v6 = vshrl.u32 %v3100_v21, 16 }
 0x1e0   : > { %v5285_v46 = vrot.slane %v5283_v42, 4 }
 0x1e1   : > { %v2996_v32 = vpop.f32.mrf.mxu0  ;;  %10009 = vst [vmem:[#allocation14_spill] sm:$0xff] %v8500_v49 }
 0x1e2   : > { %v8491_v56 = vadd.f32 %v2996_v32, %v8323_v59  ;;  %v3204_v59 = vor.u32 %v3203_v2, %v8488_v10  ;;  %v3101_v2 = vld [vmem:[#allocation2 + $0x34] sm:$0xf]  ;;  %v5287_v20 = vsel %vm7697_vm13, %v5285_v46, %v5286_v61  ;;  %v3863_v46 = vrot.slane %v8519_v12, 5 }
 0x1e3   : > { %v2093_v40 = vpop.f32.mrf.mxu3  ;;  %v3860_v4 = vrot.slane %v3101_v2, 5  ;;  %v5396_v55 = vunpack.c.l.b16 %v5287_v20 }
 0x1e4   : > { %10008 = vst [vmem:[#allocation13_spill] sm:$0xff] %v8491_v56  ;;  %v8494_v17 = vadd.f32 %v8399_v51, %v2093_v40  ;;  %4406 = vmatmul.bf16.gmra.mxu2 %v7280_v44  ;;  %v5199_v51 = vld [vmem:[#allocation2 + $0x3c] sm:$0xe]  ;;  %v3205_v32 = vrot.slane %v3204_v59, 4  ;;  %v3776_v40 = vld [vmem:[#allocation2 + $0x30] sm:$0xe] }
 0x1e5   : > { %v7042_v29 = vrot.slane %v5199_v51, 9  ;;  %v3215_v59 = vshll.u32 %v3100_v21, 16  ;;  %v3862_v21 = vrot.slane %v3860_v4, 4 }
 0x1e6   : > { %v8511_v34 = vpop.f32.mrf.mxu1 }
 0x1e7   : > { %v8509_v39 = vpop.f32.mrf.mxu2  ;;  %v5284_v60 = vsel %vm7697_vm13, %v7042_v29, %v5283_v42  ;;  %v3200_v42 = vsel %vm7713_vm14, %v3195_v1, %v8488_v10  ;;  %v6818_v29 = vrot.slane %v3776_v40, 9 }
 0x1e8   : > { %3665 = vmatmul.bf16.gmra.mxu3 %v3573_v38  ;;  %v5395_v38 = vunpack.c.l.b16 %v5284_v60 }
 0x1e9   : > { %v2999_v33 = vpop.f32.mrf.mxu0  ;;  %4096 = vmatmul.bf16.gmra.mxu1 %v4000_v19  ;;  %v3210_v19 = vsel %vm7713_vm14, %v3205_v32, %v3209_v15  ;;  %v3861_v1 = vsel %vm7697_vm13, %v6818_v29, %v3860_v4  ;;  %v3864_v32 = vsel %vm7697_vm13, %v3862_v21, %v3863_v46  ;;  %v3231_v46 = vshll.u32 %v8519_v12, 16 }
 0x1ea   : > { %v8517_v44 = vadd.f32 %v2999_v33, %v8385_v50  ;;  %v8528_v50 = vadd.f32 %v8328_v37, %v8345_v27  ;;  %v8534_v61 = vpack.c.b16 %v5396_v55, %v5395_v38  ;;  %v3225_v33 = vshrl.u32 %v3101_v2, 16  ;;  %v7281_v38 = vld [vmem:[#allocation2 + $0x30] sm:$0xff] }
 0x1eb   : > { %v2096_v51 = vpop.f32.mrf.mxu3  ;;  %v3217_v37 = vrot.slane %v3215_v59, 5  ;;  %v3545_v10 = vunpack.c.l.b16 %v3210_v19  ;;  %v3972_v4 = vunpack.c.l.b16 %v3861_v1  ;;  %v3103_v1 = vld [vmem:[#allocation2 + $0x3c] sm:$0xf] }
 0x1ec   : > { %10010 = vst [vmem:[#allocation15_spill] sm:$0xff] %v8517_v44  ;;  %v8524_v49 = vadd.f32 %v8435_v57, %v2096_v51  ;;  %3038 = vmatmul.bf16.gmra.mxu0 %v7251_v58  ;;  %v3221_v57 = vshll.u32 %v3101_v2, 16  ;;  %v3214_v58 = vrot.slane %v3212_v6, 4  ;;  %v3544_v51 = vunpack.c.l.b16 %v3200_v42 }
 0x1ed   : > { %10011 = vst [vmem:[#allocation16_spill] sm:$0xff] %v8534_v61  ;;  %v3227_v2 = vrot.slane %v3225_v33, 4  ;;  %v8556_v42 = vadd.f32 %v8351_v47, %v8367_v7  ;;  %v3104_v33 = vld [vmem:[#allocation2 + $0x40] sm:$0xf]  ;;  %v3777_v47 = vld [vmem:[#allocation2 + $0x3c] sm:$0xe] }
 0x1ee   : > { %v8540_v27 = vpop.f32.mrf.mxu1  ;;  %v8549_v15 = vrot.slane %v3221_v57, 5  ;;  %v3218_v59 = vor.u32 %v3217_v37, %v3214_v58  ;;  %v3574_v29 = vpack.c.b16 %v3545_v10, %v3544_v51  ;;  %v5200_v58 = vld [vmem:[#allocation2 + $0x48] sm:$0xe]  ;;  %v3867_v10 = vrot.slane %v3104_v33, 5  ;;  %v8577_v61 = vld [vmem:[#allocation2 + $0x44] sm:$0x1] }
 0x1ef   : > { %v8538_v60 = vpop.f32.mrf.mxu2  ;;  %v7316_v7 = vld [vmem:[%s9969_s5 + $0x228] sm:$0xff] }
 0x1f0   : > { %v3228_v19 = vor.u32 %v3227_v2, %v8549_v15  ;;  %v3219_v57 = vrot.slane %v3218_v59, 4  ;;  %5503 = vmatpush.bf16.msra.mxu3 %v7316_v7  ;;  %v7307_v7 = vld [vmem:[%s9969_s5 + $0x1e0] sm:$0xff] }
 0x1f1   : > { %v3001_v20 = vpop.f32.mrf.mxu0 }
 0x1f2   : > { %v8545_v40 = vadd.f32 %v3001_v20, %v8418_v62  ;;  %v3973_v62 = vunpack.c.l.b16 %v3864_v32  ;;  %v8570_v20 = vld [vmem:[#allocation2 + $0x50] sm:$0x1]  ;;  %v7043_v32 = vrot.slane %v5200_v58, 9  ;;  %v3229_v59 = vrot.slane %v3228_v19, 4 }
 0x1f3   : > { %v2098_v6 = vpop.f32.mrf.mxu3  ;;  %10013 = vst [vmem:[#allocation18_spill] sm:$0xff] %v8570_v20  ;;  %v3236_v19 = vshrl.u32 %v3103_v1, 16  ;;  %v8589_v58 = vadd.f32 %v8370_v54, %v8381_v48  ;;  %v7306_v48 = vld [vmem:[%s9969_s5 + $0x1d8] sm:$0xff] }
 0x1f4   : > { %10012 = vst [vmem:[#allocation17_spill] sm:$0xff] %v8545_v40  ;;  %v8552_v55 = vadd.f32 %v8482_v5, %v2098_v6  ;;  %4411 = vmatmul.bf16.gmra.mxu2 %v7281_v38  ;;  %v7308_v5 = vld [vmem:[%s9969_s5 + $0x1e8] sm:$0xff]  ;;  %v4001_v51 = vpack.c.b16 %v3973_v62, %v3972_v4  ;;  %v3224_v4 = vsel %vm7713_vm14, %v3219_v57, %v8549_v15  ;;  %v6819_v62 = vrot.slane %v3777_v47, 9 }
 0x1f5   : > { %5077 = vmatpush.bf16.msra.mxu0 %v7308_v5  ;;  %v8572_v38 = vld [vmem:[#allocation2 + $0x4c] sm:$0xf]  ;;  %v5293_v5 = vrot.slane %v8570_v20, 5  ;;  %v3870_v15 = vrot.slane %v8577_v61, 5 }
 0x1f6   : > { %v8565_v37 = vpop.f32.mrf.mxu1  ;;  %10014 = vst [vmem:[#allocation19_spill] sm:$0xff] %v8572_v38  ;;  %v7252_v6 = vld [vmem:[#allocation2 + $0xa8] sm:$0xff]  ;;  %v5290_v0 = vrot.slane %v8572_v38, 5 }
 0x1f7   : > { %v8560_v21 = vpop.f32.mrf.mxu2 }
 0x1f8   : > { %3670 = vmatmul.bf16.gmra.mxu3 %v3574_v29  ;;  %v3233_v29 = vrot.slane %v3231_v46, 5  ;;  %v3239_v46 = vshll.u32 %v3103_v1, 16  ;;  %v5291_v57 = vsel %vm7697_vm13, %v7043_v32, %v5290_v0  ;;  %v5292_v47 = vrot.slane %v5290_v0, 4 }
 0x1f9   : > { %v3004_v12 = vpop.f32.mrf.mxu0  ;;  %4101 = vmatmul.bf16.gmra.mxu1 %v4001_v51  ;;  %v3249_v51 = vshrl.u32 %v3104_v33, 16  ;;  %5078 = vmatpush.bf16.msra.mxu0 %v7307_v7  ;;  %v5397_v1 = vunpack.c.l.b16 %v5291_v57  ;;  %v3238_v32 = vrot.slane %v3236_v19, 4 }
 0x1fa   : > { %v8575_v2 = vadd.f32 %v3004_v12, %v8460_v53  ;;  %v3869_v12 = vrot.slane %v3867_v10, 4  ;;  %v3241_v0 = vrot.slane %v3239_v46, 5  ;;  %v3778_v46 = vld [vmem:[#allocation2 + $0x48] sm:$0xe] }
 0x1fb   : > { %v2101_v40 = vpop.f32.mrf.mxu3 }
 0x1fc   : > { %10015 = vst [vmem:[#allocation20_spill] sm:$0xff] %v8575_v2  ;;  %v8585_v53 = vadd.f32 %v8511_v34, %v2101_v40  ;;  %3043 = vmatmul.bf16.gmra.mxu0 %v7252_v6  ;;  %v3234_v34 = vsel %vm7713_vm14, %v3229_v59, %v3233_v29  ;;  %v3245_v40 = vshll.u32 %v3104_v33, 16  ;;  %v5294_v6 = vsel %vm7697_vm13, %v5292_v47, %v5293_v5 }
 0x1fd   : > { %v5398_v44 = vunpack.c.l.b16 %v5294_v6  ;;  %v3546_v59 = vunpack.c.l.b16 %v3224_v4  ;;  %v3547_v29 = vunpack.c.l.b16 %v3234_v34  ;;  %v3868_v33 = vsel %vm7697_vm13, %v6819_v62, %v3867_v10  ;;  %5079 = vmatpush.bf16.msra.mxu0 %v7306_v48  ;;  %v3107_v10 = vld [vmem:[#allocation2 + $0x4c] sm:$0xf] }
 0x1fe   : > { %v8606_v2 = vpop.f32.mrf.mxu1  ;;  %v3871_v7 = vsel %vm7697_vm13, %v3869_v12, %v3870_v15  ;;  %v3247_v14 = vrot.slane %v3245_v40, 5  ;;  %v3251_v5 = vrot.slane %v3249_v51, 4  ;;  %v3242_v34 = vor.u32 %v3241_v0, %v3238_v32 }
 0x1ff   : > { %v8599_v54 = vpop.f32.mrf.mxu2  ;;  %v8615_v47 = vpack.c.b16 %v5398_v44, %v5397_v1  ;;  %v8622_v62 = vadd.f32 %v8395_v9, %v8414_v36  ;;  %v3974_v12 = vunpack.c.l.b16 %v3868_v33  ;;  %v3975_v44 = vunpack.c.l.b16 %v3871_v7  ;;  %v8628_v1 = vld [vmem:[#allocation2 + $0x50] sm:$0x1]  ;;  %v7304_v9 = vld [vmem:[%s9969_s5 + $0x1c8] sm:$0xff] }
 0x200   : > { %v3874_v15 = vrot.slane %v3107_v10, 5  ;;  %v3575_v40 = vpack.c.b16 %v3547_v29, %v3546_v59  ;;  %v3252_v51 = vor.u32 %v3251_v5, %v3247_v14  ;;  %v3243_v0 = vrot.slane %v3242_v34, 4  ;;  %v7253_v5 = vld [vmem:[#allocation2 + $0xb4] sm:$0xff] }
 0x201   : > { %v3006_v56 = vpop.f32.mrf.mxu0  ;;  %10017 = vst [vmem:[#allocation22_spill] sm:$0xff] %v8615_v47  ;;  %v4002_v29 = vpack.c.b16 %v3975_v44, %v3974_v12  ;;  %v3269_v47 = vshll.u32 %v3107_v10, 16  ;;  %v3273_v12 = vshrl.u32 %v3107_v10, 16  ;;  %v8645_v44 = vld [vmem:[#allocation2 + $0x5c] sm:$0x1]  ;;  %v3279_v25 = vshll.u32 %v8628_v1, 16 }
 0x202   : > { %v8613_v57 = vadd.f32 %v3006_v56, %v8498_v26  ;;  %v7305_v56 = vld [vmem:[%s9969_s5 + $0x1d0] sm:$0xff]  ;;  %v3106_v26 = vld [vmem:[#allocation2 + $0x48] sm:$0xf]  ;;  %v3876_v33 = vrot.slane %v3874_v15, 4  ;;  %10019 = vst [vmem:[#allocation24_spill] sm:$0xff] %v8645_v44 }
 0x203   : > { %v2103_v19 = vpop.f32.mrf.mxu3  ;;  %5080 = vmatpush.bf16.msra.mxu0 %v7305_v56  ;;  %v3260_v36 = vshrl.u32 %v3106_v26, 16  ;;  %v3263_v6 = vshll.u32 %v3106_v26, 16  ;;  %v3281_v38 = vrot.slane %v3279_v25, 5 }
 0x204   : > { %10016 = vst [vmem:[#allocation21_spill] sm:$0xff] %v8613_v57  ;;  %v8618_v4 = vadd.f32 %v8540_v27, %v2103_v19  ;;  %4416 = vmatmul.bf16.gmra.mxu2 %v7282_v43  ;;  %v3255_v27 = vshll.u32 %v8577_v61, 16  ;;  %v6820_v43 = vrot.slane %v3778_v46, 9  ;;  %v3877_v61 = vrot.slane %v8628_v1, 5 }
 0x205   : > { %v3253_v19 = vrot.slane %v3252_v51, 4  ;;  %v3265_v34 = vrot.slane %v3263_v6, 5  ;;  %v7303_v51 = vld [vmem:[%s9969_s5 + $0x1c0] sm:$0xff] }
 0x206   : > { %v8635_v32 = vpop.f32.mrf.mxu1  ;;  %v3257_v46 = vrot.slane %v3255_v27, 5  ;;  %v8643_v56 = vsel %vm7697_vm13, %v6820_v43, %v3874_v15  ;;  %v8654_v15 = vadd.f32 %v8432_v35, %v8455_v11  ;;  %v3878_v10 = vsel %vm7697_vm13, %v3876_v33, %v3877_v61  ;;  %v8662_v43 = vld [vmem:[#allocation2 + $0x58] sm:$0xf]  ;;  %v8675_v61 = vld [vmem:[#allocation2 + $0x5c] sm:$0x1] }
 0x207   : > { %v8630_v48 = vpop.f32.mrf.mxu2  ;;  %5081 = vmatpush.bf16.msra.mxu0 %v7304_v9  ;;  %v3976_v27 = vunpack.c.l.b16 %v8643_v56  ;;  %v8664_v9 = vld [vmem:[#allocation2 + $0x58] sm:$0xf]  ;;  %v3881_v35 = vrot.slane %v8662_v43, 5  ;;  %v3275_v33 = vrot.slane %v3273_v12, 4  ;;  %v3884_v1 = vrot.slane %v8675_v61, 5 }
 0x208   : > { %3675 = vmatmul.bf16.gmra.mxu3 %v3575_v40  ;;  %v3262_v40 = vrot.slane %v3260_v36, 4  ;;  %10020 = vst [vmem:[#allocation25_spill] sm:$0xff] %v8664_v9  ;;  %v5297_v11 = vrot.slane %v8664_v9, 5  ;;  %v5300_v36 = vrot.slane %v8645_v44, 5 }
 0x209   : > { %v3009_v59 = vpop.f32.mrf.mxu0  ;;  %4106 = vmatmul.bf16.gmra.mxu1 %v4002_v29  ;;  %v8673_v29 = vrot.slane %v3269_v47, 5  ;;  %v4576_v47 = vshrl.u32 %v8401_v3, 16  ;;  %v3883_v44 = vrot.slane %v3881_v35, 4 }
 0x20a   : > { %v8639_v7 = vadd.f32 %v3009_v59, %v8528_v50  ;;  %v3248_v50 = vsel %vm7713_vm14, %v3243_v0, %v3247_v14  ;;  %v3258_v14 = vsel %vm7713_vm14, %v3253_v19, %v3257_v46  ;;  %v3266_v59 = vor.u32 %v3265_v34, %v3262_v40  ;;  %v7283_v34 = vld [vmem:[#allocation2 + $0x48] sm:$0xff] }
 0x20b   : > { %v2106_v26 = vpop.f32.mrf.mxu3  ;;  %5082 = vmatpush.bf16.msra.mxu0 %v7303_v51  ;;  %v3548_v0 = vunpack.c.l.b16 %v3248_v50  ;;  %v3977_v19 = vunpack.c.l.b16 %v3878_v10  ;;  %v5201_v51 = vld [vmem:[#allocation2 + $0x54] sm:$0xe]  ;;  %v3549_v63 = vunpack.c.l.b16 %v3258_v14  ;;  %v4572_v50 = vshll.u32 %v8401_v3, 16 }
 0x20c   : > { %10018 = vst [vmem:[#allocation23_spill] sm:$0xff] %v8639_v7  ;;  %v8648_v57 = vadd.f32 %v8565_v37, %v2106_v26  ;;  %3048 = vmatmul.bf16.gmra.mxu0 %v7253_v5  ;;  %v4514_v37 = vld [vmem:[#allocation2 + $0x18] sm:$0xf]  ;;  %v3779_v5 = vld [vmem:[#allocation2 + $0x54] sm:$0xe]  ;;  %v5299_v7 = vrot.slane %v5297_v11, 4  ;;  %v3276_v14 = vor.u32 %v3275_v33, %v8673_v29 }
 0x20d   : > { %v4563_v46 = vshrl.u32 %v4514_v37, 16  ;;  %v4566_v26 = vshll.u32 %v4514_v37, 16  ;;  %v6821_v12 = vrot.slane %v3779_v5, 9  ;;  %v3267_v22 = vrot.slane %v3266_v59, 4 }
 0x20e   : > { %v8677_v56 = vpop.f32.mrf.mxu1  ;;  %v8687_v10 = vsel %vm7697_vm13, %v5299_v7, %v5300_v36  ;;  %v7044_v9 = vrot.slane %v5201_v51, 9  ;;  %v8696_v5 = vadd.f32 %v8473_v23, %v8494_v17  ;;  %v4578_v7 = vrot.slane %v4576_v47, 4  ;;  %v3109_v23 = vld [vmem:[#allocation2 + $0x54] sm:$0xf] }
 0x20f   : > { %v8671_v6 = vpop.f32.mrf.mxu2  ;;  %v4587_v36 = vshrl.u32 %v4517_v45, 16  ;;  %v4590_v59 = vshll.u32 %v4517_v45, 16  ;;  %v3576_v20 = vpack.c.b16 %v3549_v63, %v3548_v0  ;;  %v4003_v33 = vpack.c.b16 %v3977_v19, %v3976_v27  ;;  %v7254_v63 = vld [vmem:[#allocation2 + $0xc0] sm:$0xff] }
 0x210   : > { %10021 = vst [vmem:[#allocation26_spill] sm:$0xff] %v8671_v6  ;;  %v3277_v51 = vrot.slane %v3276_v14, 4  ;;  %v5298_v17 = vsel %vm7697_vm13, %v7044_v9, %v5297_v11  ;;  %v3272_v25 = vsel %vm7713_vm14, %v3267_v22, %v8673_v29  ;;  %v4582_v27 = vshll.u32 %v8403_v13, 16 }
 0x211   : > { %v3011_v31 = vpop.f32.mrf.mxu0  ;;  %v4600_v0 = vshrl.u32 %v8411_v16, 16  ;;  %v4589_v11 = vrot.slane %v4587_v36, 4  ;;  %v3284_v22 = vshrl.u32 %v3109_v23, 16  ;;  %v5399_v13 = vunpack.c.l.b16 %v5298_v17 }
 0x212   : > { %v8683_v40 = vadd.f32 %v3011_v31, %v8556_v42  ;;  %v4565_v31 = vrot.slane %v4563_v46, 4  ;;  %v4568_v42 = vrot.slane %v4566_v26, 5  ;;  %v8708_v46 = vsel %vm7697_vm13, %v3883_v44, %v3884_v1 }
 0x213   : > { %v2108_v37 = vpop.f32.mrf.mxu3  ;;  %v4596_v44 = vshll.u32 %v8411_v16, 16  ;;  %v4592_v26 = vrot.slane %v4590_v59, 5  ;;  %v5400_v29 = vunpack.c.l.b16 %v8687_v10  ;;  %v3287_v16 = vshll.u32 %v3109_v23, 16 }
 0x214   : > { %10022 = vst [vmem:[#allocation27_spill] sm:$0xff] %v8683_v40  ;;  %v8692_v3 = vadd.f32 %v8606_v2, %v2108_v37  ;;  %4421 = vmatmul.bf16.gmra.mxu2 %v7283_v34  ;;  %v8698_v40 = vrot.slane %v4572_v50, 5  ;;  %v8704_v2 = vsel %vm7697_vm13, %v6821_v12, %v3881_v35  ;;  %v7315_v35 = vld [vmem:[%s9969_s5 + $0x220] sm:$0xff]  ;;  %v4569_v9 = vor.u32 %v4568_v42, %v4565_v31 }
 0x215   : > { %5504 = vmatpush.bf16.msra.mxu3 %v7315_v35  ;;  %v3282_v34 = vsel %vm7713_vm14, %v3277_v51, %v3281_v38  ;;  %v3293_v12 = vshll.u32 %v8662_v43, 16  ;;  %v3297_v37 = vshrl.u32 %v8662_v43, 16  ;;  %v8739_v1 = vrot.slane %v4596_v44, 5  ;;  %v4520_v51 = vld [vmem:[#allocation2 + $0x30] sm:$0xf] }
 0x216   : > { %v8712_v45 = vpop.f32.mrf.mxu1  ;;  %v4602_v10 = vrot.slane %v4600_v0, 4  ;;  %v3550_v31 = vunpack.c.l.b16 %v3272_v25  ;;  %v4570_v42 = vrot.slane %v4569_v9, 4  ;;  %v4584_v38 = vrot.slane %v4582_v27, 5  ;;  %v8741_v43 = vld [vmem:[#allocation2 + $0x64] sm:$0xf] }
 0x217   : > { %v8700_v6 = vpop.f32.mrf.mxu2  ;;  %v3551_v36 = vunpack.c.l.b16 %v3282_v34  ;;  %v3286_v59 = vrot.slane %v3284_v22, 4  ;;  %v3289_v17 = vrot.slane %v3287_v16, 5  ;;  %v5304_v25 = vrot.slane %v8741_v43, 5 }
 0x218   : > { %3680 = vmatmul.bf16.gmra.mxu3 %v3576_v20  ;;  %v4579_v20 = vor.u32 %v4578_v7, %v8698_v40  ;;  %v3978_v27 = vunpack.c.l.b16 %v8704_v2  ;;  %v3979_v44 = vunpack.c.l.b16 %v8708_v46  ;;  %v4603_v0 = vor.u32 %v4602_v10, %v8739_v1  ;;  %v7284_v2 = vld [vmem:[#allocation2 + $0x54] sm:$0xff]  ;;  %v5202_v46 = vld [vmem:[#allocation2 + $0x60] sm:$0xe] }
 0x219   : > { %v3014_v19 = vpop.f32.mrf.mxu0  ;;  %4111 = vmatmul.bf16.gmra.mxu1 %v4003_v33  ;;  %v4593_v33 = vor.u32 %v4592_v26, %v4589_v11  ;;  %v4611_v26 = vshrl.u32 %v4520_v51, 16  ;;  %v4614_v22 = vshll.u32 %v4520_v51, 16  ;;  %v3577_v16 = vpack.c.b16 %v3551_v36, %v3550_v31 }
 0x21a   : > { %v8725_v50 = vadd.f32 %v3014_v19, %v8589_v58  ;;  %v8737_v58 = vadd.f32 %v8509_v39, %v8524_v49  ;;  %v4580_v7 = vrot.slane %v4579_v20, 4  ;;  %v8747_v49 = vrot.slane %v3293_v12, 5 }
 0x21b   : > { %v2111_v47 = vpop.f32.mrf.mxu3  ;;  %v3299_v39 = vrot.slane %v3297_v37, 4  ;;  %v4606_v19 = vshll.u32 %v8426_v18, 16  ;;  %v4575_v20 = vsel %vm7713_vm14, %v4570_v42, %v8698_v40  ;;  %v3290_v12 = vor.u32 %v3289_v17, %v3286_v59 }
 0x21c   : > { %10023 = vst [vmem:[#allocation28_spill] sm:$0xff] %v8725_v50  ;;  %v8733_v14 = vadd.f32 %v8635_v32, %v2111_v47  ;;  %3053 = vmatmul.bf16.gmra.mxu0 %v7254_v63  ;;  %v8743_v32 = vpack.c.b16 %v5400_v29, %v5399_v13  ;;  %v8749_v63 = vld [vmem:[#allocation2 + $0x68] sm:$0x1]  ;;  %v4585_v11 = vsel %vm7713_vm14, %v4580_v7, %v4584_v38  ;;  %v4594_v29 = vrot.slane %v4593_v33, 4 }
 0x21d   : > { %v5306_v47 = vrot.slane %v5304_v25, 4  ;;  %v5307_v34 = vrot.slane %v8749_v63, 5  ;;  %v3300_v37 = vor.u32 %v3299_v39, %v8747_v49  ;;  %v3303_v40 = vshll.u32 %v8675_v61, 16 }
 0x21e   : > { %10024 = vst [vmem:[#allocation29_spill] sm:$0xff] %v8743_v32  ;;  %v8752_v35 = vpop.f32.mrf.mxu1  ;;  %v4604_v42 = vrot.slane %v4603_v0, 4  ;;  %v8774_v7 = vadd.f32 %v8538_v60, %v8552_v55  ;;  %v4963_v38 = vunpack.c.l.b16 %v4575_v20  ;;  %v4964_v33 = vunpack.c.l.b16 %v4585_v11 }
 0x21f   : > { %v8745_v23 = vpop.f32.mrf.mxu2  ;;  %v4613_v51 = vrot.slane %v4611_v26, 4  ;;  %v4599_v31 = vsel %vm7713_vm14, %v4594_v29, %v8739_v1  ;;  %v4616_v36 = vrot.slane %v4614_v22, 5  ;;  %v4620_v61 = vshll.u32 %v8447_v24, 16  ;;  %v3113_v26 = vld [vmem:[#allocation2 + $0x64] sm:$0xf] }
 0x220   : > { %v3291_v17 = vrot.slane %v3290_v12, 4  ;;  %v3301_v39 = vrot.slane %v3300_v37, 4  ;;  %v3305_v60 = vrot.slane %v3303_v40, 5  ;;  %v4624_v55 = vshrl.u32 %v8447_v24, 16  ;;  %v8804_v12 = vld [vmem:[#allocation2 + $0x68] sm:$0x1] }
 0x221   : > { %v3016_v9 = vpop.f32.mrf.mxu0  ;;  %v4995_v11 = vpack.c.b16 %v4964_v33, %v4963_v38  ;;  %v8789_v22 = vunpack.c.l.b16 %v4599_v31  ;;  %v4630_v29 = vshll.u32 %v8451_v41, 16 }
 0x222   : > { %v8764_v13 = vadd.f32 %v3016_v9, %v8622_v62  ;;  %v4608_v62 = vrot.slane %v4606_v19, 5  ;;  %v7045_v9 = vrot.slane %v5202_v46, 9  ;;  %v4004_v19 = vpack.c.b16 %v3979_v44, %v3978_v27 }
 0x223   : > { %v2113_v18 = vpop.f32.mrf.mxu3  ;;  %v4617_v27 = vor.u32 %v4616_v36, %v4613_v51  ;;  %v8797_v44 = vrot.slane %v4620_v61, 5  ;;  %v3306_v41 = vsel %vm7713_vm14, %v3301_v39, %v3305_v60  ;;  %v3317_v51 = vshll.u32 %v3113_v26, 16 }
 0x224   : > { %10025 = vst [vmem:[#allocation30_spill] sm:$0xff] %v8764_v13  ;;  %v8770_v10 = vadd.f32 %v8677_v56, %v2113_v18  ;;  %4426 = vmatmul.bf16.gmra.mxu2 %v7284_v2  ;;  %v5308_v56 = vsel %vm7697_vm13, %v5306_v47, %v5307_v34  ;;  %v4609_v1 = vsel %vm7713_vm14, %v4604_v42, %v4608_v62  ;;  %v3112_v2 = vld [vmem:[#allocation2 + $0x60] sm:$0xf]  ;;  %v3888_v34 = vrot.slane %v3113_v26, 5  ;;  %v4523_v62 = vld [vmem:[#allocation2 + $0x3c] sm:$0xf] }
 0x225   : > { %v5305_v46 = vsel %vm7697_vm13, %v7045_v9, %v5304_v25  ;;  %v3780_v47 = vld [vmem:[#allocation2 + $0x60] sm:$0xe]  ;;  %v8806_v25 = vunpack.c.l.b16 %v4609_v1  ;;  %v3308_v40 = vshrl.u32 %v3112_v2, 16  ;;  %v8813_v42 = vadd.f32 %v8560_v21, %v8585_v53  ;;  %v8821_v53 = vld [vmem:[#allocation2 + $0x74] sm:$0x1]  ;;  %v7287_v13 = vld [vmem:[#allocation2 + $0x78] sm:$0xff] }
 0x226   : > { %v8785_v0 = vpop.f32.mrf.mxu1  ;;  %v5401_v38 = vunpack.c.l.b16 %v5305_v46  ;;  %v3311_v33 = vshll.u32 %v3112_v2, 16  ;;  %v3321_v9 = vshrl.u32 %v3113_v26, 16  ;;  %v3890_v31 = vrot.slane %v3888_v34, 4 }
 0x227   : > { %v8782_v59 = vpop.f32.mrf.mxu2  ;;  %v3891_v36 = vrot.slane %v8804_v12, 5  ;;  %v4618_v61 = vrot.slane %v4617_v27, 4  ;;  %v4638_v21 = vshll.u32 %v4523_v62, 16  ;;  %v3310_v26 = vrot.slane %v3308_v40, 4 }
 0x228   : > { %3685 = vmatmul.bf16.gmra.mxu3 %v3577_v16  ;;  %v3296_v16 = vsel %vm7713_vm14, %v3291_v17, %v8747_v49  ;;  %v6822_v49 = vrot.slane %v3780_v47, 9  ;;  %v8816_v17 = vld [vmem:[#allocation2 + $0x70] sm:$0xf]  ;;  %v3313_v47 = vrot.slane %v3311_v33, 5  ;;  %v8830_v27 = vrot.slane %v3317_v51, 5 }
 0x229   : > { %v3019_v20 = vpop.f32.mrf.mxu0  ;;  %4116 = vmatmul.bf16.gmra.mxu1 %v4004_v19  ;;  %v5311_v19 = vrot.slane %v8816_v17, 5  ;;  %v3892_v32 = vsel %vm7697_vm13, %v3890_v31, %v3891_v36  ;;  %v5314_v40 = vrot.slane %v8821_v53, 5  ;;  %v4632_v33 = vrot.slane %v4630_v29, 5 }
 0x22a   : > { %v8795_v24 = vadd.f32 %v3019_v20, %v8654_v15  ;;  %v4626_v15 = vrot.slane %v4624_v55, 4  ;;  %v4635_v55 = vshrl.u32 %v4523_v62, 16  ;;  %v3552_v20 = vunpack.c.l.b16 %v3296_v16  ;;  %v7285_v62 = vld [vmem:[#allocation2 + $0x60] sm:$0xff]  ;;  %v5203_v16 = vld [vmem:[#allocation2 + $0x6c] sm:$0xe] }
 0x22b   : > { %v2116_v18 = vpop.f32.mrf.mxu3  ;;  %v4644_v51 = vshll.u32 %v8504_v28, 16  ;;  %v4640_v36 = vrot.slane %v4638_v21, 5  ;;  %v3327_v29 = vshll.u32 %v8804_v12, 16  ;;  %v3115_v21 = vld [vmem:[#allocation2 + $0x6c] sm:$0xf]  ;;  %v7314_v12 = vld [vmem:[%s9969_s5 + $0x218] sm:$0xff] }
 0x22c   : > { %10026 = vst [vmem:[#allocation31_spill] sm:$0xff] %v8795_v24  ;;  %v8809_v37 = vadd.f32 %v8712_v45, %v2116_v18  ;;  %5083 = vmatmul.bf16.vlgmr.msra.gmra.mxu0 %v4995_v11  ;;  %v5402_v45 = vunpack.c.l.b16 %v5308_v56  ;;  %v4627_v60 = vor.u32 %v4626_v15, %v8797_v44  ;;  %v3553_v11 = vunpack.c.l.b16 %v3306_v41  ;;  %5505 = vmatpush.bf16.msra.mxu3 %v7314_v12 }
 0x22d   : > { %v3889_v56 = vsel %vm7697_vm13, %v6822_v49, %v3888_v34  ;;  %v3323_v18 = vrot.slane %v3321_v9, 4  ;;  %v5313_v41 = vrot.slane %v5311_v19, 4  ;;  %v4623_v34 = vsel %vm7713_vm14, %v4618_v61, %v8797_v44 }
 0x22e   : > { %v8824_v1 = vpop.f32.mrf.mxu1  ;;  %v8826_v2 = vpack.c.b16 %v5402_v45, %v5401_v38  ;;  %v4628_v49 = vrot.slane %v4627_v60, 4  ;;  %v8847_v9 = vadd.f32 %v8599_v54, %v8618_v4  ;;  %v4637_v31 = vrot.slane %v4635_v55, 4 }
 0x22f   : > { %v8818_v39 = vpop.f32.mrf.mxu2  ;;  %v3980_v45 = vunpack.c.l.b16 %v3889_v56  ;;  %v3578_v24 = vpack.c.b16 %v3553_v11, %v3552_v20  ;;  %v3324_v44 = vor.u32 %v3323_v18, %v8830_v27  ;;  %v4996_v54 = vpack.c.b16 %v8806_v25, %v8789_v22  ;;  %v3116_v11 = vld [vmem:[#allocation2 + $0x70] sm:$0xf] }
 0x230   : > { %10027 = vst [vmem:[#allocation32_spill] sm:$0xff] %v8826_v2  ;;  %v3314_v2 = vor.u32 %v3313_v47, %v3310_v26  ;;  %v4648_v4 = vshrl.u32 %v8504_v28, 16  ;;  %v8862_v55 = vunpack.c.l.b16 %v4623_v34  ;;  %v8869_v20 = vadd.f32 %v8630_v48, %v8648_v57  ;;  %v8878_v48 = vld [vmem:[#allocation2 + $0x74] sm:$0x1] }
 0x231   : > { %v3021_v46 = vpop.f32.mrf.mxu0  ;;  %v8871_v22 = vrot.slane %v4644_v51, 5  ;;  %v4641_v26 = vor.u32 %v4640_v36, %v4637_v31  ;;  %v3325_v18 = vrot.slane %v3324_v44, 4  ;;  %v4654_v36 = vshll.u32 %v8506_v8, 16  ;;  %v8894_v44 = vld [vmem:[#allocation2 + $0x7c] sm:$0xf] }
 0x232   : > { %v8833_v15 = vadd.f32 %v3021_v46, %v8696_v5  ;;  %v3981_v46 = vunpack.c.l.b16 %v3892_v32  ;;  %v4633_v32 = vsel %vm7713_vm14, %v4628_v49, %v4632_v33  ;;  %v3315_v25 = vrot.slane %v3314_v2, 4 }
 0x233   : > { %v2118_v38 = vpop.f32.mrf.mxu3  ;;  %v3332_v2 = vshrl.u32 %v3115_v21, 16  ;;  %v4650_v34 = vrot.slane %v4648_v4, 4  ;;  %v8888_v31 = vrot.slane %v4641_v26, 4  ;;  %v5318_v12 = vrot.slane %v8894_v44, 5 }
 0x234   : > { %10028 = vst [vmem:[#allocation33_spill] sm:$0xff] %v8833_v15  ;;  %v8843_v5 = vadd.f32 %v8752_v35, %v2118_v38  ;;  %4431 = vmatmul.bf16.gmra.mxu2 %v7285_v62  ;;  %v7046_v15 = vrot.slane %v5203_v16, 9  ;;  %v5315_v35 = vsel %vm7697_vm13, %v5313_v41, %v5314_v40  ;;  %v3329_v62 = vrot.slane %v3327_v29, 5  ;;  %v3781_v16 = vld [vmem:[#allocation2 + $0x6c] sm:$0xe] }
 0x235   : > { %v3895_v41 = vrot.slane %v3116_v11, 5  ;;  %v8880_v40 = vunpack.c.l.b16 %v4633_v32  ;;  %v3335_v38 = vshll.u32 %v3115_v21, 16  ;;  %v3320_v33 = vsel %vm7713_vm14, %v3315_v25, %v8830_v27  ;;  %v8899_v21 = vld [vmem:[#allocation2 + $0x80] sm:$0x1]  ;;  %v10030_v25 = vld [vmem:[#allocation26_spill] sm:$0xff] }
 0x236   : > { %v8858_v60 = vpop.f32.mrf.mxu1  ;;  %v5312_v56 = vsel %vm7697_vm13, %v7046_v15, %v5311_v19  ;;  %v3345_v19 = vshrl.u32 %v3116_v11, 16  ;;  %v6823_v51 = vrot.slane %v3781_v16, 9  ;;  %v5404_v29 = vunpack.c.l.b16 %v5315_v35  ;;  %v4526_v35 = vld [vmem:[#allocation2 + $0x48] sm:$0xf] }
 0x237   : > { %v8853_v61 = vpop.f32.mrf.mxu2  ;;  %v5403_v15 = vunpack.c.l.b16 %v5312_v56  ;;  %v3334_v4 = vrot.slane %v3332_v2, 4  ;;  %v3337_v32 = vrot.slane %v3335_v38, 5  ;;  %v4651_v27 = vor.u32 %v4650_v34, %v8871_v22  ;;  %v7286_v38 = vld [vmem:[#allocation2 + $0x6c] sm:$0xff] }
 0x238   : > { %3690 = vmatmul.bf16.gmra.mxu3 %v3578_v24  ;;  %v4005_v24 = vpack.c.b16 %v3981_v46, %v3980_v45  ;;  %v3330_v45 = vsel %vm7713_vm14, %v3325_v18, %v3329_v62  ;;  %v3897_v46 = vrot.slane %v3895_v41, 4  ;;  %v3554_v18 = vunpack.c.l.b16 %v3320_v33 }
 0x239   : > { %v3024_v28 = vpop.f32.mrf.mxu0  ;;  %v8910_v26 = vpack.c.b16 %v5404_v29, %v5403_v15  ;;  %v3555_v62 = vunpack.c.l.b16 %v3330_v45  ;;  %v3896_v16 = vsel %vm7697_vm13, %v6823_v51, %v3895_v41  ;;  %v4652_v29 = vrot.slane %v4651_v27, 4  ;;  %v10033_v45 = vld [vmem:[#allocation19_spill] sm:$0xff] }
 0x23a   : > { %v8876_v47 = vadd.f32 %v3024_v28, %v8737_v58  ;;  %4121 = vmatmul.bf16.gmra.mxu1 %v4005_v24  ;;  %v3341_v58 = vshll.u32 %v3116_v11, 16  ;;  %v3347_v24 = vrot.slane %v3345_v19, 4  ;;  %v8908_v11 = vadd.f32 %v10030_v25, %v8692_v3 }
 0x23b   : > { %v2121_v57 = vpop.f32.mrf.mxu3  ;;  %10031 = vst [vmem:[#allocation26_spill] sm:$0xff] %v8910_v26  ;;  %v5320_v3 = vrot.slane %v5318_v12, 4  ;;  %v5321_v19 = vrot.slane %v8899_v21, 5  ;;  %v4659_v25 = vshrl.u32 %v4526_v35, 16  ;;  %v4662_v33 = vshll.u32 %v4526_v35, 16 }
 0x23c   : > { %10029 = vst [vmem:[#allocation34_spill] sm:$0xff] %v8876_v47  ;;  %v8883_v49 = vadd.f32 %v8785_v0, %v2121_v57  ;;  %5088 = vmatmul.bf16.gmra.mxu0 %v4996_v54  ;;  %v3898_v0 = vrot.slane %v8878_v48, 5  ;;  %v8904_v28 = vrot.slane %v3341_v58, 5  ;;  %v4656_v57 = vrot.slane %v4654_v36, 5  ;;  %v5204_v58 = vld [vmem:[#allocation2 + $0x78] sm:$0xe] }
 0x23d   : > { %v4668_v26 = vshll.u32 %v10033_v45, 16  ;;  %v4672_v36 = vshrl.u32 %v10033_v45, 16  ;;  %v3579_v47 = vpack.c.b16 %v3555_v62, %v3554_v18  ;;  %v4997_v27 = vpack.c.b16 %v8880_v40, %v8862_v55  ;;  %v3119_v40 = vld [vmem:[#allocation2 + $0x7c] sm:$0xf] }
 0x23e   : > { %v8902_v8 = vpop.f32.mrf.mxu1  ;;  %v3899_v34 = vsel %vm7697_vm13, %v3897_v46, %v3898_v0  ;;  %v3348_v51 = vor.u32 %v3347_v24, %v8904_v28  ;;  %v3982_v46 = vunpack.c.l.b16 %v3896_v16  ;;  %v5322_v35 = vsel %vm7697_vm13, %v5320_v3, %v5321_v19  ;;  %v3118_v24 = vld [vmem:[#allocation2 + $0x78] sm:$0xf] }
 0x23f   : > { %v8896_v54 = vpop.f32.mrf.mxu2  ;;  %v3983_v0 = vunpack.c.l.b16 %v3899_v34  ;;  %v4664_v16 = vrot.slane %v4662_v33, 5  ;;  %v8943_v62 = vadd.f32 %v8700_v6, %v8733_v14  ;;  %v4674_v34 = vrot.slane %v4672_v36, 4  ;;  %v3782_v19 = vld [vmem:[#allocation2 + $0x78] sm:$0xe]  ;;  %v8954_v14 = vld [vmem:[#allocation2 + $0x80] sm:$0x1] }
 0x240   : > { %v3359_v33 = vshll.u32 %v3118_v24, 16  ;;  %v3365_v45 = vshll.u32 %v3119_v40, 16 }
 0x241   : > { %v3026_v56 = vpop.f32.mrf.mxu0 }
 0x242   : > { %v8915_v2 = vadd.f32 %v3026_v56, %v8774_v7  ;;  %v3338_v7 = vor.u32 %v3337_v32, %v3334_v4  ;;  %v3351_v56 = vshll.u32 %v8878_v48, 16  ;;  %v4647_v4 = vsel %vm7713_vm14, %v8888_v31, %v8871_v22 }
 0x243   : > { %v2123_v15 = vpop.f32.mrf.mxu3  ;;  %v4657_v32 = vsel %vm7713_vm14, %v4652_v29, %v4656_v57  ;;  %v4661_v48 = vrot.slane %v4659_v25, 4  ;;  %v4006_v22 = vpack.c.b16 %v3983_v0, %v3982_v46  ;;  %v3349_v31 = vrot.slane %v3348_v51, 4  ;;  %v5205_v51 = vld [vmem:[#allocation2 + $0x84] sm:$0xe] }
 0x244   : > { %10032 = vst [vmem:[#allocation35_spill] sm:$0xff] %v8915_v2  ;;  %v8922_v41 = vadd.f32 %v8824_v1, %v2123_v15  ;;  %4436 = vmatmul.bf16.gmra.mxu2 %v7286_v38  ;;  %v7047_v2 = vrot.slane %v5204_v58, 9  ;;  %v3339_v55 = vrot.slane %v3338_v7, 4  ;;  %v8945_v38 = vrot.slane %v4668_v26, 5 }
 0x245   : > { %v3353_v3 = vrot.slane %v3351_v56, 5  ;;  %v3902_v15 = vrot.slane %v3119_v40, 5  ;;  %v8952_v29 = vunpack.c.l.b16 %v4647_v4  ;;  %v3356_v25 = vshrl.u32 %v3118_v24, 16  ;;  %v10035_v4 = vld [vmem:[#allocation18_spill] sm:$0xff]  ;;  %v8968_v24 = vld [vmem:[#allocation2 + $0x8c] sm:$0x1] }
 0x246   : > { %v8939_v18 = vpop.f32.mrf.mxu1  ;;  %v5319_v57 = vsel %vm7697_vm13, %v7047_v2, %v5318_v12  ;;  %v8956_v26 = vunpack.c.l.b16 %v4657_v32  ;;  %v4665_v7 = vor.u32 %v4664_v16, %v4661_v48  ;;  %v4675_v2 = vor.u32 %v4674_v34, %v8945_v38 }
 0x247   : > { %v8931_v1 = vpop.f32.mrf.mxu2  ;;  %v5405_v36 = vunpack.c.l.b16 %v5319_v57  ;;  %v3344_v46 = vsel %vm7713_vm14, %v3339_v55, %v8904_v28  ;;  %v3354_v0 = vsel %vm7713_vm14, %v3349_v31, %v3353_v3  ;;  %v6824_v56 = vrot.slane %v3782_v19, 9  ;;  %v4529_v19 = vld [vmem:[#allocation2 + $0x54] sm:$0xf] }
 0x248   : > { %3695 = vmatmul.bf16.gmra.mxu3 %v3579_v47  ;;  %v4678_v32 = vshll.u32 %v10035_v4, 16  ;;  %v3904_v48 = vrot.slane %v3902_v15, 4  ;;  %v5406_v16 = vunpack.c.l.b16 %v5322_v35  ;;  %v8975_v28 = vrot.slane %v3365_v45, 5 }
 0x249   : > { %v3029_v58 = vpop.f32.mrf.mxu0  ;;  %v8982_v57 = vadd.f32 %v8745_v23, %v8770_v10  ;;  %v5328_v35 = vrot.slane %v8968_v24, 5  ;;  %v3556_v4 = vunpack.c.l.b16 %v3344_v46  ;;  %v4683_v46 = vshrl.u32 %v4529_v19, 16 }
 0x24a   : > { %v8950_v47 = vadd.f32 %v3029_v58, %v8813_v42  ;;  %4126 = vmatmul.bf16.gmra.mxu1 %v4006_v22  ;;  %v3369_v42 = vshrl.u32 %v3119_v40, 16  ;;  %v7048_v40 = vrot.slane %v5205_v51, 9  ;;  %v3358_v58 = vrot.slane %v3356_v25, 4 }
 0x24b   : > { %v2126_v6 = vpop.f32.mrf.mxu3  ;;  %v3361_v22 = vrot.slane %v3359_v33, 5  ;;  %v3557_v25 = vunpack.c.l.b16 %v3354_v0  ;;  %v4666_v33 = vrot.slane %v4665_v7, 4  ;;  %v4686_v0 = vshll.u32 %v4529_v19, 16 }
 0x24c   : > { %10034 = vst [vmem:[#allocation19_spill] sm:$0xff] %v8950_v47  ;;  %v8959_v12 = vadd.f32 %v8858_v60, %v2126_v6  ;;  %5093 = vmatmul.bf16.gmra.mxu0 %v4997_v27  ;;  %v3905_v60 = vrot.slane %v8954_v14, 5  ;;  %v8971_v27 = vld [vmem:[#allocation2 + $0x88] sm:$0xf]  ;;  %v3371_v3 = vrot.slane %v3369_v42, 4  ;;  %v8984_v6 = vpack.c.b16 %v5406_v16, %v5405_v36 }
 0x24d   : > { %v5325_v55 = vrot.slane %v8971_v27, 5  ;;  %v3903_v42 = vsel %vm7697_vm13, %v6824_v56, %v3902_v15  ;;  %v4676_v16 = vrot.slane %v4675_v2, 4  ;;  %v4998_v2 = vpack.c.b16 %v8956_v26, %v8952_v29  ;;  %v7313_v29 = vld [vmem:[%s9969_s5 + $0x210] sm:$0xff] }
 0x24e   : > { %v8978_v31 = vpop.f32.mrf.mxu1  ;;  %10036 = vst [vmem:[#allocation18_spill] sm:$0xff] %v8984_v6  ;;  %v3906_v23 = vsel %vm7697_vm13, %v3904_v48, %v3905_v60  ;;  %v4680_v6 = vrot.slane %v4678_v32, 5  ;;  %v3984_v56 = vunpack.c.l.b16 %v3903_v42  ;;  %v3375_v60 = vshll.u32 %v8954_v14, 16  ;;  %5506 = vmatpush.bf16.msra.mxu3 %v7313_v29 }
 0x24f   : > { %v8973_v34 = vpop.f32.mrf.mxu2  ;;  %v5327_v45 = vrot.slane %v5325_v55, 4  ;;  %v5326_v10 = vsel %vm7697_vm13, %v7048_v40, %v5325_v55  ;;  %v3985_v48 = vunpack.c.l.b16 %v3906_v23  ;;  %v3580_v55 = vpack.c.b16 %v3557_v25, %v3556_v4  ;;  %v5206_v25 = vld [vmem:[#allocation2 + $0x90] sm:$0xe] }
 0x250   : > { %v5407_v40 = vunpack.c.l.b16 %v5326_v10  ;;  %v9023_v26 = vadd.f32 %v8782_v59, %v8809_v37  ;;  %v3377_v23 = vrot.slane %v3375_v60, 5  ;;  %v3122_v10 = vld [vmem:[#allocation2 + $0x88] sm:$0xf]  ;;  %v9034_v37 = vld [vmem:[#allocation2 + $0x98] sm:$0x1]  ;;  %v7049_v60 = vrot.slane %v5206_v25, 9 }
 0x251   : > { %v3031_v51 = vpop.f32.mrf.mxu0  ;;  %v5329_v15 = vsel %vm7697_vm13, %v5327_v45, %v5328_v35  ;;  %v4007_v45 = vpack.c.b16 %v3985_v48, %v3984_v56  ;;  %10041 = vst [vmem:[#allocation38_spill] sm:$0xff] %v9034_v37  ;;  %v3393_v29 = vshrl.u32 %v3122_v10, 16 }
 0x252   : > { %v8988_v47 = vadd.f32 %v3031_v51, %v8847_v9  ;;  %v3362_v9 = vor.u32 %v3361_v22, %v3358_v58  ;;  %v3372_v51 = vor.u32 %v3371_v3, %v8975_v28  ;;  %v5408_v32 = vunpack.c.l.b16 %v5329_v15  ;;  %v3121_v58 = vld [vmem:[#allocation2 + $0x84] sm:$0xf] }
 0x253   : > { %v2128_v36 = vpop.f32.mrf.mxu3  ;;  %v9012_v22 = vrot.slane %v4683_v46, 4  ;;  %v9014_v3 = vrot.slane %v4686_v0, 5  ;;  %v3783_v46 = vld [vmem:[#allocation2 + $0x84] sm:$0xe]  ;;  %v3909_v0 = vrot.slane %v3122_v10, 5  ;;  %v3380_v59 = vshrl.u32 %v3121_v58, 16 }
 0x254   : > { %10037 = vst [vmem:[#allocation36_spill] sm:$0xff] %v8988_v47  ;;  %v8997_v7 = vadd.f32 %v8902_v8, %v2128_v36  ;;  %4441 = vmatmul.bf16.gmra.mxu2 %v7287_v13  ;;  %v4671_v13 = vsel %vm7713_vm14, %v4666_v33, %v8945_v38  ;;  %v4681_v8 = vsel %vm7713_vm14, %v4676_v16, %v4680_v6  ;;  %v3363_v35 = vrot.slane %v3362_v9, 4  ;;  %v10038_v38 = vld [vmem:[#allocation25_spill] sm:$0xff] }
 0x255   : > { %v4692_v4 = vshll.u32 %v10038_v38, 16  ;;  %v4696_v6 = vshrl.u32 %v10038_v38, 16  ;;  %v3373_v42 = vrot.slane %v3372_v51, 4  ;;  %v9027_v36 = vpack.c.b16 %v5408_v32, %v5407_v40  ;;  %v10043_v40 = vld [vmem:[#allocation4_spill] sm:$0xff] }
 0x256   : > { %v9016_v14 = vpop.f32.mrf.mxu1  ;;  %v9032_v9 = vunpack.c.l.b16 %v4671_v13  ;;  %v9038_v51 = vunpack.c.l.b16 %v4681_v8  ;;  %v3383_v56 = vshll.u32 %v3121_v58, 16  ;;  %v4689_v48 = vor.u32 %v9014_v3, %v9012_v22 }
 0x257   : > { %v9005_v19 = vpop.f32.mrf.mxu2  ;;  %10039 = vst [vmem:[#allocation25_spill] sm:$0xff] %v9027_v36  ;;  %v3389_v13 = vshll.u32 %v3122_v10, 16  ;;  %v3378_v8 = vsel %vm7713_vm14, %v3373_v42, %v3377_v23  ;;  %v6825_v58 = vrot.slane %v3783_v46, 9  ;;  %v5335_v22 = vrot.slane %v9034_v37, 5 }
 0x258   : > { %3700 = vmatmul.bf16.gmra.mxu3 %v3580_v55  ;;  %v9036_v55 = vld [vmem:[#allocation2 + $0x8c] sm:$0x1]  ;;  %v3911_v25 = vrot.slane %v3909_v0, 4  ;;  %v9063_v42 = vrot.slane %v4692_v4, 5  ;;  %v4532_v4 = vld [vmem:[#allocation2 + $0x60] sm:$0xf]  ;;  %v3559_v47 = vunpack.c.l.b16 %v3378_v8 }
 0x259   : > { %v3034_v33 = vpop.f32.mrf.mxu0  ;;  %v4720_v8 = vshrl.u32 %v8741_v43, 16 }
 0x25a   : > { %v9030_v16 = vadd.f32 %v3034_v33, %v8869_v20  ;;  %4131 = vmatmul.bf16.gmra.mxu1 %v4007_v45  ;;  %v9042_v20 = vld [vmem:[#allocation2 + $0x94] sm:$0xf]  ;;  %v3368_v33 = vsel %vm7713_vm14, %v3363_v35, %v8975_v28  ;;  %v9059_v45 = vld [vmem:[%s9971_s7 + $0x78] sm:$0xff]  ;;  %v3382_v28 = vrot.slane %v3380_v59, 4  ;;  %v3385_v35 = vrot.slane %v3383_v56, 5 }
 0x25b   : > { %v3661_v15 = vpop.f32.mrf.mxu3  ;;  %10042 = vst [vmem:[#allocation39_spill] sm:$0xff] %v9042_v20  ;;  %v5332_v38 = vrot.slane %v9042_v20, 5  ;;  %6039 = vmatpush.bf16.msrb.mxu2 %v9059_v45  ;;  %v9077_v59 = vadd.f32 %v8818_v39, %v8843_v5 }
 0x25c   : > { %10040 = vst [vmem:[#allocation37_spill] sm:$0xff] %v9030_v16  ;;  %v3741_v32 = vadd.f32 %v3661_v15, %v10043_v40  ;;  %5098 = vmatmul.bf16.gmra.mxu0 %v4998_v2  ;;  %v3912_v2 = vrot.slane %v9036_v55, 5  ;;  %v9072_v40 = vrot.slane %v3389_v13, 5  ;;  %v3558_v16 = vunpack.c.l.b16 %v3368_v33 }
 0x25d   : > { %v5334_v10 = vrot.slane %v5332_v38, 4  ;;  %v5333_v23 = vsel %vm7697_vm13, %v7049_v60, %v5332_v38  ;;  %v3910_v60 = vsel %vm7697_vm13, %v6825_v58, %v3909_v0  ;;  %v4698_v38 = vrot.slane %v4696_v6, 4  ;;  %v10045_v0 = vld [vmem:[#allocation5_spill] sm:$0xff] }
 0x25e   : > { %v9053_v3 = vadd.f32 %v8939_v18, %v3741_v32  ;;  %v7326_v18 = vld [vmem:[%s9971_s7 + $0x38] sm:$0xff]  ;;  %v9070_v46 = vpop.f32.mrf.mxu1  ;;  %v3395_v32 = vrot.slane %v3393_v29, 4  ;;  %v7288_v29 = vld [vmem:[#allocation2 + $0x84] sm:$0xff]  ;;  %v3913_v39 = vsel %vm7697_vm13, %v3911_v25, %v3912_v2  ;;  %v5409_v5 = vunpack.c.l.b16 %v5333_v23 }
 0x25f   : > { %v9061_v15 = vpop.f32.mrf.mxu2  ;;  %v5336_v56 = vsel %vm7697_vm13, %v5334_v10, %v5335_v22  ;;  %7335 = vmatpush.bf16.msrb.mxu1 %v7326_v18  ;;  %5950 = vmatpush.bf16.msrb.mxu0 %v7326_v18  ;;  %v4707_v22 = vshrl.u32 %v4532_v4, 16  ;;  %v4710_v10 = vshll.u32 %v4532_v4, 16  ;;  %v4716_v33 = vshll.u32 %v8741_v43, 16  ;;  %v10046_v2 = vld [vmem:[#allocation24_spill] sm:$0xff] }
 0x260   : > { %v5410_v50 = vunpack.c.l.b16 %v5336_v56  ;;  %v3386_v58 = vor.u32 %v3385_v35, %v3382_v28  ;;  %v3986_v18 = vunpack.c.l.b16 %v3910_v60  ;;  %v9093_v25 = vrot.slane %v4689_v48, 4 }
 0x261   : > { %v3036_v36 = vpop.f32.mrf.mxu0  ;;  %v4702_v23 = vshll.u32 %v10046_v2, 16  ;;  %v3581_v56 = vpack.c.b16 %v3559_v47, %v3558_v16  ;;  %v4699_v43 = vor.u32 %v4698_v38, %v9063_v42  ;;  %v4709_v28 = vrot.slane %v4707_v22, 4  ;;  %v3125_v38 = vld [vmem:[#allocation2 + $0x94] sm:$0xf] }
 0x262   : > { %v9084_v13 = vadd.f32 %v3036_v36, %v8908_v11  ;;  %v3396_v11 = vor.u32 %v3395_v32, %v9072_v40  ;;  %v3399_v36 = vshll.u32 %v9036_v55, 16  ;;  %v9100_v20 = vpack.c.b16 %v5410_v50, %v5409_v5  ;;  %v3124_v5 = vld [vmem:[#allocation2 + $0x90] sm:$0xf] }
 0x263   : > { %v3663_v37 = vpop.f32.mrf.mxu3  ;;  %v4712_v35 = vrot.slane %v4710_v10, 5  ;;  %v9104_v32 = vrot.slane %v4716_v33, 5  ;;  %v4722_v55 = vrot.slane %v4720_v8, 4  ;;  %v3387_v60 = vrot.slane %v3386_v58, 4  ;;  %v3784_v10 = vld [vmem:[#allocation2 + $0x90] sm:$0xe] }
 0x264   : > { %10044 = vst [vmem:[#allocation4_spill] sm:$0xff] %v9084_v13  ;;  %v3742_v6 = vadd.f32 %v3663_v37, %v10045_v0  ;;  %4446 = vmatmul.bf16.gmra.mxu2 %v7288_v29  ;;  %v3987_v13 = vunpack.c.l.b16 %v3913_v39  ;;  %v3397_v29 = vrot.slane %v3396_v11, 4  ;;  %v3401_v39 = vrot.slane %v3399_v36, 5 }
 0x265   : > { %10047 = vst [vmem:[#allocation5_spill] sm:$0xff] %v9100_v20  ;;  %v9110_v47 = vadd.f32 %v8853_v61, %v8883_v49  ;;  %v4999_v16 = vpack.c.b16 %v9038_v51, %v9032_v9  ;;  %v3916_v33 = vrot.slane %v3125_v38, 5  ;;  %v4695_v8 = vsel %vm7713_vm14, %v9093_v25, %v9063_v42  ;;  %v9121_v49 = vld [vmem:[#allocation2 + $0x98] sm:$0x1] }
 0x266   : > { %v9097_v4 = vadd.f32 %v8978_v31, %v3742_v6  ;;  %v9106_v48 = vpop.f32.mrf.mxu1  ;;  %v4008_v50 = vpack.c.b16 %v3987_v13, %v3986_v18  ;;  %v4704_v0 = vrot.slane %v4702_v23, 5  ;;  %v4700_v13 = vrot.slane %v4699_v43, 4  ;;  %v10051_v20 = vld [vmem:[#allocation7_spill] sm:$0xff] }
 0x267   : > { %v9102_v37 = vpop.f32.mrf.mxu2  ;;  %v4713_v6 = vor.u32 %v4712_v35, %v4709_v28  ;;  %v4723_v9 = vor.u32 %v4722_v55, %v9104_v32  ;;  %v4726_v51 = vshll.u32 %v8749_v63, 16  ;;  %v3392_v11 = vsel %vm7713_vm14, %v3387_v60, %v9072_v40 }
 0x268   : > { %3705 = vmatmul.bf16.gmra.mxu3 %v3581_v56  ;;  %v3402_v42 = vsel %vm7713_vm14, %v3397_v29, %v3401_v39  ;;  %v3404_v36 = vshrl.u32 %v3124_v5, 16  ;;  %v6826_v18 = vrot.slane %v3784_v10, 9  ;;  %v3407_v25 = vshll.u32 %v3124_v5, 16  ;;  %v9131_v56 = vld [vmem:[#allocation2 + $0xa0] sm:$0xf] }
 0x269   : > { %v3039_v31 = vpop.f32.mrf.mxu0  ;;  %v3413_v2 = vshll.u32 %v3125_v38, 16  ;;  %v3417_v23 = vshrl.u32 %v3125_v38, 16  ;;  %v3918_v63 = vrot.slane %v3916_v33, 4  ;;  %v3919_v28 = vrot.slane %v9121_v49, 5 }
 0x26a   : > { %v9115_v22 = vadd.f32 %v3039_v31, %v8943_v62  ;;  %4136 = vmatmul.bf16.gmra.mxu1 %v4008_v50  ;;  %v10049_v62 = vld [vmem:[#allocation6_spill] sm:$0xff]  ;;  %v5339_v35 = vrot.slane %v9131_v56, 5  ;;  %v4705_v40 = vsel %vm7713_vm14, %v4700_v13, %v4704_v0  ;;  %v4714_v60 = vrot.slane %v4713_v6, 4  ;;  %v9142_v31 = vld [vmem:[#allocation2 + $0xa4] sm:$0x1] }
 0x26b   : > { %v3666_v61 = vpop.f32.mrf.mxu3  ;;  %v4724_v29 = vrot.slane %v4723_v9, 4  ;;  %v4728_v39 = vrot.slane %v4726_v51, 5  ;;  %v3406_v38 = vrot.slane %v3404_v36, 4  ;;  %v9148_v5 = vadd.f32 %v8896_v54, %v8922_v41  ;;  %v7289_v9 = vld [vmem:[#allocation2 + $0x90] sm:$0xff] }
 0x26c   : > { %10048 = vst [vmem:[#allocation24_spill] sm:$0xff] %v9115_v22  ;;  %v3743_v58 = vadd.f32 %v3666_v61, %v10049_v62  ;;  %5103 = vmatmul.bf16.gmra.mxu0 %v4999_v16  ;;  %v3560_v16 = vunpack.c.l.b16 %v3392_v11  ;;  %v3917_v61 = vsel %vm7697_vm13, %v6826_v18, %v3916_v33  ;;  %v3409_v62 = vrot.slane %v3407_v25, 5  ;;  %v7290_v22 = vld [vmem:[#allocation2 + $0x9c] sm:$0xff] }
 0x26d   : > { %v9152_v0 = vrot.slane %v3413_v2, 5  ;;  %v3419_v13 = vrot.slane %v3417_v23, 4  ;;  %v3920_v51 = vsel %vm7697_vm13, %v3918_v63, %v3919_v28  ;;  %v5341_v11 = vrot.slane %v5339_v35, 4  ;;  %v4535_v2 = vld [vmem:[#allocation2 + $0x6c] sm:$0xf] }
 0x26e   : > { %v9134_v43 = vadd.f32 %v9016_v14, %v3743_v58  ;;  %v9144_v50 = vpop.f32.mrf.mxu1  ;;  %v3561_v14 = vunpack.c.l.b16 %v3402_v42  ;;  %v5207_v58 = vld [vmem:[#allocation2 + $0x9c] sm:$0xe]  ;;  %v5342_v54 = vrot.slane %v9142_v31, 5  ;;  %v4973_v42 = vunpack.c.l.b16 %v4695_v8 }
 0x26f   : > { %v9138_v55 = vpop.f32.mrf.mxu2  ;;  %v4974_v36 = vunpack.c.l.b16 %v4705_v40  ;;  %v4729_v25 = vsel %vm7713_vm14, %v4724_v29, %v4728_v39  ;;  %v3988_v23 = vunpack.c.l.b16 %v3917_v61  ;;  %v3989_v63 = vunpack.c.l.b16 %v3920_v51  ;;  %v3127_v51 = vld [vmem:[#allocation2 + $0x9c] sm:$0xf] }
 0x270   : > { %v3582_v18 = vpack.c.b16 %v3561_v14, %v3560_v16  ;;  %v3410_v28 = vor.u32 %v3409_v62, %v3406_v38  ;;  %v3420_v8 = vor.u32 %v3419_v13, %v9152_v0  ;;  %v5343_v40 = vsel %vm7697_vm13, %v5341_v11, %v5342_v54 }
 0x271   : > { %v3041_v10 = vpop.f32.mrf.mxu0  ;;  %v4731_v29 = vshrl.u32 %v4535_v2, 16  ;;  %v4734_v39 = vshll.u32 %v4535_v2, 16  ;;  %v9188_v38 = vadd.f32 %v8931_v1, %v8959_v12  ;;  %v4009_v62 = vpack.c.b16 %v3989_v63, %v3988_v23  ;;  %v9196_v1 = vld [vmem:[#allocation2 + $0xa4] sm:$0x1] }
 0x272   : > { %v9155_v6 = vadd.f32 %v3041_v10, %v8982_v57  ;;  %v4719_v57 = vsel %vm7713_vm14, %v4714_v60, %v9104_v32  ;;  %v7050_v10 = vrot.slane %v5207_v58, 9  ;;  %v9177_v60 = vunpack.c.l.b16 %v4729_v25 }
 0x273   : > { %v3668_v41 = vpop.f32.mrf.mxu3  ;;  %v9175_v32 = vunpack.c.l.b16 %v4719_v57  ;;  %v3411_v13 = vrot.slane %v3410_v28, 4  ;;  %v5000_v54 = vpack.c.b16 %v4974_v36, %v4973_v42  ;;  %v9200_v25 = vrot.slane %v4731_v29, 4  ;;  %v5208_v28 = vld [vmem:[#allocation2 + $0xa8] sm:$0xe]  ;;  %v10090_v52 = vld [vmem:[#allocation24_spill] sm:$0xff] }
 0x274   : > { %10050 = vst [vmem:[#allocation6_spill] sm:$0xff] %v9155_v6  ;;  %v3744_v33 = vadd.f32 %v3668_v41, %v10051_v20  ;;  %4451 = vmatmul.bf16.gmra.mxu2 %v7289_v9  ;;  %v3423_v20 = vshll.u32 %v9121_v49, 16  ;;  %v7312_v49 = vld [vmem:[%s9969_s5 + $0x208] sm:$0xff]  ;;  %v5340_v58 = vsel %vm7697_vm13, %v7050_v10, %v5339_v35  ;;  %v3421_v41 = vrot.slane %v3420_v8, 4 }
 0x275   : > { %5507 = vmatpush.bf16.msra.mxu3 %v7312_v49  ;;  %v9202_v2 = vrot.slane %v4734_v39, 5  ;;  %v4740_v35 = vshll.u32 %v8816_v17, 16  ;;  %v3428_v42 = vshrl.u32 %v3127_v51, 16  ;;  %v3431_v36 = vshll.u32 %v3127_v51, 16  ;;  %v9221_v51 = vld [vmem:[#allocation2 + $0xac] sm:$0xf] }
 0x276   : > { %v9167_v6 = vadd.f32 %v9070_v46, %v3744_v33  ;;  %v9179_v14 = vpop.f32.mrf.mxu1  ;;  %v9181_v46 = vld [vmem:[#allocation2 + $0xa0] sm:$0xf]  ;;  %v3425_v33 = vrot.slane %v3423_v20, 5  ;;  %v5411_v63 = vunpack.c.l.b16 %v5340_v58  ;;  %v3416_v10 = vsel %vm7713_vm14, %v3411_v13, %v9152_v0  ;;  %v9223_v0 = vld [vmem:[#allocation2 + $0xb0] sm:$0x1] }
 0x277   : > { %v9173_v16 = vpop.f32.mrf.mxu2  ;;  %v3923_v9 = vrot.slane %v9181_v46, 5  ;;  %v4744_v29 = vshrl.u32 %v8816_v17, 16  ;;  %v5412_v13 = vunpack.c.l.b16 %v5343_v40  ;;  %v3437_v17 = vshll.u32 %v9181_v46, 16  ;;  %v7325_v58 = vld [vmem:[%s9971_s7 + $0x30] sm:$0xff] }
 0x278   : > { %3710 = vmatmul.bf16.gmra.mxu3 %v3582_v18  ;;  %v3785_v18 = vld [vmem:[#allocation2 + $0x9c] sm:$0xe]  ;;  %v3426_v49 = vsel %vm7713_vm14, %v3421_v41, %v3425_v33  ;;  %v5346_v41 = vrot.slane %v9221_v51, 5  ;;  %v9236_v40 = vadd.f32 %v8973_v34, %v8997_v7  ;;  %v3562_v12 = vunpack.c.l.b16 %v3416_v10  ;;  %7336 = vmatpush.bf16.msrb.mxu1 %v7325_v58 }
 0x279   : > { %v3044_v61 = vpop.f32.mrf.mxu0  ;;  %v6827_v8 = vrot.slane %v3785_v18, 9  ;;  %v3925_v20 = vrot.slane %v3923_v9, 4  ;;  %v3430_v18 = vrot.slane %v3428_v42, 4  ;;  %5951 = vmatpush.bf16.msrb.mxu0 %v7325_v58  ;;  %v5349_v42 = vrot.slane %v9223_v0, 5 }
 0x27a   : > { %v9194_v11 = vadd.f32 %v3044_v61, %v9023_v26  ;;  %4141 = vmatmul.bf16.gmra.mxu1 %v4009_v62  ;;  %v10053_v26 = vld [vmem:[#allocation8_spill] sm:$0xff]  ;;  %v3926_v61 = vrot.slane %v9196_v1, 5  ;;  %v9219_v62 = vld [vmem:[%s9971_s7 + $0x70] sm:$0xff]  ;;  %v3563_v34 = vunpack.c.l.b16 %v3426_v49 }
 0x27b   : > { %v3671_v57 = vpop.f32.mrf.mxu3  ;;  %10054 = vst [vmem:[#allocation8_spill] sm:$0xff] %v9223_v0  ;;  %6040 = vmatpush.bf16.msrb.mxu2 %v9219_v62  ;;  %v3924_v7 = vsel %vm7697_vm13, %v6827_v8, %v3923_v9  ;;  %v4737_v8 = vor.u32 %v9202_v2, %v9200_v25 }
 0x27c   : > { %10052 = vst [vmem:[#allocation7_spill] sm:$0xff] %v9194_v11  ;;  %v3745_v23 = vadd.f32 %v3671_v57, %v10053_v26  ;;  %5108 = vmatmul.bf16.gmra.mxu0 %v5000_v54  ;;  %v7051_v54 = vrot.slane %v5208_v28, 9  ;;  %v3433_v57 = vrot.slane %v3431_v36, 5  ;;  %v9238_v26 = vpack.c.b16 %v5412_v13, %v5411_v63 }
 0x27d   : > { %v5348_v11 = vrot.slane %v5346_v41, 4  ;;  %v3927_v63 = vsel %vm7697_vm13, %v3925_v20, %v3926_v61  ;;  %v9252_v13 = vrot.slane %v3437_v17, 5  ;;  %v4750_v20 = vshll.u32 %v8821_v53, 16  ;;  %v9262_v61 = vld [vmem:[#allocation2 + $0xb8] sm:$0xf] }
 0x27e   : > { %v9211_v39 = vadd.f32 %v9106_v48, %v3745_v23  ;;  %v3441_v48 = vshrl.u32 %v9181_v46, 16  ;;  %v9231_v33 = vpop.f32.mrf.mxu1  ;;  %10055 = vst [vmem:[#allocation40_spill] sm:$0xff] %v9238_v26  ;;  %v5347_v28 = vsel %vm7697_vm13, %v7051_v54, %v5346_v41  ;;  %v9254_v26 = vrot.slane %v4740_v35, 5  ;;  %v10057_v41 = vld [vmem:[#allocation9_spill] sm:$0xff]  ;;  %v9267_v17 = vld [vmem:[#allocation2 + $0xbc] sm:$0x1] }
 0x27f   : > { %v9240_v46 = vpop.f32.mrf.mxu2  ;;  %v4746_v54 = vrot.slane %v4744_v29, 4  ;;  %v5350_v49 = vsel %vm7697_vm13, %v5348_v11, %v5349_v42  ;;  %v3991_v9 = vunpack.c.l.b16 %v3927_v63  ;;  %v3583_v29 = vpack.c.b16 %v3563_v34, %v3562_v12 }
 0x280   : > { %v3443_v58 = vrot.slane %v3441_v48, 4  ;;  %v5209_v48 = vld [vmem:[#allocation2 + $0xb4] sm:$0xe]  ;;  %v5353_v11 = vrot.slane %v9262_v61, 5  ;;  %v4738_v63 = vrot.slane %v4737_v8, 4 }
 0x281   : > { %v3046_v23 = vpop.f32.mrf.mxu0  ;;  %v4747_v25 = vor.u32 %v4746_v54, %v9254_v26  ;;  %v7052_v2 = vrot.slane %v5209_v48, 9 }
 0x282   : > { %v9246_v36 = vadd.f32 %v3046_v23, %v9077_v59  ;;  %v3434_v59 = vor.u32 %v3433_v57, %v3430_v18  ;;  %v5413_v23 = vunpack.c.l.b16 %v5347_v28  ;;  %v3444_v18 = vor.u32 %v3443_v58, %v9252_v13  ;;  %v4538_v58 = vld [vmem:[#allocation2 + $0x78] sm:$0xf] }
 0x283   : > { %v3673_v10 = vpop.f32.mrf.mxu3  ;;  %v3447_v57 = vshll.u32 %v9196_v1, 16  ;;  %v5355_v12 = vrot.slane %v5353_v11, 4  ;;  %v5354_v1 = vsel %vm7697_vm13, %v7052_v2, %v5353_v11  ;;  %v4748_v48 = vrot.slane %v4747_v25, 4  ;;  %v10059_v2 = vld [vmem:[#allocation10_spill] sm:$0xff] }
 0x284   : > { %10056 = vst [vmem:[#allocation41_spill] sm:$0xff] %v9246_v36  ;;  %v3746_v0 = vadd.f32 %v3673_v10, %v10057_v41  ;;  %4456 = vmatmul.bf16.gmra.mxu2 %v7290_v22  ;;  %v3990_v36 = vunpack.c.l.b16 %v3924_v7  ;;  %v5414_v22 = vunpack.c.l.b16 %v5350_v49  ;;  %v3435_v28 = vrot.slane %v3434_v59, 4  ;;  %v3131_v7 = vld [vmem:[#allocation2 + $0xac] sm:$0xf]  ;;  %v3786_v41 = vld [vmem:[#allocation2 + $0xa8] sm:$0xe] }
 0x285   : > { %v4752_v10 = vrot.slane %v4750_v20, 5  ;;  %v3930_v49 = vrot.slane %v3131_v7, 5  ;;  %v3130_v59 = vld [vmem:[#allocation2 + $0xa8] sm:$0xf]  ;;  %v3449_v8 = vrot.slane %v3447_v57, 5 }
 0x286   : > { %v9265_v35 = vadd.f32 %v9144_v50, %v3746_v0  ;;  %v9273_v53 = vpop.f32.mrf.mxu1  ;;  %v9275_v50 = vpack.c.b16 %v5414_v22, %v5413_v23  ;;  %v5356_v0 = vrot.slane %v9267_v17, 5  ;;  %v4010_v34 = vpack.c.b16 %v3991_v9, %v3990_v36  ;;  %v9287_v20 = vld [vmem:[#allocation2 + $0xb0] sm:$0x1] }
 0x287   : > { %v9285_v22 = vpop.f32.mrf.mxu2  ;;  %v3445_v9 = vrot.slane %v3444_v18, 4  ;;  %v3455_v18 = vshll.u32 %v3130_v59, 16 }
 0x288   : > { %3715 = vmatmul.bf16.gmra.mxu3 %v3583_v29  ;;  %10058 = vst [vmem:[#allocation9_spill] sm:$0xff] %v9275_v50  ;;  %v5357_v23 = vsel %vm7697_vm13, %v5355_v12, %v5356_v0  ;;  %v5415_v29 = vunpack.c.l.b16 %v5354_v1  ;;  %v3440_v12 = vsel %vm7713_vm14, %v3435_v28, %v9252_v13  ;;  %v4755_v0 = vshrl.u32 %v4538_v58, 16 }
 0x289   : > { %v3049_v42 = vpop.f32.mrf.mxu0  ;;  %v5416_v11 = vunpack.c.l.b16 %v5357_v23  ;;  %v4758_v1 = vshll.u32 %v4538_v58, 16  ;;  %v6828_v50 = vrot.slane %v3786_v41, 9  ;;  %v3932_v23 = vrot.slane %v3930_v49, 4 }
 0x28a   : > { %v9281_v54 = vadd.f32 %v3049_v42, %v9110_v47  ;;  %4146 = vmatmul.bf16.gmra.mxu1 %v4010_v34  ;;  %v10060_v42 = vpack.c.b16 %v9177_v60, %v9175_v32  ;;  %v3452_v34 = vshrl.u32 %v3130_v59, 16  ;;  %v9304_v32 = vadd.f32 %v9005_v19, %v9053_v3 }
 0x28b   : > { %v3676_v36 = vpop.f32.mrf.mxu3  ;;  %v9296_v57 = vpack.c.b16 %v5416_v11, %v5415_v29  ;;  %v3450_v60 = vsel %vm7713_vm14, %v3445_v9, %v3449_v8  ;;  %v3461_v13 = vshll.u32 %v3131_v7, 16  ;;  %v3465_v28 = vshrl.u32 %v3131_v7, 16  ;;  %v7291_v9 = vld [vmem:[#allocation2 + $0xa8] sm:$0xff] }
 0x28c   : > { %v3747_v47 = vadd.f32 %v3676_v36, %v10059_v2  ;;  %5113 = vmatmul.bf16.gmra.mxu0 %v10060_v42  ;;  %v3933_v36 = vrot.slane %v9287_v20, 5  ;;  %v4743_v41 = vsel %vm7713_vm14, %v4738_v63, %v9254_v26  ;;  %v4757_v59 = vrot.slane %v4755_v0, 4  ;;  %v10062_v0 = vld [vmem:[#allocation13_spill] sm:$0xff] }
 0x28d   : > { %10061 = vst [vmem:[#allocation10_spill] sm:$0xff] %v9296_v57  ;;  %v3564_v11 = vunpack.c.l.b16 %v3440_v12  ;;  %v3454_v2 = vrot.slane %v3452_v34, 4  ;;  %v3457_v19 = vrot.slane %v3455_v18, 5  ;;  %v4760_v3 = vrot.slane %v4758_v1, 5 }
 0x28e   : > { %v9299_v25 = vadd.f32 %v9179_v14, %v3747_v47  ;;  %v9308_v58 = vpop.f32.mrf.mxu1  ;;  %v4753_v14 = vsel %vm7713_vm14, %v4748_v48, %v4752_v10  ;;  %v3565_v7 = vunpack.c.l.b16 %v3450_v60  ;;  %v3931_v8 = vsel %vm7697_vm13, %v6828_v50, %v3930_v49 }
 0x28f   : > { %v3934_v26 = vsel %vm7697_vm13, %v3932_v23, %v3933_v36  ;;  %v9322_v42 = vrot.slane %v3461_v13, 5  ;;  %v3467_v10 = vrot.slane %v3465_v28, 4  ;;  %v4764_v48 = vshll.u32 %v8894_v44, 16  ;;  %v9327_v34 = vpop.f32.mrf.mxu2 }
 0x290   : > { %v4768_v12 = vshrl.u32 %v8894_v44, 16  ;;  %v3992_v18 = vunpack.c.l.b16 %v3931_v8  ;;  %v3993_v60 = vunpack.c.l.b16 %v3934_v26  ;;  %v4978_v50 = vunpack.c.l.b16 %v4753_v14 }
 0x291   : > { %v3051_v29 = vpop.f32.mrf.mxu0  ;;  %v3458_v49 = vor.u32 %v3457_v19, %v3454_v2  ;;  %v3584_v36 = vpack.c.b16 %v3565_v7, %v3564_v11  ;;  %v4761_v13 = vor.u32 %v4760_v3, %v4757_v59  ;;  %v9334_v28 = vadd.f32 %v9061_v15, %v9097_v4  ;;  %v3134_v4 = vld [vmem:[#allocation2 + $0xb8] sm:$0xf]  ;;  %v3133_v2 = vld [vmem:[#allocation2 + $0xb4] sm:$0xf] }
 0x292   : > { %v9316_v47 = vadd.f32 %v3051_v29, %v9148_v5  ;;  %v4977_v5 = vunpack.c.l.b16 %v4743_v41  ;;  %v3468_v44 = vor.u32 %v3467_v10, %v9322_v42  ;;  %v3471_v29 = vshll.u32 %v9287_v20, 16  ;;  %v3787_v3 = vld [vmem:[#allocation2 + $0xb4] sm:$0xe]  ;;  %v9349_v10 = vld [vmem:[#allocation2 + $0xbc] sm:$0x1] }
 0x293   : > { %v3678_v63 = vpop.f32.mrf.mxu3  ;;  %v9338_v41 = vrot.slane %v4764_v48, 5  ;;  %v4774_v14 = vshll.u32 %v8899_v21, 16  ;;  %v4011_v11 = vpack.c.b16 %v3993_v60, %v3992_v18  ;;  %v3459_v15 = vrot.slane %v3458_v49, 4  ;;  %v4541_v60 = vld [vmem:[#allocation2 + $0x84] sm:$0xf] }
 0x294   : > { %v3748_v1 = vadd.f32 %v3678_v63, %v10062_v0  ;;  %4461 = vmatmul.bf16.gmra.mxu2 %v7291_v9  ;;  %v4770_v9 = vrot.slane %v4768_v12, 4  ;;  %v5002_v20 = vpack.c.b16 %v4978_v50, %v4977_v5  ;;  %v3937_v7 = vrot.slane %v3134_v4, 5  ;;  %v10063_v0 = vld [vmem:[#allocation15_spill] sm:$0xff] }
 0x295   : > { %v3469_v63 = vrot.slane %v3468_v44, 4  ;;  %v3473_v21 = vrot.slane %v3471_v29, 5  ;;  %v4762_v48 = vrot.slane %v4761_v13, 4  ;;  %v3476_v18 = vshrl.u32 %v3133_v2, 16 }
 0x296   : > { %v9330_v23 = vadd.f32 %v9231_v33, %v3748_v1  ;;  %v9340_v8 = vpop.f32.mrf.mxu1  ;;  %v7311_v33 = vld [vmem:[%s9969_s5 + $0x200] sm:$0xff]  ;;  %v4771_v12 = vor.u32 %v4770_v9, %v9338_v41  ;;  %v3479_v5 = vshll.u32 %v3133_v2, 16  ;;  %v3464_v50 = vsel %vm7713_vm14, %v3459_v15, %v9322_v42  ;;  %v7324_v15 = vld [vmem:[%s9971_s7 + $0x28] sm:$0xff] }
 0x297   : > { %5508 = vmatpush.bf16.msra.mxu3 %v7311_v33  ;;  %v6829_v49 = vrot.slane %v3787_v3, 9  ;;  %v3489_v44 = vshrl.u32 %v3134_v4, 16  ;;  %v3939_v29 = vrot.slane %v3937_v7, 4  ;;  %v9363_v9 = vadd.f32 %v9102_v37, %v9134_v43  ;;  %v9368_v33 = vpop.f32.mrf.mxu2  ;;  %7337 = vmatpush.bf16.msrb.mxu1 %v7324_v15 }
 0x298   : > { %3720 = vmatmul.bf16.gmra.mxu3 %v3584_v36  ;;  %v3485_v36 = vshll.u32 %v3134_v4, 16  ;;  %v3474_v42 = vsel %vm7713_vm14, %v3469_v63, %v3473_v21  ;;  %v3478_v43 = vrot.slane %v3476_v18, 4  ;;  %v3481_v4 = vrot.slane %v3479_v5, 5  ;;  %5952 = vmatpush.bf16.msrb.mxu0 %v7324_v15 }
 0x299   : > { %v3054_v59 = vpop.f32.mrf.mxu0  ;;  %v4788_v2 = vshll.u32 %v8971_v27, 16  ;;  %v3491_v21 = vrot.slane %v3489_v44, 4 }
 0x29a   : > { %v9347_v19 = vadd.f32 %v3054_v59, %v9188_v38  ;;  %4151 = vmatmul.bf16.gmra.mxu1 %v4011_v11  ;;  %v4776_v38 = vrot.slane %v4774_v14, 5  ;;  %v7332_v14 = vld [vmem:[%s9971_s7 + $0x68] sm:$0xff]  ;;  %v4772_v59 = vrot.slane %v4771_v12, 4  ;;  %v4779_v11 = vshrl.u32 %v4541_v60, 16 }
 0x29b   : > { %v3681_v26 = vpop.f32.mrf.mxu3  ;;  %7343 = vmatpush.bf16.msrb.mxu3 %v9059_v45  ;;  %v3940_v45 = vrot.slane %v9349_v10, 5  ;;  %6041 = vmatpush.bf16.msrb.mxu2 %v7332_v14  ;;  %v9380_v63 = vrot.slane %v3485_v36, 5 }
 0x29c   : > { %v3749_v1 = vadd.f32 %v3681_v26, %v10063_v0  ;;  %5118 = vmatmul.bf16.gmra.mxu0 %v5002_v20  ;;  %v4792_v20 = vshrl.u32 %v8971_v27, 16  ;;  %v3566_v26 = vunpack.c.l.b16 %v3464_v50  ;;  %v3567_v0 = vunpack.c.l.b16 %v3474_v42 }
 0x29d   : > { %v3941_v18 = vsel %vm7697_vm13, %v3939_v29, %v3940_v45  ;;  %v4767_v27 = vsel %vm7713_vm14, %v4762_v48, %v9338_v41  ;;  %v4781_v50 = vrot.slane %v4779_v11, 4  ;;  %v3482_v42 = vor.u32 %v3481_v4, %v3478_v43 }
 0x29e   : > { %v9358_v13 = vadd.f32 %v9273_v53, %v3749_v1  ;;  %v4782_v53 = vshll.u32 %v4541_v60, 16  ;;  %v9376_v37 = vpop.f32.mrf.mxu1  ;;  %v3938_v1 = vsel %vm7697_vm13, %v6829_v49, %v3937_v7  ;;  %v4777_v60 = vsel %vm7713_vm14, %v4772_v59, %v4776_v38 }
 0x29f   : > { %7344 = vmatpush.bf16.msrb.mxu3 %v9219_v62  ;;  %v7292_v62 = vld [vmem:[#allocation2 + $0xb4] sm:$0xff]  ;;  %v9397_v7 = vrot.slane %v4788_v2, 5  ;;  %v4794_v49 = vrot.slane %v4792_v20, 4  ;;  %v3994_v29 = vunpack.c.l.b16 %v3938_v1  ;;  %v3995_v45 = vunpack.c.l.b16 %v3941_v18  ;;  %v9409_v4 = vpop.f32.mrf.mxu2 }
 0x2a0   : > { %v4784_v36 = vrot.slane %v4782_v53, 5  ;;  %v3492_v15 = vor.u32 %v3491_v21, %v9380_v63  ;;  %v3495_v41 = vshll.u32 %v9349_v10, 16  ;;  %v3585_v48 = vpack.c.b16 %v3567_v0, %v3566_v26  ;;  %10065 = vst [vmem:[#allocation13_spill] sm:$0xff] %v9409_v4 }
 0x2a1   : > { %v3056_v3 = vpop.f32.mrf.mxu0  ;;  %v4980_v38 = vunpack.c.l.b16 %v4777_v60  ;;  %v4795_v53 = vor.u32 %v4794_v49, %v9397_v7  ;;  %v4798_v43 = vshll.u32 %v8968_v24, 16  ;;  %v4012_v20 = vpack.c.b16 %v3995_v45, %v3994_v29  ;;  %v4544_v29 = vld [vmem:[#allocation2 + $0x90] sm:$0xf] }
 0x2a2   : > { %v9383_v12 = vadd.f32 %v3056_v3, %v9236_v40  ;;  %v10064_v40 = vld [vmem:[#allocation17_spill] sm:$0xff]  ;;  %v4979_v3 = vunpack.c.l.b16 %v4767_v27  ;;  %v4785_v11 = vor.u32 %v4784_v36, %v4781_v50  ;;  %v3483_v10 = vrot.slane %v3482_v42, 4  ;;  %v10066_v27 = vld [vmem:[#allocation20_spill] sm:$0xff] }
 0x2a3   : > { %v3683_v5 = vpop.f32.mrf.mxu3  ;;  %7345 = vmatpush.bf16.msrb.mxu3 %v7332_v14  ;;  %v9403_v14 = vadd.f32 %v9138_v55, %v9167_v6  ;;  %v3493_v26 = vrot.slane %v3492_v15, 4  ;;  %v3497_v21 = vrot.slane %v3495_v41, 5  ;;  %v9414_v6 = vld [vmem:[#allocation2 + $0xc8] sm:$0x1]  ;;  %v4800_v50 = vrot.slane %v4798_v43, 5 }
 0x2a4   : > { %v9395_v44 = vadd.f32 %v3683_v5, %v10064_v40  ;;  %4466 = vmatmul.bf16.gmra.mxu2 %v7292_v62  ;;  %v3137_v62 = vld [vmem:[#allocation2 + $0xc4] sm:$0xf]  ;;  %v5003_v55 = vpack.c.b16 %v4980_v38, %v4979_v3  ;;  %v3788_v5 = vld [vmem:[#allocation2 + $0xc0] sm:$0xe]  ;;  %v4786_v60 = vrot.slane %v4785_v11, 4  ;;  %v3488_v40 = vsel %vm7713_vm14, %v3483_v10, %v9380_v63 }
 0x2a5   : > { %v3944_v1 = vrot.slane %v3137_v62, 5  ;;  %v3136_v36 = vld [vmem:[#allocation2 + $0xc0] sm:$0xf]  ;;  %v3947_v42 = vrot.slane %v9414_v6, 5  ;;  %v4796_v49 = vrot.slane %v4795_v53, 4  ;;  %v6830_v15 = vrot.slane %v3788_v5, 9 }
 0x2a6   : > { %v9405_v59 = vpop.f32.mrf.mxu1  ;;  %v3500_v3 = vshrl.u32 %v3136_v36, 16  ;;  %v3503_v38 = vshll.u32 %v3136_v36, 16  ;;  %v3509_v11 = vshll.u32 %v3137_v62, 16  ;;  %v3513_v63 = vshrl.u32 %v3137_v62, 16  ;;  %v7293_v62 = vld [vmem:[#allocation2 + $0xc0] sm:$0xff] }
 0x2a7   : > { %v3946_v41 = vrot.slane %v3944_v1, 4  ;;  %v4791_v53 = vsel %vm7713_vm14, %v4786_v60, %v9397_v7  ;;  %v3568_v10 = vunpack.c.l.b16 %v3488_v40  ;;  %v3945_v5 = vsel %vm7697_vm13, %v6830_v15, %v3944_v1 }
 0x2a8   : > { %3725 = vmatmul.bf16.gmra.mxu3 %v3585_v48  ;;  %v9428_v48 = vadd.f32 %v9173_v16, %v9211_v39  ;;  %v3502_v60 = vrot.slane %v3500_v3, 4  ;;  %v3511_v36 = vrot.slane %v3509_v11, 5  ;;  %v3515_v40 = vrot.slane %v3513_v63, 4 }
 0x2a9   : > { %v5084_v2 = vpop.f32.mrf.mxu0  ;;  %v3948_v7 = vsel %vm7697_vm13, %v3946_v41, %v3947_v42  ;;  %v4981_v4 = vunpack.c.l.b16 %v4791_v53  ;;  %v9453_v41 = vadd.f32 %v9240_v46, %v9265_v35  ;;  %v3519_v11 = vshll.u32 %v9414_v6, 16 }
 0x2aa   : > { %v9412_v0 = vadd.f32 %v5084_v2, %v9304_v32  ;;  %4156 = vmatmul.bf16.gmra.mxu1 %v4012_v20  ;;  %v3498_v32 = vsel %vm7713_vm14, %v3493_v26, %v3497_v21  ;;  %v4803_v2 = vshrl.u32 %v4544_v29, 16  ;;  %v4806_v20 = vshll.u32 %v4544_v29, 16  ;;  %v10067_v21 = vld [vmem:[#allocation39_spill] sm:$0xff] }
 0x2ab   : > { %v3686_v18 = vpop.f32.mrf.mxu3  ;;  %v4801_v26 = vsel %vm7713_vm14, %v4796_v49, %v4800_v50  ;;  %v4812_v16 = vshll.u32 %v10067_v21, 16  ;;  %v4816_v39 = vshrl.u32 %v10067_v21, 16  ;;  %v3505_v50 = vrot.slane %v3503_v38, 5  ;;  %v10068_v49 = vld [vmem:[#allocation21_spill] sm:$0xff] }
 0x2ac   : > { %v3751_v24 = vadd.f32 %v3686_v18, %v10066_v27  ;;  %5123 = vmatmul.bf16.gmra.mxu0 %v5003_v55  ;;  %v3569_v18 = vunpack.c.l.b16 %v3498_v32  ;;  %v9446_v27 = vpop.f32.mrf.mxu2  ;;  %v3996_v32 = vunpack.c.l.b16 %v3945_v5  ;;  %v3997_v21 = vunpack.c.l.b16 %v3948_v7  ;;  %v10070_v7 = vld [vmem:[#allocation23_spill] sm:$0xff] }
 0x2ad   : > { %v4814_v57 = vrot.slane %v4812_v16, 5  ;;  %v4818_v1 = vrot.slane %v4816_v39, 4  ;;  %v4982_v42 = vunpack.c.l.b16 %v4801_v26  ;;  %v3506_v3 = vor.u32 %v3505_v50, %v3502_v60  ;;  %v10069_v16 = vld [vmem:[#allocation38_spill] sm:$0xff] }
 0x2ae   : > { %v9424_v45 = vadd.f32 %v9340_v8, %v3751_v24  ;;  %v9430_v43 = vpop.f32.mrf.mxu1  ;;  %v3586_v15 = vpack.c.b16 %v3569_v18, %v3568_v10  ;;  %v3516_v38 = vor.u32 %v3515_v40, %v3511_v36  ;;  %v4822_v39 = vshll.u32 %v10069_v16, 16 }
 0x2af   : > { %v4819_v5 = vor.u32 %v4818_v1, %v4814_v57  ;;  %v5004_v10 = vpack.c.b16 %v4982_v42, %v4981_v4  ;;  %v3507_v46 = vrot.slane %v3506_v3, 4  ;;  %v3521_v18 = vrot.slane %v3519_v11, 5  ;;  %v7331_v4 = vld [vmem:[%s9971_s7 + $0x60] sm:$0xff] }
 0x2b0   : > { %v3517_v35 = vrot.slane %v3516_v38, 4  ;;  %v4824_v40 = vrot.slane %v4822_v39, 5  ;;  %6042 = vmatpush.bf16.msrb.mxu2 %v7331_v4  ;;  %7346 = vmatpush.bf16.msrb.mxu3 %v7331_v4  ;;  %v4836_v42 = vshll.u32 %v9131_v56, 16  ;;  %v7294_v38 = vld [vmem:[#allocation2 + $0xcc] sm:$0xff] }
 0x2b1   : > { %v5086_v8 = vpop.f32.mrf.mxu0  ;;  %v4820_v50 = vrot.slane %v4819_v5, 4 }
 0x2b2   : > { %v9440_v55 = vadd.f32 %v5086_v8, %v9334_v28  ;;  %v4805_v28 = vrot.slane %v4803_v2, 4  ;;  %v4808_v8 = vrot.slane %v4806_v20, 5 }
 0x2b3   : > { %v3688_v24 = vpop.f32.mrf.mxu3  ;;  %v4825_v1 = vsel %vm7713_vm14, %v4820_v50, %v4824_v40 }
 0x2b4   : > { %v9449_v29 = vadd.f32 %v3688_v24, %v10068_v49  ;;  %4471 = vmatmul.bf16.gmra.mxu2 %v7293_v62  ;;  %v4809_v2 = vor.u32 %v4808_v8, %v4805_v28  ;;  %v4013_v62 = vpack.c.b16 %v3997_v21, %v3996_v32  ;;  %v9463_v60 = vpop.f32.mrf.mxu2  ;;  %v4547_v28 = vld [vmem:[#allocation2 + $0x9c] sm:$0xf]  ;;  %v3512_v8 = vsel %vm7713_vm14, %v3507_v46, %v3511_v36 }
 0x2b5   : > { %v3522_v32 = vsel %vm7713_vm14, %v3517_v35, %v3521_v18  ;;  %v4830_v36 = vshll.u32 %v4547_v28, 16  ;;  %v3570_v11 = vunpack.c.l.b16 %v3512_v8  ;;  %v4984_v39 = vunpack.c.l.b16 %v4825_v1 }
 0x2b6   : > { %v4810_v24 = vrot.slane %v4809_v2, 4  ;;  %v3571_v2 = vunpack.c.l.b16 %v3522_v32  ;;  %v4838_v35 = vrot.slane %v4836_v42, 5  ;;  %v10072_v32 = vld [vmem:[#allocation28_spill] sm:$0xff]  ;;  %v9512_v1 = vadd.f32 %v9368_v33, %v9358_v13 }
 0x2b7   : > { %v9456_v63 = vpop.f32.mrf.mxu1  ;;  %v4860_v13 = vshll.u32 %v9221_v51, 16  ;;  %v4864_v33 = vshrl.u32 %v9221_v51, 16 }
 0x2b8   : > { %3730 = vmatmul.bf16.gmra.mxu3 %v3586_v15  ;;  %v4827_v15 = vshrl.u32 %v4547_v28, 16  ;;  %v3587_v46 = vpack.c.b16 %v3571_v2, %v3570_v11  ;;  %v4846_v28 = vshll.u32 %v9142_v31, 16 }
 0x2b9   : > { %v5089_v20 = vpop.f32.mrf.mxu0 }
 0x2ba   : > { %v9460_v53 = vadd.f32 %v5089_v20, %v9363_v9  ;;  %4161 = vmatmul.bf16.gmra.mxu1 %v4013_v62  ;;  %v9470_v9 = vadd.f32 %v9285_v22, %v9299_v25  ;;  %v4815_v22 = vsel %vm7713_vm14, %v4810_v24, %v4814_v57  ;;  %v4840_v57 = vshrl.u32 %v9131_v56, 16  ;;  %v10071_v62 = vld [vmem:[#allocation27_spill] sm:$0xff] }
 0x2bb   : > { %v3691_v26 = vpop.f32.mrf.mxu3  ;;  %v4983_v16 = vunpack.c.l.b16 %v4815_v22 }
 0x2bc   : > { %v3753_v6 = vadd.f32 %v3691_v26, %v10070_v7  ;;  %5128 = vmatmul.bf16.gmra.mxu0 %v5004_v10  ;;  %v4829_v10 = vrot.slane %v4827_v15, 4  ;;  %v4832_v26 = vrot.slane %v4830_v36, 5  ;;  %v4842_v18 = vrot.slane %v4840_v57, 4  ;;  %v9500_v7 = vpop.f32.mrf.mxu2  ;;  %v4550_v15 = vld [vmem:[#allocation2 + $0xa8] sm:$0xf] }
 0x2bd   : > { %v5005_v40 = vpack.c.b16 %v4984_v39, %v4983_v16  ;;  %v4851_v2 = vshrl.u32 %v4550_v15, 16  ;;  %v4854_v57 = vshll.u32 %v4550_v15, 16 }
 0x2be   : > { %v9466_v49 = vadd.f32 %v9405_v59, %v3753_v6  ;;  %v7323_v59 = vld [vmem:[%s9971_s7 + $0x20] sm:$0xff]  ;;  %v4833_v24 = vor.u32 %v4832_v26, %v4829_v10  ;;  %v4843_v4 = vor.u32 %v4842_v18, %v4838_v35  ;;  %v4862_v26 = vrot.slane %v4860_v13, 5 }
 0x2bf   : > { %v9482_v21 = vpop.f32.mrf.mxu1  ;;  %7338 = vmatpush.bf16.msrb.mxu1 %v7323_v59  ;;  %5953 = vmatpush.bf16.msrb.mxu0 %v7323_v59  ;;  %v4856_v10 = vrot.slane %v4854_v57, 5  ;;  %v9552_v13 = vadd.f32 %v9446_v27, %v9424_v45 }
 0x2c0   : > { %v4834_v22 = vrot.slane %v4833_v24, 4  ;;  %v9533_v24 = vld [vmem:[#allocation2 + $0xd0] sm:$0xf] }
 0x2c1   : > { %v5091_v25 = vpop.f32.mrf.mxu0 }
 0x2c2   : > { %v9490_v3 = vadd.f32 %v5091_v25, %v9403_v14  ;;  %v9498_v14 = vadd.f32 %v9327_v34, %v9330_v23  ;;  %v4844_v23 = vrot.slane %v4843_v4, 4  ;;  %v4848_v25 = vrot.slane %v4846_v28, 5  ;;  %v9538_v4 = vld [vmem:[#allocation2 + $0xd4] sm:$0x1]  ;;  %v5211_v28 = vld [vmem:[#allocation2 + $0xcc] sm:$0xe] }
 0x2c3   : > { %v3693_v20 = vpop.f32.mrf.mxu3 }
 0x2c4   : > { %v9494_v5 = vadd.f32 %v3693_v20, %v10071_v62  ;;  %4476 = vmatmul.bf16.gmra.mxu2 %v7294_v38  ;;  %v9516_v36 = vpop.f32.mrf.mxu2  ;;  %v4839_v38 = vsel %vm7713_vm14, %v4834_v22, %v4838_v35  ;;  %v10073_v20 = vld [vmem:[#allocation30_spill] sm:$0xff]  ;;  %v10074_v35 = vld [vmem:[#allocation11_spill] sm:$0xff] }
 0x2c5   : > { %v4985_v16 = vunpack.c.l.b16 %v4839_v38  ;;  %v10076_v38 = vld [vmem:[#allocation31_spill] sm:$0xff] }
 0x2c7   : > { %v4127_v56 = vpop.f32.mrf.mxu1 }
 0x2c8   : > { %3735 = vmatmul.bf16.gmra.mxu3 %v3587_v46  ;;  %v4866_v46 = vrot.slane %v4864_v33, 4  ;;  %v7330_v33 = vld [vmem:[%s9971_s7 + $0x58] sm:$0xff] }
 0x2c9   : > { %v5094_v6 = vpop.f32.mrf.mxu0  ;;  %6043 = vmatpush.bf16.msrb.mxu2 %v7330_v33  ;;  %7347 = vmatpush.bf16.msrb.mxu3 %v7330_v33 }
 0x2ca   : > { %v9503_v50 = vadd.f32 %v5094_v6, %v9428_v48 }
 0x2cb   : > { %v3696_v8 = vpop.f32.mrf.mxu3 }
 0x2cc   : > { %v3755_v59 = vadd.f32 %v3696_v8, %v10072_v32  ;;  %5133 = vmatmul.bf16.gmra.mxu0 %v5005_v40  ;;  %v5367_v8 = vrot.slane %v9533_v24, 5  ;;  %v9541_v32 = vpop.f32.mrf.mxu2 }
 0x2ce   : > { %v9508_v34 = vadd.f32 %v9456_v63, %v3755_v59  ;;  %v4849_v63 = vsel %vm7713_vm14, %v4844_v23, %v4848_v25  ;;  %v4867_v23 = vor.u32 %v4866_v46, %v4862_v26  ;;  %v10075_v25 = vld [vmem:[#allocation8_spill] sm:$0xff] }
 0x2cf   : > { %v9514_v48 = vpop.f32.mrf.mxu1  ;;  %v4986_v39 = vunpack.c.l.b16 %v4849_v63  ;;  %v4870_v15 = vshll.u32 %v10075_v25, 16 }
 0x2d1   : > { %v5096_v31 = vpop.f32.mrf.mxu0  ;;  %v5006_v51 = vpack.c.b16 %v4986_v39, %v4985_v16  ;;  %v4872_v46 = vrot.slane %v4870_v15, 5 }
 0x2d2   : > { %v9519_v42 = vadd.f32 %v5096_v31, %v9453_v41  ;;  %v4853_v41 = vrot.slane %v4851_v2, 4  ;;  %v7054_v31 = vrot.slane %v5211_v28, 9 }
 0x2d3   : > { %v3698_v11 = vpop.f32.mrf.mxu3 }
 0x2d4   : > { %v9528_v62 = vadd.f32 %v3698_v11, %v10073_v20  ;;  %v4857_v22 = vor.u32 %v4856_v10, %v4853_v41  ;;  %v5369_v11 = vrot.slane %v5367_v8, 4  ;;  %v5368_v2 = vsel %vm7697_vm13, %v7054_v31, %v5367_v8  ;;  %v4553_v20 = vld [vmem:[#allocation2 + $0xb4] sm:$0xf]  ;;  %v10078_v31 = vld [vmem:[#allocation33_spill] sm:$0xff] }
 0x2d5   : > { %v5419_v39 = vunpack.c.l.b16 %v5368_v2  ;;  %v4868_v10 = vrot.slane %v4867_v23, 4  ;;  %v4875_v27 = vshrl.u32 %v4553_v20, 16 }
 0x2d6   : > { %v4858_v41 = vrot.slane %v4857_v22, 4  ;;  %v4888_v22 = vshrl.u32 %v9262_v61, 16 }
 0x2d7   : > { %v9531_v18 = vpop.f32.mrf.mxu1  ;;  %v4873_v15 = vsel %vm7713_vm14, %v4868_v10, %v4872_v46  ;;  %v4894_v46 = vshll.u32 %v9267_v17, 16 }
 0x2d8   : > { %5509 = vmatmul.bf16.vlgmr.msra.gmra.mxu3 %v10074_v35  ;;  %v4863_v25 = vsel %vm7713_vm14, %v4858_v41, %v4862_v26  ;;  %v4988_v2 = vunpack.c.l.b16 %v4873_v15  ;;  %v4556_v15 = vld [vmem:[#allocation2 + $0xc0] sm:$0xf] }
 0x2d9   : > { %v5099_v6 = vpop.f32.mrf.mxu0 }
 0x2da   : > { %v9536_v40 = vadd.f32 %v5099_v6, %v9470_v9  ;;  %v5370_v9 = vrot.slane %v9538_v4, 5 }
 0x2db   : > { %v3701_v59 = vpop.f32.mrf.mxu3 }
 0x2dc   : > { %v3757_v63 = vadd.f32 %v3701_v59, %v10076_v38  ;;  %5138 = vmatmul.bf16.gmra.mxu0 %v5006_v51  ;;  %v5371_v16 = vsel %vm7697_vm13, %v5369_v11, %v5370_v9  ;;  %v4878_v51 = vshll.u32 %v4553_v20, 16  ;;  %v4884_v59 = vshll.u32 %v9262_v61, 16 }
 0x2dd   : > { %v5420_v35 = vunpack.c.l.b16 %v5371_v16  ;;  %v4877_v11 = vrot.slane %v4875_v27, 4  ;;  %v4890_v20 = vrot.slane %v4888_v22, 4  ;;  %v10079_v16 = vld [vmem:[#allocation12_spill] sm:$0xff] }
 0x2de   : > { %v9548_v57 = vadd.f32 %v4127_v56, %v3757_v63  ;;  %v7322_v56 = vld [vmem:[%s9971_s7 + $0x18] sm:$0xff]  ;;  %v9578_v63 = vpop.f32.mrf.mxu2  ;;  %v4880_v9 = vrot.slane %v4878_v51, 5  ;;  %v4886_v33 = vrot.slane %v4884_v59, 5 }
 0x2df   : > { %v9562_v6 = vpop.f32.mrf.mxu1  ;;  %7339 = vmatpush.bf16.msrb.mxu1 %v7322_v56  ;;  %5954 = vmatpush.bf16.msrb.mxu0 %v7322_v56  ;;  %v9564_v28 = vpack.c.b16 %v5420_v35, %v5419_v39 }
 0x2e0   : > { %v4881_v56 = vor.u32 %v4880_v9, %v4877_v11  ;;  %v4891_v10 = vor.u32 %v4890_v20, %v4886_v33  ;;  %v4902_v20 = vshll.u32 %v4556_v15, 16 }
 0x2e1   : > { %v5101_v45 = vpop.f32.mrf.mxu0  ;;  %10077 = vst [vmem:[#allocation15_spill] sm:$0xff] %v9564_v28 }
 0x2e2   : > { %v9567_v8 = vadd.f32 %v5101_v45, %v9498_v14  ;;  %v4987_v14 = vunpack.c.l.b16 %v4863_v25  ;;  %v10080_v45 = vld [vmem:[#allocation34_spill] sm:$0xff]  ;;  %v4882_v51 = vrot.slane %v4881_v56, 4  ;;  %v4892_v22 = vrot.slane %v4891_v10, 4 }
 0x2e3   : > { %v3703_v23 = vpop.f32.mrf.mxu3  ;;  %v9591_v25 = vadd.f32 %v9500_v7, %v9466_v49 }
 0x2e4   : > { %v9576_v38 = vadd.f32 %v3703_v23, %v10078_v31  ;;  %v5007_v41 = vpack.c.b16 %v4988_v2, %v4987_v14  ;;  %v4896_v23 = vrot.slane %v4894_v46, 5  ;;  %v9595_v31 = vld [vmem:[#allocation2 + $0xc4] sm:$0xf]  ;;  %v4887_v11 = vsel %vm7713_vm14, %v4882_v51, %v4886_v33 }
 0x2e5   : > { %v4899_v2 = vshrl.u32 %v4556_v15, 16  ;;  %v4908_v49 = vshll.u32 %v9595_v31, 16  ;;  %v4912_v7 = vshrl.u32 %v9595_v31, 16  ;;  %v4989_v56 = vunpack.c.l.b16 %v4887_v11 }
 0x2e6   : > { %v4904_v46 = vrot.slane %v4902_v20, 5 }
 0x2e7   : > { %v4137_v61 = vpop.f32.mrf.mxu1  ;;  %v4901_v10 = vrot.slane %v4899_v2, 4  ;;  %v4910_v33 = vrot.slane %v4908_v49, 5  ;;  %v10083_v2 = vld [vmem:[#allocation19_spill] sm:$0xff] }
 0x2e8   : > { %5514 = vmatmul.bf16.gmra.mxu3 %v10079_v16  ;;  %v10081_v16 = vld [vmem:[#allocation35_spill] sm:$0xff] }
 0x2e9   : > { %v5104_v39 = vpop.f32.mrf.mxu0 }
 0x2ea   : > { %v9582_v26 = vadd.f32 %v5104_v39, %v9512_v1  ;;  %v9593_v1 = vpop.f32.mrf.mxu2 }
 0x2eb   : > { %v3706_v35 = vpop.f32.mrf.mxu3 }
 0x2ec   : > { %v3759_v27 = vadd.f32 %v3706_v35, %v10080_v45  ;;  %5143 = vmatmul.bf16.gmra.mxu0 %v5007_v41  ;;  %v4914_v35 = vrot.slane %v4912_v7, 4  ;;  %v10082_v45 = vld [vmem:[#allocation14_spill] sm:$0xff] }
 0x2ee   : > { %v9587_v59 = vadd.f32 %v9531_v18, %v3759_v27  ;;  %v4897_v18 = vsel %vm7713_vm14, %v4892_v22, %v4896_v23  ;;  %v9611_v27 = vld [vmem:[#allocation2 + $0xc8] sm:$0x1] }
 0x2ef   : > { %v9603_v9 = vpop.f32.mrf.mxu1  ;;  %v4990_v41 = vunpack.c.l.b16 %v4897_v18  ;;  %v4918_v11 = vshll.u32 %v9611_v27, 16  ;;  %v4178_v18 = vadd.f32 %v9376_v37, %v9449_v29  ;;  %v7321_v37 = vld [vmem:[%s9971_s7 + $0x10] sm:$0xff] }
 0x2f0   : > { %7340 = vmatpush.bf16.msrb.mxu1 %v7321_v37  ;;  %5955 = vmatpush.bf16.msrb.mxu0 %v7321_v37 }
 0x2f1   : > { %v9597_v17 = vpop.f32.mrf.mxu0  ;;  %v5008_v15 = vpack.c.b16 %v4990_v41, %v4989_v56  ;;  %v4493_v29 = vadd.f32 %v9463_v60, %v4178_v18  ;;  %v4936_v60 = vshrl.u32 %v9533_v24, 16 }
 0x2f2   : > { %v9613_v51 = vpop.f32.mrf.mxu2 }
 0x2f3   : > { %v3708_v14 = vpop.f32.mrf.mxu3 }
 0x2f4   : > { %v9608_v39 = vadd.f32 %v3708_v14, %v10081_v16  ;;  %v4905_v14 = vor.u32 %v4904_v46, %v4901_v10  ;;  %v4915_v16 = vor.u32 %v4914_v35, %v4910_v33  ;;  %v4920_v10 = vrot.slane %v4918_v11, 5  ;;  %v4559_v46 = vld [vmem:[#allocation2 + $0xcc] sm:$0xf]  ;;  %v10085_v11 = vld [vmem:[#allocation36_spill] sm:$0xff] }
 0x2f6   : > { %v4906_v56 = vrot.slane %v4905_v14, 4  ;;  %v4916_v41 = vrot.slane %v4915_v16, 4  ;;  %v4932_v16 = vshll.u32 %v9533_v24, 16 }
 0x2f7   : > { %v4142_v49 = vpop.f32.mrf.mxu1 }
 0x2f8   : > { %5519 = vmatmul.bf16.gmra.mxu3 %v10082_v45  ;;  %v4496_v45 = vadd.f32 %v9541_v32, %v9508_v34  ;;  %v4923_v32 = vshrl.u32 %v4559_v46, 16  ;;  %v4921_v14 = vsel %vm7713_vm14, %v4916_v41, %v4920_v10 }
 0x2f9   : > { %v5109_v22 = vpop.f32.mrf.mxu0 }
 0x2fa   : > { %v9616_v23 = vadd.f32 %v5109_v22, %v9552_v13  ;;  %v7329_v13 = vld [vmem:[%s9971_s7 + $0x50] sm:$0xff]  ;;  %v4447_v35 = vpop.f32.mrf.mxu2 }
 0x2fb   : > { %v3711_v28 = vpop.f32.mrf.mxu3  ;;  %6044 = vmatpush.bf16.msrb.mxu2 %v7329_v13  ;;  %7348 = vmatpush.bf16.msrb.mxu3 %v7329_v13 }
 0x2fc   : > { %v3761_v20 = vadd.f32 %v3711_v28, %v10083_v2  ;;  %5148 = vmatmul.bf16.gmra.mxu0 %v5008_v15  ;;  %v4911_v15 = vsel %vm7713_vm14, %v4906_v56, %v4910_v33 }
 0x2fd   : > { %v4991_v2 = vunpack.c.l.b16 %v4911_v15  ;;  %v4180_v15 = vadd.f32 %v9430_v43, %v9494_v5 }
 0x2fe   : > { %v9622_v7 = vadd.f32 %v4137_v61, %v3761_v20  ;;  %v4926_v61 = vshll.u32 %v4559_v46, 16  ;;  %v4992_v20 = vunpack.c.l.b16 %v4921_v14  ;;  %v4925_v46 = vrot.slane %v4923_v32, 4  ;;  %v10087_v14 = vld [vmem:[#allocation37_spill] sm:$0xff] }
 0x2ff   : > { %v9644_v13 = vpop.f32.mrf.mxu1 }
 0x300   : > { %v4928_v37 = vrot.slane %v4926_v61, 5  ;;  %v5009_v41 = vpack.c.b16 %v4992_v20, %v4991_v2  ;;  %v4495_v2 = vadd.f32 %v9516_v36, %v4180_v15 }
 0x301   : > { %v5111_v28 = vpop.f32.mrf.mxu0 }
 0x302   : > { %v9633_v34 = vadd.f32 %v5111_v28, %v4493_v29  ;;  %v4934_v29 = vrot.slane %v4932_v16, 5  ;;  %v4938_v28 = vrot.slane %v4936_v60, 4  ;;  %v4929_v24 = vor.u32 %v4928_v37, %v4925_v46  ;;  %v9654_v61 = vpop.f32.mrf.mxu2 }
 0x303   : > { %v3713_v22 = vpop.f32.mrf.mxu3 }
 0x304   : > { %10084 = vst [vmem:[#allocation17_spill] sm:$0xff] %v9633_v34  ;;  %v9642_v18 = vadd.f32 %v3713_v22, %v10085_v11  ;;  %v10086_v34 = vld [vmem:[#allocation16_spill] sm:$0xff]  ;;  %v4939_v30 = vor.u32 %v4938_v28, %v4934_v29  ;;  %v4942_v22 = vshll.u32 %v9538_v4, 16 }
 0x306   : > { %v4940_v60 = vrot.slane %v4939_v30, 4  ;;  %v4944_v11 = vrot.slane %v4942_v22, 5 }
 0x307   : > { %v4147_v20 = vpop.f32.mrf.mxu1 }
 0x308   : > { %5524 = vmatmul.bf16.gmra.mxu3 %v10086_v34  ;;  %v4498_v34 = vadd.f32 %v9593_v1, %v9548_v57  ;;  %v4945_v5 = vsel %vm7713_vm14, %v4940_v60, %v4944_v11 }
 0x309   : > { %v5114_v33 = vpop.f32.mrf.mxu0  ;;  %v4994_v1 = vunpack.c.l.b16 %v4945_v5 }
 0x30a   : > { %v9648_v56 = vadd.f32 %v5114_v33, %v9591_v25  ;;  %v4930_v25 = vrot.slane %v4929_v24, 4  ;;  %v4452_v30 = vpop.f32.mrf.mxu2  ;;  %v10089_v33 = vld [vmem:[#allocation22_spill] sm:$0xff] }
 0x30b   : > { %v3716_v10 = vpop.f32.mrf.mxu3 }
 0x30c   : > { %v3763_v32 = vadd.f32 %v3716_v10, %v10087_v14  ;;  %5153 = vmatmul.bf16.gmra.mxu0 %v5009_v41  ;;  %v4935_v43 = vsel %vm7713_vm14, %v4930_v25, %v4934_v29  ;;  %v4182_v29 = vadd.f32 %v9482_v21, %v9528_v62  ;;  %v7328_v25 = vld [vmem:[%s9971_s7 + $0x48] sm:$0xff] }
 0x30d   : > { %v4993_v57 = vunpack.c.l.b16 %v4935_v43  ;;  %6045 = vmatpush.bf16.msrb.mxu2 %v7328_v25  ;;  %7349 = vmatpush.bf16.msrb.mxu3 %v7328_v25 }
 0x30e   : > { %v4189_v16 = vadd.f32 %v4142_v49, %v3763_v32  ;;  %v10088_v49 = vld [vmem:[#allocation4_spill] sm:$0xff]  ;;  %v4500_v32 = vadd.f32 %v4447_v35, %v9587_v59  ;;  %v4497_v60 = vadd.f32 %v9578_v63, %v4182_v29  ;;  %v10091_v59 = vld [vmem:[#allocation6_spill] sm:$0xff] }
 0x30f   : > { %v5010_v10 = vpack.c.b16 %v4994_v1, %v4993_v57  ;;  %v9671_v24 = vpop.f32.mrf.mxu1  ;;  %v10093_v57 = vld [vmem:[#allocation7_spill] sm:$0xff] }
 0x311   : > { %v5116_v46 = vpop.f32.mrf.mxu0 }
 0x312   : > { %v9659_v4 = vadd.f32 %v5116_v46, %v4495_v2  ;;  %v4454_v21 = vpop.f32.mrf.mxu2  ;;  %v10092_v46 = vld [vmem:[#allocation29_spill] sm:$0xff] }
 0x313   : > { %v3718_v37 = vpop.f32.mrf.mxu3 }
 0x314   : > { %v9666_v28 = vadd.f32 %v3718_v37, %v10088_v49  ;;  %v4184_v49 = vadd.f32 %v9514_v48, %v9576_v38 }
 0x318   : > { %5529 = vmatmul.bf16.gmra.mxu3 %v10089_v33 }
 0x319   : > { %v5119_v36 = vpop.f32.mrf.mxu0 }
 0x31a   : > { %v9669_v41 = vadd.f32 %v5119_v36, %v4496_v45  ;;  %v7320_v45 = vld [vmem:[%s9971_s7 + $0x8] sm:$0xff]  ;;  %v4457_v5 = vpop.f32.mrf.mxu2  ;;  %v4502_v36 = vadd.f32 %v4452_v30, %v9622_v7  ;;  %v4186_v30 = vadd.f32 %v9562_v6, %v9608_v39  ;;  %v7327_v6 = vld [vmem:[%s9971_s7 + $0x40] sm:$0xff]  ;;  %v10096_v39 = vld [vmem:[#allocation26_spill] sm:$0xff] }
 0x31b   : > { %v3721_v22 = vpop.f32.mrf.mxu3  ;;  %7341 = vmatpush.bf16.msrb.mxu1 %v7320_v45  ;;  %5956 = vmatpush.bf16.msrb.mxu0 %v7320_v45  ;;  %v4504_v48 = vadd.f32 %v4457_v5, %v4189_v16 }
 0x31c   : > { %v3765_v15 = vadd.f32 %v3721_v22, %v10090_v52  ;;  %5158 = vmatmul.bf16.gmra.mxu0 %v5010_v10  ;;  %v4499_v22 = vadd.f32 %v9613_v51, %v4184_v49  ;;  %6046 = vmatpush.bf16.msrb.mxu2 %v7327_v6 }
 0x31d   : > { %7350 = vmatpush.bf16.msrb.mxu3 %v7327_v6 }
 0x31e   : > { %v9676_v14 = vadd.f32 %v4147_v20, %v3765_v15  ;;  %v4152_v20 = vpop.f32.mrf.mxu1 }
 0x321   : > { %v5121_v62 = vpop.f32.mrf.mxu0 }
 0x322   : > { %v9686_v11 = vadd.f32 %v5121_v62, %v4497_v60  ;;  %v4459_v45 = vpop.f32.mrf.mxu2  ;;  %v10095_v60 = vld [vmem:[#allocation32_spill] sm:$0xff] }
 0x323   : > { %v3723_v2 = vpop.f32.mrf.mxu3 }
 0x324   : > { %v9689_v35 = vadd.f32 %v3723_v2, %v10091_v59 }
 0x326   : > { %v9698_v10 = vpop.f32.mrf.mxu1 }
 0x328   : > { %5534 = vmatmul.bf16.gmra.mxu3 %v10092_v46  ;;  %v4501_v46 = vadd.f32 %v9654_v61, %v4186_v30 }
 0x329   : > { %v5124_v37 = vpop.f32.mrf.mxu0 }
 0x32a   : > { %v9692_v43 = vadd.f32 %v5124_v37, %v4498_v34  ;;  %v10094_v34 = vld [vmem:[#allocation41_spill] sm:$0xff] }
 0x32b   : > { %v3726_v63 = vpop.f32.mrf.mxu3 }
 0x32c   : > { %v3767_v1 = vadd.f32 %v3726_v63, %v10093_v57  ;;  %v7380_v57 = vld [vmem:[%s7523_s16] sm:$0xff] }
 0x32d   : > { %6047 = vmatmul.bf16.vlgmr.msrb.gmra.mxu2 %v7380_v57 }
 0x32e   : > { %v4193_v33 = vadd.f32 %v4152_v20, %v3767_v1  ;;  %v4157_v38 = vpop.f32.mrf.mxu1  ;;  %v4462_v20 = vpop.f32.mrf.mxu2 }
 0x331   : > { %v5126_v29 = vpop.f32.mrf.mxu0 }
 0x332   : > { %v9701_v52 = vadd.f32 %v5126_v29, %v4499_v22  ;;  %v4188_v22 = vadd.f32 %v9603_v9, %v9642_v18  ;;  %v7381_v9 = vld [vmem:[%s7523_s16 + $0x8] sm:$0xff] }
 0x333   : > { %v3728_v15 = vpop.f32.mrf.mxu3 }
 0x334   : > { %v9704_v25 = vadd.f32 %v3728_v15, %v10094_v34 }
 0x336   : > { %v9717_v16 = vpop.f32.mrf.mxu1  ;;  %v4464_v61 = vpop.f32.mrf.mxu2 }
 0x338   : > { %5539 = vmatmul.bf16.gmra.mxu3 %v10095_v60  ;;  %v4506_v60 = vadd.f32 %v4462_v20, %v9676_v14  ;;  %v4190_v14 = vadd.f32 %v9644_v13, %v9666_v28  ;;  %v9753_v20 = vld [vmem:[%s9970_s6] ss:$0 sm:$0xff] }
 0x339   : > { %v5129_v62 = vpop.f32.mrf.mxu0 }
 0x33a   : > { %v9707_v2 = vadd.f32 %v5129_v62, %v4500_v32 }
 0x33b   : > { %v3731_v7 = vpop.f32.mrf.mxu3 }
 0x33c   : > { %v3769_v51 = vadd.f32 %v3731_v7, %v9281_v54  ;;  %v7319_v54 = vld [vmem:[%s9971_s7] sm:$0xff] }
 0x33d   : > { %7342 = vmatpush.bf16.msrb.mxu1 %v7319_v54  ;;  %5957 = vmatpush.bf16.msrb.mxu0 %v7319_v54  ;;  %v4505_v54 = vadd.f32 %v4459_v45, %v4190_v14  ;;  %v4192_v45 = vadd.f32 %v9671_v24, %v9689_v35 }
 0x33e   : > { %v9712_v59 = vadd.f32 %v4157_v38, %v3769_v51  ;;  %v4162_v15 = vpop.f32.mrf.mxu1  ;;  %v4503_v38 = vadd.f32 %v4454_v21, %v4188_v22  ;;  %v4467_v30 = vpop.f32.mrf.mxu2  ;;  %6052 = vmatmul.bf16.gmra.mxu2 %v7381_v9 }
 0x33f   : > { %v4507_v14 = vadd.f32 %v4464_v61, %v4192_v45  ;;  %v4194_v61 = vadd.f32 %v9698_v10, %v9704_v25 }
 0x341   : > { %v5131_v37 = vpop.f32.mrf.mxu0 }
 0x342   : > { %v9715_v63 = vadd.f32 %v5131_v37, %v4501_v46  ;;  %v10097_v46 = vld [vmem:[#allocation18_spill] sm:$0xff] }
 0x343   : > { %v3733_v5 = vpop.f32.mrf.mxu3 }
 0x344   : > { %v9720_v32 = vadd.f32 %v3733_v5, %v9316_v47  ;;  %v4508_v5 = vadd.f32 %v4467_v30, %v4193_v33 }
 0x348   : > { %5544 = vmatmul.bf16.gmra.mxu3 %v10096_v39 }
 0x349   : > { %v5134_v49 = vpop.f32.mrf.mxu0 }
 0x34a   : > { %v9730_v47 = vadd.f32 %v5134_v49, %v4502_v36 }
 0x34b   : > { %v3736_v1 = vpop.f32.mrf.mxu3 }
 0x34c   : > { %v3771_v29 = vadd.f32 %v3736_v1, %v9347_v19 }
 0x34e   : > { %v9735_v34 = vadd.f32 %v4162_v15, %v3771_v29  ;;  %v10098_v29 = vld [vmem:[#allocation25_spill] sm:$0xff] }
 0x351   : > { %v5136_v62 = vpop.f32.mrf.mxu0 }
 0x352   : > { %v9738_v7 = vadd.f32 %v5136_v62, %v4503_v38  ;;  %v7382_v38 = vld [vmem:[%s7523_s16 + $0x10] sm:$0xff] }
 0x353   : > { %v3738_v51 = vpop.f32.mrf.mxu3  ;;  %6057 = vmatmul.bf16.gmra.mxu2 %v7382_v38 }
 0x354   : > { %v9741_v36 = vadd.f32 %v3738_v51, %v9383_v12  ;;  %v4469_v12 = vpop.f32.mrf.mxu2 }
 0x358   : > { %5549 = vmatmul.bf16.gmra.mxu3 %v10097_v46 }
 0x359   : > { %v5139_v37 = vpop.f32.mrf.mxu0 }
 0x35a   : > { %v9745_v19 = vadd.f32 %v5139_v37, %v4504_v48 }
 0x35b   : > { %v5510_v18 = vpop.f32.mrf.mxu3 }
 0x35c   : > { %v5590_v21 = vadd.f32 %v5510_v18, %v9412_v0  ;;  %v4472_v28 = vpop.f32.mrf.mxu2 }
 0x35d   : > { %v4510_v37 = vadd.f32 %v4472_v28, %v9712_v59 }
 0x35e   : > { %v5626_v6 = vadd.f32 %v9753_v20, %v5590_v21 }
 0x360   : > { %v5658_v57 = vmax.f32 %v5626_v6, 0.0 }
 0x361   : > { %v5141_v39 = vpop.f32.mrf.mxu0 }
 0x362   : > { %v9756_v48 = vadd.f32 %v5141_v39, %v4505_v54  ;;  %v5690_v1 = vpack.c.bf16 %v5658_v57, %v5658_v57  ;;  %v10099_v57 = vld [vmem:[#allocation5_spill] sm:$0xff] }
 0x363   : > { %v5512_v49 = vpop.f32.mrf.mxu3 }
 0x364   : > { %v5591_v13 = vadd.f32 %v5512_v49, %v9440_v55  ;;  %v5754_v51 = vunpack.c.l.b16 %v5690_v1  ;;  %v4474_v21 = vpop.f32.mrf.mxu2 }
 0x366   : > { %v5627_v0 = vadd.f32 %v9753_v20, %v5591_v13  ;;  %v7383_v13 = vld [vmem:[%s7523_s16 + $0x18] sm:$0xff] }
 0x367   : > { %6062 = vmatmul.bf16.gmra.mxu2 %v7383_v13 }
 0x368   : > { %v5659_v22 = vmax.f32 %v5627_v0, 0.0  ;;  %5554 = vmatmul.bf16.gmra.mxu3 %v10098_v29 }
 0x369   : > { %v5144_v15 = vpop.f32.mrf.mxu0 }
 0x36a   : > { %v5691_v33 = vpack.c.bf16 %v5659_v22, %v5659_v22  ;;  %v9762_v62 = vadd.f32 %v5144_v15, %v4506_v60 }
 0x36b   : > { %v5515_v30 = vpop.f32.mrf.mxu3 }
 0x36c   : > { %v5755_v46 = vunpack.c.l.b16 %v5691_v33  ;;  %v5592_v55 = vadd.f32 %v5515_v30, %v9460_v53  ;;  %v4477_v1 = vpop.f32.mrf.mxu2  ;;  %v4509_v30 = vadd.f32 %v4469_v12, %v4194_v61 }
 0x36d   : > { %v4512_v38 = vadd.f32 %v4477_v1, %v9735_v34  ;;  %v7384_v34 = vld [vmem:[%s7523_s16 + $0x20] sm:$0xff] }
 0x36e   : > { %v5786_v9 = vpack.c.b16 %v5755_v46, %v5754_v51  ;;  %v5628_v18 = vadd.f32 %v9753_v20, %v5592_v55 }
 0x370   : > { %5958 = vmatmul.bf16.vlgmr.msrb.gmra.mxu0 %v5786_v9  ;;  %v5660_v39 = vmax.f32 %v5628_v18, 0.0 }
 0x371   : > { %v5146_v6 = vpop.f32.mrf.mxu0 }
 0x372   : > { %v9769_v60 = vadd.f32 %v5146_v6, %v4507_v14  ;;  %v5692_v49 = vpack.c.bf16 %v5660_v39, %v5660_v39  ;;  %v4196_v39 = vadd.f32 %v9717_v16, %v9720_v32 }
 0x373   : > { %v5517_v54 = vpop.f32.mrf.mxu3 }
 0x374   : > { %v5593_v24 = vadd.f32 %v5517_v54, %v9490_v3  ;;  %v5756_v29 = vunpack.c.l.b16 %v5692_v49 }
 0x376   : > { %v5629_v35 = vadd.f32 %v9753_v20, %v5593_v24 }
 0x377   : > { %6067 = vmatmul.bf16.gmra.mxu2 %v7384_v34  ;;  %v10103_v34 = vld [vmem:[#allocation10_spill] sm:$0xff] }
 0x378   : > { %v5661_v53 = vmax.f32 %v5629_v35, 0.0  ;;  %5559 = vmatmul.bf16.gmra.mxu3 %v10099_v57  ;;  %v4511_v57 = vadd.f32 %v4474_v21, %v4196_v39 }
 0x379   : > { %v5149_v59 = vpop.f32.mrf.mxu0 }
 0x37a   : > { %v5693_v0 = vpack.c.bf16 %v5661_v53, %v5661_v53  ;;  %v9775_v28 = vadd.f32 %v5149_v59, %v4508_v5 }
 0x37b   : > { %v5520_v22 = vpop.f32.mrf.mxu3 }
 0x37c   : > { %v5757_v15 = vunpack.c.l.b16 %v5693_v0  ;;  %v5594_v3 = vadd.f32 %v5520_v22, %v9503_v50  ;;  %v10100_v50 = vld [vmem:[#allocation40_spill] sm:$0xff]  ;;  %v10101_v22 = vld [vmem:[#allocation9_spill] sm:$0xff] }
 0x37e   : > { %v5787_v33 = vpack.c.b16 %v5757_v15, %v5756_v29  ;;  %v5630_v45 = vadd.f32 %v9753_v20, %v5594_v3 }
 0x380   : > { %5963 = vmatmul.bf16.vlgmr.msrb.gmra.mxu1 %v5787_v33  ;;  %v5662_v55 = vmax.f32 %v5630_v45, 0.0  ;;  %v4176_v33 = vadd.f32 %v9308_v58, %v9395_v44  ;;  %v5360_v58 = vrot.slane %v9595_v31, 5  ;;  %v7389_v31 = vld [vmem:[%s7523_s16 + $0x78] sm:$0xff] }
 0x381   : > { %v5151_v51 = vpop.f32.mrf.mxu0 }
 0x382   : > { %v9782_v5 = vadd.f32 %v5151_v51, %v4509_v30  ;;  %v5694_v9 = vpack.c.bf16 %v5662_v55, %v5662_v55 }
 0x383   : > { %v5522_v46 = vpop.f32.mrf.mxu3 }
 0x384   : > { %v5595_v10 = vadd.f32 %v5522_v46, %v9519_v42  ;;  %v5758_v24 = vunpack.c.l.b16 %v5694_v9  ;;  %v10102_v46 = vld [vmem:[#allocation13_spill] sm:$0xff] }
 0x385   : > { %v4491_v55 = vadd.f32 %v10102_v46, %v4176_v33 }
 0x386   : > { %v5631_v25 = vadd.f32 %v9753_v20, %v5595_v10 }
 0x388   : > { %v5663_v18 = vmax.f32 %v5631_v25, 0.0  ;;  %5564 = vmatmul.bf16.gmra.mxu3 %v10100_v50  ;;  %v5173_v25 = vadd.f32 %v9597_v17, %v4491_v55  ;;  %v5363_v17 = vrot.slane %v9611_v27, 5  ;;  %v10105_v27 = vld [vmem:[#allocation17_spill] sm:$0xff] }
 0x389   : > { %v5154_v14 = vpop.f32.mrf.mxu0 }
 0x38a   : > { %v5695_v6 = vpack.c.bf16 %v5663_v18, %v5663_v18  ;;  %v9788_v54 = vadd.f32 %v5154_v14, %v4510_v37 }
 0x38b   : > { %v5525_v12 = vpop.f32.mrf.mxu3 }
 0x38c   : > { %v5759_v35 = vunpack.c.l.b16 %v5695_v6  ;;  %v5596_v42 = vadd.f32 %v5525_v12, %v9536_v40  ;;  %v7385_v40 = vld [vmem:[%s7523_s16 + $0x28] sm:$0xff]  ;;  %v7386_v6 = vld [vmem:[%s7523_s16 + $0x30] sm:$0xff] }
 0x38d   : > { %6072 = vmatmul.bf16.gmra.mxu2 %v7385_v40 }
 0x38e   : > { %v5788_v49 = vpack.c.b16 %v5759_v35, %v5758_v24  ;;  %v5632_v53 = vadd.f32 %v9753_v20, %v5596_v42  ;;  %v5362_v35 = vrot.slane %v5360_v58, 4 }
 0x390   : > { %5968 = vmatmul.bf16.gmra.mxu1 %v5788_v49  ;;  %v5664_v37 = vmax.f32 %v5632_v53, 0.0 }
 0x391   : > { %v5156_v59 = vpop.f32.mrf.mxu0 }
 0x392   : > { %v9794_v13 = vadd.f32 %v5156_v59, %v4511_v57  ;;  %v5696_v16 = vpack.c.bf16 %v5664_v37, %v5664_v37 }
 0x393   : > { %v5527_v0 = vpop.f32.mrf.mxu3 }
 0x394   : > { %v5597_v61 = vadd.f32 %v5527_v0, %v9567_v8  ;;  %v5760_v45 = vunpack.c.l.b16 %v5696_v16  ;;  %v5364_v0 = vsel %vm7697_vm13, %v5362_v35, %v5363_v17 }
 0x396   : > { %v5633_v1 = vadd.f32 %v9753_v20, %v5597_v61 }
 0x398   : > { %v5665_v32 = vmax.f32 %v5633_v1, 0.0  ;;  %5569 = vmatmul.bf16.gmra.mxu3 %v10101_v22  ;;  %v5418_v1 = vunpack.c.l.b16 %v5364_v0 }
 0x399   : > { %v5159_v29 = vpop.f32.mrf.mxu0 }
 0x39a   : > { %v5697_v15 = vpack.c.bf16 %v5665_v32, %v5665_v32  ;;  %v9800_v3 = vadd.f32 %v5159_v29, %v4512_v38 }
 0x39b   : > { %v5530_v21 = vpop.f32.mrf.mxu3 }
 0x39c   : > { %v5761_v30 = vunpack.c.l.b16 %v5697_v15  ;;  %v5598_v8 = vadd.f32 %v5530_v21, %v9582_v26  ;;  %v5210_v26 = vld [vmem:[#allocation2 + $0xc0] sm:$0xe]  ;;  %v7387_v21 = vld [vmem:[%s7523_s16 + $0x38] sm:$0xff] }
 0x39d   : > { %6077 = vmatmul.bf16.gmra.mxu2 %v7386_v6  ;;  %v7053_v24 = vrot.slane %v5210_v26, 9 }
 0x39e   : > { %v5789_v51 = vpack.c.b16 %v5761_v30, %v5760_v45  ;;  %v5634_v10 = vadd.f32 %v9753_v20, %v5598_v8 }
 0x39f   : > { %v5361_v59 = vsel %vm7697_vm13, %v7053_v24, %v5360_v58  ;;  %v10106_v58 = vld [vmem:[#allocation15_spill] sm:$0xff] }
 0x3a0   : > { %5973 = vmatmul.bf16.gmra.mxu1 %v5789_v51  ;;  %v5666_v38 = vmax.f32 %v5634_v10, 0.0  ;;  %v5417_v61 = vunpack.c.l.b16 %v5361_v59  ;;  %v7390_v59 = vld [vmem:[%s7523_s16 + $0x48] sm:$0xff] }
 0x3a2   : > { %v5698_v44 = vpack.c.bf16 %v5666_v38, %v5666_v38 }
 0x3a3   : > { %v5532_v9 = vpop.f32.mrf.mxu3 }
 0x3a4   : > { %v5599_v18 = vadd.f32 %v5532_v9, %v5173_v25  ;;  %v5762_v42 = vunpack.c.l.b16 %v5698_v44  ;;  %v7388_v44 = vld [vmem:[%s7523_s16 + $0x40] sm:$0xff] }
 0x3a6   : > { %v5635_v50 = vadd.f32 %v9753_v20, %v5599_v18 }
 0x3a8   : > { %v5667_v14 = vmax.f32 %v5635_v50, 0.0  ;;  %5574 = vmatmul.bf16.gmra.mxu3 %v10103_v34 }
 0x3aa   : > { %v5699_v12 = vpack.c.bf16 %v5667_v14, %v5667_v14 }
 0x3ab   : > { %v5535_v39 = vpop.f32.mrf.mxu3 }
 0x3ac   : > { %v5763_v49 = vunpack.c.l.b16 %v5699_v12  ;;  %v5600_v53 = vadd.f32 %v5535_v39, %v9616_v23  ;;  %v5435_v23 = vpack.c.b16 %v5418_v1, %v5417_v61 }
 0x3ad   : > { %6082 = vmatmul.bf16.gmra.mxu2 %v7387_v21 }
 0x3ae   : > { %v5790_v57 = vpack.c.b16 %v5763_v49, %v5762_v42  ;;  %v5636_v37 = vadd.f32 %v9753_v20, %v5600_v53 }
 0x3b0   : > { %5978 = vmatmul.bf16.gmra.mxu1 %v5790_v57  ;;  %v5668_v32 = vmax.f32 %v5636_v37, 0.0 }
 0x3b2   : > { %v5700_v40 = vpack.c.bf16 %v5668_v32, %v5668_v32 }
 0x3b3   : > { %v5537_v16 = vpop.f32.mrf.mxu3 }
 0x3b4   : > { %v5601_v22 = vadd.f32 %v5537_v16, %v10105_v27  ;;  %v5764_v30 = vunpack.c.l.b16 %v5700_v40  ;;  %v9839_v40 = vpop.f32.mrf.mxu0 }
 0x3b6   : > { %v5637_v29 = vadd.f32 %v9753_v20, %v5601_v22 }
 0x3b8   : > { %v5669_v15 = vmax.f32 %v5637_v29, 0.0  ;;  %5579 = vmatmul.bf16.gmra.mxu3 %v5435_v23 }
 0x3ba   : > { %v5701_v33 = vpack.c.bf16 %v5669_v15, %v5669_v15 }
 0x3bb   : > { %v5540_v45 = vpop.f32.mrf.mxu3 }
 0x3bc   : > { %v5765_v8 = vunpack.c.l.b16 %v5701_v33  ;;  %v5602_v51 = vadd.f32 %v5540_v45, %v9648_v56  ;;  %v9828_v56 = vpop.f32.mrf.mxu2  ;;  %v7391_v45 = vld [vmem:[%s7523_s16 + $0x50] sm:$0xff] }
 0x3bd   : > { %6087 = vmatmul.bf16.gmra.mxu2 %v7388_v44 }
 0x3be   : > { %v5791_v46 = vpack.c.b16 %v5765_v8, %v5764_v30  ;;  %v5638_v55 = vadd.f32 %v9753_v20, %v5602_v51  ;;  %v9846_v30 = vld [vmem:[%s9972_s8] ss:$0 sm:$0xff] }
 0x3c0   : > { %5983 = vmatmul.bf16.gmra.mxu1 %v5791_v46  ;;  %v5670_v25 = vmax.f32 %v5638_v55, 0.0 }
 0x3c2   : > { %v5702_v18 = vpack.c.bf16 %v5670_v25, %v5670_v25 }
 0x3c3   : > { %v5542_v10 = vpop.f32.mrf.mxu3 }
 0x3c4   : > { %v5603_v9 = vadd.f32 %v5542_v10, %v9659_v4  ;;  %v5766_v26 = vunpack.c.l.b16 %v5702_v18  ;;  %v6048_v42 = vpop.f32.mrf.mxu2 }
 0x3c6   : > { %v5639_v38 = vadd.f32 %v9753_v20, %v5603_v9 }
 0x3c8   : > { %v5671_v50 = vmax.f32 %v5639_v38, 0.0  ;;  %5584 = vmatmul.bf16.gmra.mxu3 %v10106_v58 }
 0x3ca   : > { %v5703_v14 = vpack.c.bf16 %v5671_v50, %v5671_v50 }
 0x3cb   : > { %v5545_v34 = vpop.f32.mrf.mxu3 }
 0x3cc   : > { %v5767_v6 = vunpack.c.l.b16 %v5703_v14  ;;  %v5604_v12 = vadd.f32 %v5545_v34, %v9669_v41  ;;  %v6050_v16 = vpop.f32.mrf.mxu2  ;;  %v9859_v34 = vpop.f32.mrf.mxu1 }
 0x3cd   : > { %6092 = vmatmul.bf16.gmra.mxu2 %v7390_v59 }
 0x3ce   : > { %v5792_v39 = vpack.c.b16 %v5767_v6, %v5766_v26  ;;  %v5640_v4 = vadd.f32 %v9753_v20, %v5604_v12 }
 0x3d0   : > { %5988 = vmatmul.bf16.gmra.mxu1 %v5792_v39  ;;  %v5672_v35 = vmax.f32 %v5640_v4, 0.0 }
 0x3d2   : > { %v5704_v53 = vpack.c.bf16 %v5672_v35, %v5672_v35  ;;  %v7392_v35 = vld [vmem:[%s7523_s16 + $0x58] sm:$0xff] }
 0x3d3   : > { %v5547_v24 = vpop.f32.mrf.mxu3 }
 0x3d4   : > { %v5605_v17 = vadd.f32 %v5547_v24, %v9686_v11  ;;  %v5768_v41 = vunpack.c.l.b16 %v5704_v53  ;;  %v6053_v23 = vpop.f32.mrf.mxu2 }
 0x3d6   : > { %v5641_v49 = vadd.f32 %v9753_v20, %v5605_v17 }
 0x3d8   : > { %v5673_v57 = vmax.f32 %v5641_v49, 0.0  ;;  %6122 = vmatmul.bf16.vlgmr.msrb.gmra.mxu3 %v7389_v31 }
 0x3da   : > { %v5705_v0 = vpack.c.bf16 %v5673_v57, %v5673_v57 }
 0x3db   : > { %v5550_v37 = vpop.f32.mrf.mxu3 }
 0x3dc   : > { %v5769_v61 = vunpack.c.l.b16 %v5705_v0  ;;  %v5606_v1 = vadd.f32 %v5550_v37, %v9692_v43  ;;  %v6055_v55 = vpop.f32.mrf.mxu2 }
 0x3dd   : > { %6097 = vmatmul.bf16.gmra.mxu2 %v7391_v45  ;;  %v7393_v45 = vld [vmem:[%s7523_s16 + $0x60] sm:$0xff] }
 0x3de   : > { %v5793_v32 = vpack.c.b16 %v5769_v61, %v5768_v41  ;;  %v5642_v11 = vadd.f32 %v9753_v20, %v5606_v1 }
 0x3e0   : > { %5993 = vmatmul.bf16.gmra.mxu1 %v5793_v32  ;;  %v5674_v22 = vmax.f32 %v5642_v11, 0.0 }
 0x3e2   : > { %v5706_v21 = vpack.c.bf16 %v5674_v22, %v5674_v22 }
 0x3e3   : > { %v5552_v27 = vpop.f32.mrf.mxu3 }
 0x3e4   : > { %v5607_v29 = vadd.f32 %v5552_v27, %v9701_v52  ;;  %v5770_v51 = vunpack.c.l.b16 %v5706_v21  ;;  %v6058_v14 = vpop.f32.mrf.mxu2 }
 0x3e6   : > { %v5643_v15 = vadd.f32 %v9753_v20, %v5607_v29 }
 0x3e8   : > { %v5675_v33 = vmax.f32 %v5643_v15, 0.0 }
 0x3ea   : > { %v5707_v43 = vpack.c.bf16 %v5675_v33, %v5675_v33 }
 0x3eb   : > { %v5555_v8 = vpop.f32.mrf.mxu3 }
 0x3ec   : > { %v5771_v46 = vunpack.c.l.b16 %v5707_v43  ;;  %v5608_v52 = vadd.f32 %v5555_v8, %v9707_v2  ;;  %v6060_v31 = vpop.f32.mrf.mxu2 }
 0x3ed   : > { %v5959_v10 = vpop.f32.mrf.mxu0  ;;  %6102 = vmatmul.bf16.gmra.mxu2 %v7392_v35 }
 0x3ee   : > { %v5960_v25 = vadd.f32 %v9846_v30, %v5959_v10  ;;  %v5794_v9 = vpack.c.b16 %v5771_v46, %v5770_v51  ;;  %v5644_v38 = vadd.f32 %v9753_v20, %v5608_v52 }
 0x3f0   : > { %v6049_v18 = vadd.f32 %v6048_v42, %v5960_v25  ;;  %5998 = vmatmul.bf16.gmra.mxu1 %v5794_v9  ;;  %v5676_v2 = vmax.f32 %v5644_v38, 0.0 }
 0x3f2   : > { %v6128_v50 = vmax.f32 %v6049_v18, 0.0  ;;  %v5708_v39 = vpack.c.bf16 %v5676_v2, %v5676_v2 }
 0x3f3   : > { %v5557_v58 = vpop.f32.mrf.mxu3 }
 0x3f4   : > { %6160 = vst [vmem:[%s9855_s22] sm:$0xff] %v6128_v50  ;;  %v5609_v44 = vadd.f32 %v5557_v58, %v9715_v63  ;;  %v5772_v53 = vunpack.c.l.b16 %v5708_v39  ;;  %v6063_v27 = vpop.f32.mrf.mxu2 }
 0x3f5   : > { %v5961_v26 = vpop.f32.mrf.mxu0 }
 0x3f6   : > { %v5645_v6 = vadd.f32 %v9753_v20, %v5609_v44  ;;  %v5962_v12 = vadd.f32 %v9846_v30, %v5961_v26 }
 0x3f8   : > { %v5677_v4 = vmax.f32 %v5645_v6, 0.0  ;;  %v6051_v24 = vadd.f32 %v6050_v16, %v5962_v12 }
 0x3fa   : > { %v5709_v17 = vpack.c.bf16 %v5677_v4, %v5677_v4  ;;  %v6129_v42 = vmax.f32 %v6051_v24, 0.0  ;;  %v7394_v24 = vld [vmem:[%s7523_s16 + $0x68] sm:$0xff] }
 0x3fb   : > { %v5560_v49 = vpop.f32.mrf.mxu3 }
 0x3fc   : > { %v5773_v63 = vunpack.c.l.b16 %v5709_v17  ;;  %6161 = vst [vmem:[%s9855_s22 + $0x8] sm:$0xff] %v6129_v42  ;;  %v5610_v57 = vadd.f32 %v5560_v49, %v9730_v47  ;;  %v6065_v52 = vpop.f32.mrf.mxu2 }
 0x3fd   : > { %v5964_v59 = vpop.f32.mrf.mxu1  ;;  %6107 = vmatmul.bf16.gmra.mxu2 %v7393_v45 }
 0x3fe   : > { %v5965_v0 = vadd.f32 %v9846_v30, %v5964_v59  ;;  %v5795_v37 = vpack.c.b16 %v5773_v63, %v5772_v53  ;;  %v5646_v41 = vadd.f32 %v9753_v20, %v5610_v57 }
 0x400   : > { %v6054_v61 = vadd.f32 %v6053_v23, %v5965_v0  ;;  %6003 = vmatmul.bf16.gmra.mxu1 %v5795_v37  ;;  %v5678_v32 = vmax.f32 %v5646_v41, 0.0 }
 0x402   : > { %v6130_v1 = vmax.f32 %v6054_v61, 0.0  ;;  %v5710_v15 = vpack.c.bf16 %v5678_v32, %v5678_v32 }
 0x403   : > { %v5562_v16 = vpop.f32.mrf.mxu3 }
 0x404   : > { %6162 = vst [vmem:[%s9855_s22 + $0x10] sm:$0xff] %v6130_v1  ;;  %v5611_v11 = vadd.f32 %v5562_v16, %v9738_v7  ;;  %v5774_v51 = vunpack.c.l.b16 %v5710_v15  ;;  %v6068_v44 = vpop.f32.mrf.mxu2  ;;  %v7395_v15 = vld [vmem:[%s7523_s16 + $0x70] sm:$0xff] }
 0x405   : > { %v5966_v22 = vpop.f32.mrf.mxu1 }
 0x406   : > { %v5647_v47 = vadd.f32 %v9753_v20, %v5611_v11  ;;  %v5967_v29 = vadd.f32 %v9846_v30, %v5966_v22 }
 0x408   : > { %v5679_v21 = vmax.f32 %v5647_v47, 0.0  ;;  %v6056_v33 = vadd.f32 %v6055_v55, %v5967_v29 }
 0x40a   : > { %v5711_v23 = vpack.c.bf16 %v5679_v21, %v5679_v21  ;;  %v6131_v43 = vmax.f32 %v6056_v33, 0.0 }
 0x40b   : > { %v5565_v8 = vpop.f32.mrf.mxu3 }
 0x40c   : > { %v5775_v46 = vunpack.c.l.b16 %v5711_v23  ;;  %6163 = vst [vmem:[%s9855_s22 + $0x18] sm:$0xff] %v6131_v43  ;;  %v5612_v7 = vadd.f32 %v5565_v8, %v9745_v19  ;;  %v6070_v53 = vpop.f32.mrf.mxu2 }
 0x40d   : > { %v5969_v10 = vpop.f32.mrf.mxu1  ;;  %6112 = vmatmul.bf16.gmra.mxu2 %v7394_v24 }
 0x40e   : > { %v5970_v25 = vadd.f32 %v9846_v30, %v5969_v10  ;;  %v5796_v9 = vpack.c.b16 %v5775_v46, %v5774_v51  ;;  %v5648_v38 = vadd.f32 %v9753_v20, %v5612_v7 }
 0x410   : > { %v6059_v55 = vadd.f32 %v6058_v14, %v5970_v25  ;;  %6008 = vmatmul.bf16.gmra.mxu1 %v5796_v9  ;;  %v5680_v58 = vmax.f32 %v5648_v38, 0.0 }
 0x412   : > { %v6132_v18 = vmax.f32 %v6059_v55, 0.0  ;;  %v5712_v12 = vpack.c.bf16 %v5680_v58, %v5680_v58 }
 0x413   : > { %v5567_v50 = vpop.f32.mrf.mxu3 }
 0x414   : > { %6164 = vst [vmem:[%s9855_s22 + $0x20] sm:$0xff] %v6132_v18  ;;  %v5613_v2 = vadd.f32 %v5567_v50, %v9756_v48  ;;  %v5776_v42 = vunpack.c.l.b16 %v5712_v12  ;;  %v6073_v16 = vpop.f32.mrf.mxu2 }
 0x415   : > { %v5971_v26 = vpop.f32.mrf.mxu1 }
 0x416   : > { %v5649_v19 = vadd.f32 %v9753_v20, %v5613_v2  ;;  %v5972_v6 = vadd.f32 %v9846_v30, %v5971_v26 }
 0x418   : > { %v5681_v39 = vmax.f32 %v5649_v19, 0.0  ;;  %v6061_v4 = vadd.f32 %v6060_v31, %v5972_v6 }
 0x41a   : > { %v5713_v14 = vpack.c.bf16 %v5681_v39, %v5681_v39  ;;  %v6133_v35 = vmax.f32 %v6061_v4, 0.0 }
 0x41b   : > { %v5570_v17 = vpop.f32.mrf.mxu3 }
 0x41c   : > { %v5777_v49 = vunpack.c.l.b16 %v5713_v14  ;;  %6165 = vst [vmem:[%s9855_s22 + $0x28] sm:$0xff] %v6133_v35  ;;  %v5614_v48 = vadd.f32 %v5570_v17, %v9762_v62  ;;  %v6075_v43 = vpop.f32.mrf.mxu2 }
 0x41d   : > { %v5974_v63 = vpop.f32.mrf.mxu1  ;;  %6117 = vmatmul.bf16.gmra.mxu2 %v7395_v15 }
 0x41e   : > { %v5975_v57 = vadd.f32 %v9846_v30, %v5974_v63  ;;  %v5797_v59 = vpack.c.b16 %v5777_v49, %v5776_v42  ;;  %v5650_v0 = vadd.f32 %v9753_v20, %v5614_v48 }
 0x420   : > { %v6064_v31 = vadd.f32 %v6063_v27, %v5975_v57  ;;  %6013 = vmatmul.bf16.gmra.mxu1 %v5797_v59  ;;  %v5682_v61 = vmax.f32 %v5650_v0, 0.0 }
 0x422   : > { %v6134_v37 = vmax.f32 %v6064_v31, 0.0  ;;  %v5714_v22 = vpack.c.bf16 %v5682_v61, %v5682_v61 }
 0x423   : > { %v5572_v41 = vpop.f32.mrf.mxu3 }
 0x424   : > { %6166 = vst [vmem:[%s9855_s22 + $0x30] sm:$0xff] %v6134_v37  ;;  %v5615_v1 = vadd.f32 %v5572_v41, %v9769_v60  ;;  %v5778_v45 = vunpack.c.l.b16 %v5714_v22  ;;  %v6078_v55 = vpop.f32.mrf.mxu2 }
 0x425   : > { %v5976_v32 = vpop.f32.mrf.mxu1 }
 0x426   : > { %v5651_v62 = vadd.f32 %v9753_v20, %v5615_v1  ;;  %v5977_v11 = vadd.f32 %v9846_v30, %v5976_v32  ;;  %v4198_v32 = vadd.f32 %v9859_v34, %v9741_v36 }
 0x428   : > { %v5683_v47 = vmax.f32 %v5651_v62, 0.0  ;;  %v6066_v29 = vadd.f32 %v6065_v52, %v5977_v11 }
 0x42a   : > { %v5715_v27 = vpack.c.bf16 %v5683_v47, %v5683_v47  ;;  %v6135_v21 = vmax.f32 %v6066_v29, 0.0 }
 0x42b   : > { %v5575_v33 = vpop.f32.mrf.mxu3 }
 0x42c   : > { %v5779_v23 = vunpack.c.l.b16 %v5715_v27  ;;  %6167 = vst [vmem:[%s9855_s22 + $0x38] sm:$0xff] %v6135_v21  ;;  %v5616_v60 = vadd.f32 %v5575_v33, %v9775_v28  ;;  %v6080_v24 = vpop.f32.mrf.mxu2  ;;  %v4513_v27 = vadd.f32 %v9828_v56, %v4198_v32 }
 0x42d   : > { %v5979_v8 = vpop.f32.mrf.mxu1 }
 0x42e   : > { %v5980_v51 = vadd.f32 %v9846_v30, %v5979_v8  ;;  %v5798_v46 = vpack.c.b16 %v5779_v23, %v5778_v45  ;;  %v5652_v7 = vadd.f32 %v9753_v20, %v5616_v60  ;;  %v5195_v45 = vadd.f32 %v9839_v40, %v4513_v27 }
 0x430   : > { %v6069_v10 = vadd.f32 %v6068_v44, %v5980_v51  ;;  %6018 = vmatmul.bf16.gmra.mxu1 %v5798_v46  ;;  %v5684_v9 = vmax.f32 %v5652_v7, 0.0 }
 0x432   : > { %v6136_v52 = vmax.f32 %v6069_v10, 0.0  ;;  %v5716_v58 = vpack.c.bf16 %v5684_v9, %v5684_v9 }
 0x433   : > { %v5577_v25 = vpop.f32.mrf.mxu3 }
 0x434   : > { %6168 = vst [vmem:[%s9855_s22 + $0x40] sm:$0xff] %v6136_v52  ;;  %v5617_v38 = vadd.f32 %v5577_v25, %v9782_v5  ;;  %v5780_v12 = vunpack.c.l.b16 %v5716_v58  ;;  %v6083_v57 = vpop.f32.mrf.mxu2 }
 0x435   : > { %v5981_v18 = vpop.f32.mrf.mxu1 }
 0x436   : > { %v5653_v28 = vadd.f32 %v9753_v20, %v5617_v38  ;;  %v5982_v50 = vadd.f32 %v9846_v30, %v5981_v18 }
 0x438   : > { %v5685_v2 = vmax.f32 %v5653_v28, 0.0  ;;  %v6071_v26 = vadd.f32 %v6070_v53, %v5982_v50 }
 0x43a   : > { %v5717_v19 = vpack.c.bf16 %v5685_v2, %v5685_v2  ;;  %v6137_v6 = vmax.f32 %v6071_v26, 0.0 }
 0x43b   : > { %v5580_v44 = vpop.f32.mrf.mxu3 }
 0x43c   : > { %v5781_v39 = vunpack.c.l.b16 %v5717_v19  ;;  %6169 = vst [vmem:[%s9855_s22 + $0x48] sm:$0xff] %v6137_v6  ;;  %v5618_v4 = vadd.f32 %v5580_v44, %v9788_v54  ;;  %v6085_v22 = vpop.f32.mrf.mxu2 }
 0x43d   : > { %v5984_v5 = vpop.f32.mrf.mxu1 }
 0x43e   : > { %v5985_v14 = vadd.f32 %v9846_v30, %v5984_v5  ;;  %v5799_v35 = vpack.c.b16 %v5781_v39, %v5780_v12  ;;  %v5654_v17 = vadd.f32 %v9753_v20, %v5618_v4 }
 0x440   : > { %v6074_v42 = vadd.f32 %v6073_v16, %v5985_v14  ;;  %6023 = vmatmul.bf16.gmra.mxu1 %v5799_v35  ;;  %v5686_v53 = vmax.f32 %v5654_v17, 0.0 }
 0x442   : > { %v6138_v49 = vmax.f32 %v6074_v42, 0.0  ;;  %v5718_v31 = vpack.c.bf16 %v5686_v53, %v5686_v53 }
 0x443   : > { %v5582_v48 = vpop.f32.mrf.mxu3 }
 0x444   : > { %6170 = vst [vmem:[%s9855_s22 + $0x50] sm:$0xff] %v6138_v49  ;;  %v5619_v63 = vadd.f32 %v5582_v48, %v9794_v13  ;;  %v5782_v62 = vunpack.c.l.b16 %v5718_v31 }
 0x445   : > { %v5986_v59 = vpop.f32.mrf.mxu1 }
 0x446   : > { %v5655_v54 = vadd.f32 %v9753_v20, %v5619_v63  ;;  %v5987_v0 = vadd.f32 %v9846_v30, %v5986_v59 }
 0x448   : > { %v5687_v37 = vmax.f32 %v5655_v54, 0.0  ;;  %v6076_v41 = vadd.f32 %v6075_v43, %v5987_v0 }
 0x44a   : > { %v5719_v61 = vpack.c.bf16 %v5687_v37, %v5687_v37  ;;  %v6139_v1 = vmax.f32 %v6076_v41, 0.0 }
 0x44b   : > { %v5585_v16 = vpop.f32.mrf.mxu3 }
 0x44c   : > { %v5783_v11 = vunpack.c.l.b16 %v5719_v61  ;;  %6171 = vst [vmem:[%s9855_s22 + $0x58] sm:$0xff] %v6139_v1  ;;  %v5620_v13 = vadd.f32 %v5585_v16, %v9800_v3  ;;  %v6088_v3 = vpop.f32.mrf.mxu2 }
 0x44d   : > { %v5989_v47 = vpop.f32.mrf.mxu1 }
 0x44e   : > { %v5990_v29 = vadd.f32 %v9846_v30, %v5989_v47  ;;  %v5800_v15 = vpack.c.b16 %v5783_v11, %v5782_v62  ;;  %v5656_v21 = vadd.f32 %v9753_v20, %v5620_v13 }
 0x450   : > { %v6079_v33 = vadd.f32 %v6078_v55, %v5990_v29  ;;  %6028 = vmatmul.bf16.gmra.mxu1 %v5800_v15  ;;  %v5688_v23 = vmax.f32 %v5656_v21, 0.0 }
 0x452   : > { %v6140_v36 = vmax.f32 %v6079_v33, 0.0  ;;  %v5720_v56 = vpack.c.bf16 %v5688_v23, %v5688_v23 }
 0x453   : > { %v5587_v34 = vpop.f32.mrf.mxu3 }
 0x454   : > { %6172 = vst [vmem:[%s9855_s22 + $0x60] sm:$0xff] %v6140_v36  ;;  %v5621_v60 = vadd.f32 %v5587_v34, %v5195_v45  ;;  %v5784_v25 = vunpack.c.l.b16 %v5720_v56  ;;  %v6090_v38 = vpop.f32.mrf.mxu2 }
 0x455   : > { %v5991_v43 = vpop.f32.mrf.mxu1 }
 0x456   : > { %v5657_v8 = vadd.f32 %v9753_v20, %v5621_v60  ;;  %v5992_v51 = vadd.f32 %v9846_v30, %v5991_v43 }
 0x458   : > { %v5689_v46 = vmax.f32 %v5657_v8, 0.0  ;;  %v6081_v7 = vadd.f32 %v6080_v24, %v5992_v51 }
 0x45a   : > { %v5721_v10 = vpack.c.bf16 %v5689_v46, %v5689_v46  ;;  %v6141_v52 = vmax.f32 %v6081_v7, 0.0 }
 0x45c   : > { %v5785_v40 = vunpack.c.l.b16 %v5721_v10  ;;  %6173 = vst [vmem:[%s9855_s22 + $0x68] sm:$0xff] %v6141_v52  ;;  %v6093_v2 = vpop.f32.mrf.mxu2 }
 0x45d   : > { %v5994_v9 = vpop.f32.mrf.mxu1 }
 0x45e   : > { %v5995_v55 = vadd.f32 %v9846_v30, %v5994_v9  ;;  %v5801_v18 = vpack.c.b16 %v5785_v40, %v5784_v25 }
 0x460   : > { %v6084_v28 = vadd.f32 %v6083_v57, %v5995_v55  ;;  %6033 = vmatmul.bf16.gmra.mxu1 %v5801_v18 }
 0x462   : > { %v6142_v20 = vmax.f32 %v6084_v28, 0.0 }
 0x464   : > { %6174 = vst [vmem:[%s9855_s22 + $0x70] sm:$0xff] %v6142_v20  ;;  %v6095_v39 = vpop.f32.mrf.mxu2 }
 0x465   : > { %v5996_v50 = vpop.f32.mrf.mxu1 }
 0x466   : > { %v5997_v58 = vadd.f32 %v9846_v30, %v5996_v50 }
 0x468   : > { %v6086_v26 = vadd.f32 %v6085_v22, %v5997_v58 }
 0x46a   : > { %v6143_v19 = vmax.f32 %v6086_v26, 0.0 }
 0x46c   : > { %6175 = vst [vmem:[%s9855_s22 + $0x78] sm:$0xff] %v6143_v19  ;;  %v6098_v17 = vpop.f32.mrf.mxu2 }
 0x46d   : > { %v5999_v6 = vpop.f32.mrf.mxu1 }
 0x46e   : > { %v6000_v44 = vadd.f32 %v9846_v30, %v5999_v6 }
 0x470   : > { %v6089_v12 = vadd.f32 %v6088_v3, %v6000_v44 }
 0x472   : > { %v6144_v4 = vmax.f32 %v6089_v12, 0.0 }
 0x474   : > { %6176 = vst [vmem:[%s9855_s22 + $0x80] sm:$0xff] %v6144_v4  ;;  %v6100_v57 = vpop.f32.mrf.mxu2  ;;  %v6123_v4 = vpop.f32.mrf.mxu3 }
 0x475   : > { %v6001_v24 = vpop.f32.mrf.mxu1 }
 0x476   : > { %v6002_v5 = vadd.f32 %v9846_v30, %v6001_v24 }
 0x478   : > { %v6091_v14 = vadd.f32 %v6090_v38, %v6002_v5 }
 0x47a   : > { %v6145_v35 = vmax.f32 %v6091_v14, 0.0 }
 0x47c   : > { %6177 = vst [vmem:[%s9855_s22 + $0x88] sm:$0xff] %v6145_v35  ;;  %v6103_v41 = vpop.f32.mrf.mxu2 }
 0x47d   : > { %v6004_v42 = vpop.f32.mrf.mxu1 }
 0x47e   : > { %v6005_v49 = vadd.f32 %v9846_v30, %v6004_v42 }
 0x480   : > { %v6094_v48 = vadd.f32 %v6093_v2, %v6005_v49  ;;  %v6125_v49 = vpop.f32.mrf.mxu3 }
 0x482   : > { %v6146_v53 = vmax.f32 %v6094_v48, 0.0 }
 0x484   : > { %6178 = vst [vmem:[%s9855_s22 + $0x90] sm:$0xff] %v6146_v53  ;;  %v6105_v11 = vpop.f32.mrf.mxu2 }
 0x485   : > { %v6006_v63 = vpop.f32.mrf.mxu1 }
 0x486   : > { %v6007_v59 = vadd.f32 %v9846_v30, %v6006_v63 }
 0x488   : > { %v6096_v54 = vadd.f32 %v6095_v39, %v6007_v59 }
 0x48a   : > { %v6147_v0 = vmax.f32 %v6096_v54, 0.0 }
 0x48c   : > { %6179 = vst [vmem:[%s9855_s22 + $0x98] sm:$0xff] %v6147_v0  ;;  %v6108_v27 = vpop.f32.mrf.mxu2 }
 0x48d   : > { %v6009_v31 = vpop.f32.mrf.mxu1 }
 0x48e   : > { %v6010_v37 = vadd.f32 %v9846_v30, %v6009_v31 }
 0x490   : > { %v6099_v61 = vadd.f32 %v6098_v17, %v6010_v37 }
 0x492   : > { %v6148_v1 = vmax.f32 %v6099_v61, 0.0 }
 0x494   : > { %6180 = vst [vmem:[%s9855_s22 + $0xa0] sm:$0xff] %v6148_v1  ;;  %v6110_v23 = vpop.f32.mrf.mxu2 }
 0x495   : > { %v6011_v16 = vpop.f32.mrf.mxu1 }
 0x496   : > { %v6012_v32 = vadd.f32 %v9846_v30, %v6011_v16 }
 0x498   : > { %v6101_v62 = vadd.f32 %v6100_v57, %v6012_v32 }
 0x49a   : > { %v6149_v13 = vmax.f32 %v6101_v62, 0.0 }
 0x49c   : > { %6181 = vst [vmem:[%s9855_s22 + $0xa8] sm:$0xff] %v6149_v13  ;;  %v6113_v56 = vpop.f32.mrf.mxu2 }
 0x49d   : > { %v6014_v22 = vpop.f32.mrf.mxu1 }
 0x49e   : > { %v6015_v47 = vadd.f32 %v9846_v30, %v6014_v22 }
 0x4a0   : > { %v6104_v29 = vadd.f32 %v6103_v41, %v6015_v47 }
 0x4a2   : > { %v6150_v15 = vmax.f32 %v6104_v29, 0.0 }
 0x4a4   : > { %6182 = vst [vmem:[%s9855_s22 + $0xb0] sm:$0xff] %v6150_v15  ;;  %v6115_v40 = vpop.f32.mrf.mxu2 }
 0x4a5   : > { %v6016_v21 = vpop.f32.mrf.mxu1 }
 0x4a6   : > { %v6017_v33 = vadd.f32 %v9846_v30, %v6016_v21 }
 0x4a8   : > { %v6106_v45 = vadd.f32 %v6105_v11, %v6017_v33 }
 0x4aa   : > { %v6151_v36 = vmax.f32 %v6106_v45, 0.0 }
 0x4ac   : > { %6183 = vst [vmem:[%s9855_s22 + $0xb8] sm:$0xff] %v6151_v36  ;;  %v6118_v20 = vpop.f32.mrf.mxu2 }
 0x4ad   : > { %v6019_v34 = vpop.f32.mrf.mxu1 }
 0x4ae   : > { %v6020_v60 = vadd.f32 %v9846_v30, %v6019_v34 }
 0x4b0   : > { %v6109_v3 = vadd.f32 %v6108_v27, %v6020_v60 }
 0x4b2   : > { %v6152_v43 = vmax.f32 %v6109_v3, 0.0 }
 0x4b4   : > { %6184 = vst [vmem:[%s9855_s22 + $0xc0] sm:$0xff] %v6152_v43  ;;  %v6120_v6 = vpop.f32.mrf.mxu2 }
 0x4b5   : > { %v6021_v8 = vpop.f32.mrf.mxu1 }
 0x4b6   : > { %v6022_v51 = vadd.f32 %v9846_v30, %v6021_v8 }
 0x4b8   : > { %v6111_v46 = vadd.f32 %v6110_v23, %v6022_v51 }
 0x4ba   : > { %v6153_v7 = vmax.f32 %v6111_v46, 0.0 }
 0x4bc   : > { %6185 = vst [vmem:[%s9855_s22 + $0xc8] sm:$0xff] %v6153_v7 }
 0x4bd   : > { %v6024_v10 = vpop.f32.mrf.mxu1 }
 0x4be   : > { %v6025_v52 = vadd.f32 %v9846_v30, %v6024_v10 }
 0x4c0   : > { %v6114_v25 = vadd.f32 %v6113_v56, %v6025_v52 }
 0x4c2   : > { %v6154_v9 = vmax.f32 %v6114_v25, 0.0 }
 0x4c4   : > { %6186 = vst [vmem:[%s9855_s22 + $0xd0] sm:$0xff] %v6154_v9 }
 0x4c5   : > { %v6026_v38 = vpop.f32.mrf.mxu1 }
 0x4c6   : > { %v6027_v55 = vadd.f32 %v9846_v30, %v6026_v38 }
 0x4c8   : > { %v6116_v18 = vadd.f32 %v6115_v40, %v6027_v55 }
 0x4ca   : > { %v6155_v28 = vmax.f32 %v6116_v18, 0.0 }
 0x4cc   : > { %6187 = vst [vmem:[%s9855_s22 + $0xd8] sm:$0xff] %v6155_v28 }
 0x4cd   : > { %v6029_v50 = vpop.f32.mrf.mxu1 }
 0x4ce   : > { %v6030_v58 = vadd.f32 %v9846_v30, %v6029_v50 }
 0x4d0   : > { %v6119_v2 = vadd.f32 %v6118_v20, %v6030_v58 }
 0x4d2   : > { %v6156_v26 = vmax.f32 %v6119_v2, 0.0 }
 0x4d4   : > { %6188 = vst [vmem:[%s9855_s22 + $0xe0] sm:$0xff] %v6156_v26 }
 0x4d5   : > { %v6031_v19 = vpop.f32.mrf.mxu1 }
 0x4d6   : > { %v6032_v44 = vadd.f32 %v9846_v30, %v6031_v19 }
 0x4d8   : > { %v6121_v12 = vadd.f32 %v6120_v6, %v6032_v44 }
 0x4da   : > { %v6157_v39 = vmax.f32 %v6121_v12, 0.0 }
 0x4dc   : > { %6189 = vst [vmem:[%s9855_s22 + $0xe8] sm:$0xff] %v6157_v39 }
 0x4dd   : > { %v6034_v24 = vpop.f32.mrf.mxu1 }
 0x4de   : > { %v6035_v5 = vadd.f32 %v9846_v30, %v6034_v24 }
 0x4e0   : > { %v6124_v14 = vadd.f32 %v6123_v4, %v6035_v5 }
 0x4e2   : > { %v6158_v35 = vmax.f32 %v6124_v14, 0.0 }
 0x4e4   : > { %6190 = vst [vmem:[%s9855_s22 + $0xf0] sm:$0xff] %v6158_v35 }
 0x4e5   : > { %v6036_v17 = vpop.f32.mrf.mxu1 }
 0x4e6   : > { %v6037_v42 = vadd.f32 %v9846_v30, %v6036_v17 }
 0x4e8   : > { %v6126_v48 = vadd.f32 %v6125_v49, %v6037_v42 }
 0x4ea   : > { %v6159_v53 = vmax.f32 %v6126_v48, 0.0 }
 0x4ec   : > { %6191 = vst [vmem:[%s9855_s22 + $0xf8] sm:$0xff] %v6159_v53 }
 0x4ed PF: > { %s19_s11 = sadd.s32 1, %s7418_s11   ;;  %s10107_s30 = smov %s7414_s10 }
 0x4ee   : > { %p16_p5 = scmp.ge.s32.totalorder %s19_s11, 4   ;;  %s10108_s10 = smov %s10110_s12 }
 0x4f0   :  { %18 = sbr.rel (!%p16_p5) target bundleno = 2 (0x2), region = 103 }

</bundles_post_ra>
